<compile_context>
chip_gen: v5e
topology: v5e:2x2
jax: 0.10.0
libtpu: 0.0.40
codegen_flags: <defaults>
</compile_context>

<pallas_src>
import functools

import jax
import jax.numpy as jnp
import numpy as np
from jax import lax
from jax.experimental import pallas as pl
from jax.experimental.pallas import tpu as pltpu

_BN_EPS = 1e-5
_LANE = 128


def _round_up(x, m):
    return ((x + m - 1) // m) * m


# ---------------------------------------------------------------------------
# Kernel 1: ConvTranspose2d(k=3, s=2, p=1, op=1) via sub-pixel phase matmul
# ---------------------------------------------------------------------------
def _upconv_kernel(x_ref, w_ref, b_ref, o_ref, taps_ref, *, offsets, l_out, cin):
    # Assemble the 4 shifted taps of the (undilated) input -> (4*Cin, L) bf16.
    for t, off in enumerate(offsets):
        taps_ref[t * cin:(t + 1) * cin, :] = x_ref[0, :, off:off + l_out]
    acc = jnp.dot(w_ref[...], taps_ref[...],
                  preferred_element_type=jnp.float32)          # (4*Cin_up, L)
    o_ref[0, :, :] = (acc + b_ref[...]).astype(o_ref.dtype)    # lane-dense store


def _upconv(x_flat, w_mat, bias, *, l_out, offsets):
    n, cin, lx = x_flat.shape
    cout, ktot = w_mat.shape
    assert ktot == len(offsets) * cin
    kernel = functools.partial(_upconv_kernel,
                               offsets=tuple(int(o) for o in offsets),
                               l_out=int(l_out), cin=int(cin))
    return pl.pallas_call(
        kernel,
        out_shape=jax.ShapeDtypeStruct((n, cout, l_out), jnp.bfloat16),
        grid=(n,),   # independent images -> shards across v7x's 2 TensorCores
        in_specs=[
            pl.BlockSpec((1, cin, lx), lambda i: (i, 0, 0)),
            pl.BlockSpec((cout, ktot), lambda i: (0, 0)),
            pl.BlockSpec((cout, 1), lambda i: (0, 0)),
        ],
        out_specs=pl.BlockSpec((1, cout, l_out), lambda i: (i, 0, 0)),
        scratch_shapes=[pltpu.VMEM((ktot, l_out), jnp.bfloat16)],
        compiler_params=pltpu.CompilerParams(
            dimension_semantics=("parallel",)),
    )(x_flat, w_mat, bias.reshape(cout, 1).astype(jnp.float32))


# ---------------------------------------------------------------------------
# Kernel 2: fused (concat + conv1 + BN1 + ReLU + conv2 + BN2 + ReLU)
# The conv1 result never leaves VMEM.
# ---------------------------------------------------------------------------
def _dconv_kernel(mask_ref, xp_ref, xu_ref, w1_ref, b1_ref, w2_ref, b2_ref,
                  o_ref, taps1_ref, ypad_ref, taps2_ref,
                  *, offsets, l_out, y_shift, cin, cout):
    # ---- conv1 taps: channel concat (x_prev, x_up) fused into one K=18*Cin.
    row = 0
    for x_ref in (xp_ref, xu_ref):
        for off in offsets:
            taps1_ref[row:row + cin, :] = x_ref[0, :, off:off + l_out]
            row += cin
    acc1 = jnp.dot(w1_ref[...], taps1_ref[...],
                   preferred_element_type=jnp.float32)          # (Cout, L)
    # BN scale already folded into w1; epilogue = bias + ReLU.  The mask zeroes
    # the wrap/tail columns so they land as the zero padding of conv2's input.
    y1 = jnp.maximum(acc1 + b1_ref[...], 0.0) * mask_ref[...]

    # ---- place y into the padded (halo) layout for conv2, entirely in VMEM.
    ypad_ref[...] = jnp.zeros_like(ypad_ref)                    # zero border
    ypad_ref[:, y_shift:y_shift + l_out] = y1.astype(ypad_ref.dtype)

    # ---- conv2 taps straight out of the VMEM-resident padded y.
    for t, off in enumerate(offsets):
        taps2_ref[t * cout:(t + 1) * cout, :] = ypad_ref[:, off:off + l_out]
    acc2 = jnp.dot(w2_ref[...], taps2_ref[...],
                   preferred_element_type=jnp.float32)          # (Cout, L)
    o_ref[0, :, :] = jnp.maximum(acc2 + b2_ref[...], 0.0).astype(o_ref.dtype)


def _double_conv(xp_flat, xu_flat, mask, w1s, b1, w2s, b2,
                 *, l_out, offsets, y_shift, ypad_len):
    n, cin, lxp = xp_flat.shape
    lxu = xu_flat.shape[2]
    cout = w1s.shape[0]
    n_taps = len(offsets)
    kernel = functools.partial(_dconv_kernel,
                               offsets=tuple(int(o) for o in offsets),
                               l_out=int(l_out), y_shift=int(y_shift),
                               cin=int(cin), cout=int(cout))
    return pl.pallas_call(
        kernel,
        out_shape=jax.ShapeDtypeStruct((n, cout, l_out), jnp.float32),
        grid=(n,),
        in_specs=[
            pl.BlockSpec((1, l_out), lambda i: (0, 0)),            # mask
            pl.BlockSpec((1, cin, lxp), lambda i: (i, 0, 0)),      # x_prev
            pl.BlockSpec((1, cin, lxu), lambda i: (i, 0, 0)),      # x_up
            pl.BlockSpec(w1s.shape, lambda i: (0, 0)),
            pl.BlockSpec((cout, 1), lambda i: (0, 0)),
            pl.BlockSpec(w2s.shape, lambda i: (0, 0)),
            pl.BlockSpec((cout, 1), lambda i: (0, 0)),
        ],
        out_specs=pl.BlockSpec((1, cout, l_out), lambda i: (i, 0, 0)),
        scratch_shapes=[
            pltpu.VMEM((2 * n_taps * cin, l_out), jnp.bfloat16),   # conv1 taps
            pltpu.VMEM((cout, ypad_len), jnp.bfloat16),            # padded y
            pltpu.VMEM((n_taps * cout, l_out), jnp.bfloat16),      # conv2 taps
        ],
        compiler_params=pltpu.CompilerParams(
            dimension_semantics=("parallel",)),
    )(mask, xp_flat, xu_flat,
      w1s, b1.reshape(cout, 1).astype(jnp.float32),
      w2s, b2.reshape(cout, 1).astype(jnp.float32))


# ---------------------------------------------------------------------------
# Host-side (trace-time) helpers: layout plumbing + weight re-packing
# ---------------------------------------------------------------------------
def _spatial_pad_flatten(x, pad_hw, max_off, l_out):
    """Pad NCHW spatially, flatten H*W onto the lane axis, and pad the lane
    axis so every tap window [off, off+l_out) is in bounds (128-aligned)."""
    (p_t, p_b), (p_l, p_r) = pad_hw
    x = jnp.pad(x, ((0, 0), (0, 0), (p_t, p_b), (p_l, p_r)))
    n, c, hp, wp = x.shape
    ltot = hp * wp
    need = max(ltot, int(l_out) + int(max_off))
    lpad = _round_up(need, _LANE)
    x = x.reshape(n, c, ltot)
    return jnp.pad(x, ((0, 0), (0, 0), (0, lpad - ltot)))


def _conv3x3_w_to_mat(w, n_src):
    """torch Conv2d weight (Cout, n_src*C, 3, 3) -> (Cout, n_src*9*C),
    source-major, then tap (kh,kw), then input channel (matches torch.cat)."""
    cout, cin_t, _, _ = w.shape
    c = cin_t // n_src
    parts = [jnp.transpose(w[:, s * c:(s + 1) * c], (0, 2, 3, 1)).reshape(cout, 9 * c)
             for s in range(n_src)]
    return jnp.concatenate(parts, axis=1).astype(jnp.float32)


def _upconv_w_to_mat(w_t):
    """torch ConvTranspose2d weight (Cin, Cout, 3, 3) -> phase-decomposed
    matrix (4*Cout, 4*Cin): rows ordered (phase p=dp*2+dq, out-channel),
    columns ordered (tap t=dh*2+dw, in-channel)."""
    c, cup = w_t.shape[0], w_t.shape[1]
    mat = jnp.zeros((4 * cup, 4 * c), jnp.float32)
    for dp in range(2):
        for dq in range(2):
            p = dp * 2 + dq
            for dh in range(2):
                for dw in range(2):
                    kh = dp + 1 - 2 * dh
                    kw = dq + 1 - 2 * dw
                    if 0 <= kh <= 2 and 0 <= kw <= 2:
                        t = dh * 2 + dw
                        mat = mat.at[p * cup:(p + 1) * cup,
                                     t * c:(t + 1) * c].set(w_t[:, :, kh, kw].T)
    return mat


def _bn_fold(conv_b, gamma, beta, mean, var):
    s = gamma / jnp.sqrt(var + _BN_EPS)
    return s, (conv_b - mean) * s + beta


# ---------------------------------------------------------------------------
# Up.forward (NCHW in, NCHW out)
# ---------------------------------------------------------------------------
def up_forward(params, x_prev, x):
    n, cin, h, w = x.shape
    ho, wo = 2 * h, 2 * w
    cout = params["c1_w"].shape[0]
    cdt = jnp.bfloat16

    # ---- self.up : ConvTranspose2d(cin, cin, 3, stride=2, padding=1,
    #      output_padding=1), phase-decomposed (4 taps, one matmul).
    wq = w + 1
    offs_up = [dh * wq + dw for dh in range(2) for dw in range(2)]
    l_up = h * wq
    l_up128 = _round_up(l_up, _LANE)
    x_flat = _spatial_pad_flatten(x.astype(cdt), ((0, 1), (0, 1)),
                                  max(offs_up), l_up128)
    w_up = _upconv_w_to_mat(params["up_w"]).astype(cdt)
    up_out = _upconv(x_flat, w_up,
                     jnp.tile(params["up_b"].astype(jnp.float32), 4),
                     l_out=l_up128, offsets=offs_up)
    # (N, 4*Cin, L) bf16 -> interleave the 4 parities -> (N, Cin, 2H, 2W)
    x_up = up_out[:, :, :l_up].reshape(n, 2, 2, cin, h, wq)[..., :w]
    x_up = jnp.transpose(x_up, (0, 3, 4, 1, 5, 2)).reshape(n, cin, ho, wo)

    # ---- fused: concat + conv1 + BN1 + ReLU + conv2 + BN2 + ReLU
    wp = wo + 2
    offs3 = [kh * wp + kw for kh in range(3) for kw in range(3)]
    max_off3 = max(offs3)
    l_c = ho * wp
    l_c128 = _round_up(l_c, _LANE)
    xp_flat = _spatial_pad_flatten(x_prev.astype(cdt), ((1, 1), (1, 1)),
                                   max_off3, l_c128)
    xu_flat = _spatial_pad_flatten(x_up, ((1, 1), (1, 1)), max_off3, l_c128)

    s1, b1 = _bn_fold(params["c1_b"], params["bn1_g"], params["bn1_b"],
                      params["bn1_m"], params["bn1_v"])
    s2, b2 = _bn_fold(params["c2_b"], params["bn2_g"], params["bn2_b"],
                      params["bn2_m"], params["bn2_v"])
    # Fold the BN scale into the weight rows (kernel epilogue = bias + ReLU).
    w1s = (s1[:, None] * _conv3x3_w_to_mat(params["c1_w"], n_src=2)).astype(cdt)
    w2s = (s2[:, None] * _conv3x3_w_to_mat(params["c2_w"], n_src=1)).astype(cdt)

    # Mask that zeroes conv1's wrap / tail columns so that, after the shift by
    # wp+1, they become the zero padding columns of conv2's in-VMEM input.
    lanes = np.arange(l_c128)
    mask = ((lanes % wp < wo) & (lanes < l_c)).astype(np.float32)[None, :]
    mask = jnp.asarray(mask)

    ypad_len = _round_up(l_c128 + max_off3, _LANE)
    y = _double_conv(xp_flat, xu_flat, mask, w1s, b1, w2s, b2,
                     l_out=l_c128, offsets=offs3, y_shift=wp + 1,
                     ypad_len=ypad_len)
    y = y[:, :, :l_c].reshape(n, cout, ho, wp)[:, :, :, :wo]   # drop wrap cols
    return y                                                   # already NCHW


# ---------------------------------------------------------------------------
# Pure-JAX (XLA conv) reference for correctness checking
# ---------------------------------------------------------------------------
def up_forward_ref(params, x_prev_nchw, x_nchw):
    dn = ("NCHW", "OIHW", "NCHW")
    w_t = params["up_w"]
    w_eq = jnp.transpose(w_t[:, :, ::-1, ::-1], (1, 0, 2, 3))     # -> OIHW
    xu = lax.conv_general_dilated(x_nchw, w_eq, (1, 1), [(1, 2), (1, 2)],
                                  lhs_dilation=(2, 2), dimension_numbers=dn)
    xu = xu + params["up_b"][None, :, None, None]
    z = jnp.concatenate([x_prev_nchw, xu], axis=1)

    def block(z, w, b, g, be, m, v):
        z = lax.conv_general_dilated(z, w, (1, 1), [(1, 1), (1, 1)],
                                     dimension_numbers=dn)
        z = z + b[None, :, None, None]
        z = (g[None, :, None, None] * (z - m[None, :, None, None])
             / jnp.sqrt(v + _BN_EPS)[None, :, None, None]
             + be[None, :, None, None])
        return jnp.maximum(z, 0.0)

    z = block(z, params["c1_w"], params["c1_b"], params["bn1_g"],
              params["bn1_b"], params["bn1_m"], params["bn1_v"])
    z = block(z, params["c2_w"], params["c2_b"], params["bn2_g"],
              params["bn2_b"], params["bn2_m"], params["bn2_v"])
    return z


if __name__ == "__main__":
    in_ch, out_ch = 4, 8
    N, H, W = 2, 16, 16

    key = jax.random.PRNGKey(0)
    ks = jax.random.split(key, 16)
    params = {
        # ConvTranspose2d(in_ch, in_ch, 3, stride=2, padding=1, output_padding=1)
        "up_w": 0.1 * jax.random.normal(ks[0], (in_ch, in_ch, 3, 3), jnp.float32),
        "up_b": 0.1 * jax.random.normal(ks[1], (in_ch,), jnp.float32),
        # Conv2d(2*in_ch, out_ch, 3, padding=1) + BatchNorm2d(out_ch)
        "c1_w": 0.1 * jax.random.normal(ks[2], (out_ch, 2 * in_ch, 3, 3), jnp.float32),
        "c1_b": 0.1 * jax.random.normal(ks[3], (out_ch,), jnp.float32),
        "bn1_g": 1.0 + 0.1 * jax.random.normal(ks[4], (out_ch,), jnp.float32),
        "bn1_b": 0.1 * jax.random.normal(ks[5], (out_ch,), jnp.float32),
        "bn1_m": 0.1 * jax.random.normal(ks[6], (out_ch,), jnp.float32),
        "bn1_v": 1.0 + 0.1 * jax.random.uniform(ks[7], (out_ch,), jnp.float32),
        # Conv2d(out_ch, out_ch, 3, padding=1) + BatchNorm2d(out_ch)
        "c2_w": 0.1 * jax.random.normal(ks[8], (out_ch, out_ch, 3, 3), jnp.float32),
        "c2_b": 0.1 * jax.random.normal(ks[9], (out_ch,), jnp.float32),
        "bn2_g": 1.0 + 0.1 * jax.random.normal(ks[10], (out_ch,), jnp.float32),
        "bn2_b": 0.1 * jax.random.normal(ks[11], (out_ch,), jnp.float32),
        "bn2_m": 0.1 * jax.random.normal(ks[12], (out_ch,), jnp.float32),
        "bn2_v": 1.0 + 0.1 * jax.random.uniform(ks[13], (out_ch,), jnp.float32),
    }

    x = jax.random.normal(ks[14], (N, in_ch, H, W), jnp.float32)              # NCHW
    x_prev = jax.random.normal(ks[15], (N, in_ch, 2 * H, 2 * W), jnp.float32)

    out = jax.jit(up_forward)(params, x_prev, x)
    out = jax.block_until_ready(out)

    assert out.shape == (N, out_ch, 2 * H, 2 * W), out.shape
    ref = up_forward_ref(params, x_prev, x)
    # bf16 weights/taps with f32 accumulation -> looser tolerance than pure f32.
    np.testing.assert_allclose(np.asarray(out), np.asarray(ref),
                               rtol=3e-2, atol=3e-2)
    print("KERNEL_OK")
</pallas_src>

<mosaic_0001>
module attributes {stable_mosaic.version = 11 : i64} {
  func.func @_upconv_kernel(%arg0: i32, %arg1: memref<1x4x512xbf16, #tpu.memory_space<vmem>>, %arg2: memref<16x16xbf16, #tpu.memory_space<vmem>>, %arg3: memref<16x1xf32, #tpu.memory_space<vmem>>, %arg4: memref<1x16x384xbf16, #tpu.memory_space<vmem>>, %arg5: memref<16x384xbf16, #tpu.memory_space<vmem>>) attributes {dimension_semantics = [#tpu.dimension_semantics<parallel>], iteration_bounds = array<i64: 2>, scalar_prefetch = 0 : i64, scratch_operands = 1 : i64, tpu.core_type = #tpu.core_type<tc>, window_params = [{transform_indices = @transform_0, window_bounds = array<i64: 1, 4, 512>}, {pipeline_mode = #tpu.pipeline_mode<synchronous>, transform_indices = @transform_1, window_bounds = array<i64: 16, 16>}, {pipeline_mode = #tpu.pipeline_mode<synchronous>, transform_indices = @transform_2, window_bounds = array<i64: 16, 1>}, {transform_indices = @transform_3, window_bounds = array<i64: 1, 16, 384>}]} {
    %c0 = arith.constant 0 : index
    %c0_0 = arith.constant 0 : index
    %c0_1 = arith.constant 0 : index
    %0 = vector.load %arg1[%c0, %c0_0, %c0_1] : memref<1x4x512xbf16, #tpu.memory_space<vmem>>, vector<1x4x384xbf16>
    %1 = vector.shape_cast %0 : vector<1x4x384xbf16> to vector<4x384xbf16>
    %c0_2 = arith.constant 0 : index
    %c0_3 = arith.constant 0 : index
    %2 = vector.load %arg5[%c0_2, %c0_3] : memref<16x384xbf16, #tpu.memory_space<vmem>>, vector<4x384xbf16>
    tpu.vector_store %arg5[%c0_2, %c0_3], %1 {strides = array<i32>} : memref<16x384xbf16, #tpu.memory_space<vmem>>, vector<4x384xbf16>,
    %c0_4 = arith.constant 0 : index
    %c0_5 = arith.constant 0 : index
    %c1 = arith.constant 1 : index
    %3 = vector.load %arg1[%c0_4, %c0_5, %c1] : memref<1x4x512xbf16, #tpu.memory_space<vmem>>, vector<1x4x384xbf16>
    %4 = vector.shape_cast %3 : vector<1x4x384xbf16> to vector<4x384xbf16>
    %c4 = arith.constant 4 : index
    %c0_6 = arith.constant 0 : index
    %5 = vector.load %arg5[%c4, %c0_6] : memref<16x384xbf16, #tpu.memory_space<vmem>>, vector<4x384xbf16>
    tpu.vector_store %arg5[%c4, %c0_6], %4 {strides = array<i32>} : memref<16x384xbf16, #tpu.memory_space<vmem>>, vector<4x384xbf16>,
    %c0_7 = arith.constant 0 : index
    %c0_8 = arith.constant 0 : index
    %c17 = arith.constant 17 : index
    %6 = vector.load %arg1[%c0_7, %c0_8, %c17] : memref<1x4x512xbf16, #tpu.memory_space<vmem>>, vector<1x4x384xbf16>
    %7 = vector.shape_cast %6 : vector<1x4x384xbf16> to vector<4x384xbf16>
    %c8 = arith.constant 8 : index
    %c0_9 = arith.constant 0 : index
    %8 = vector.load %arg5[%c8, %c0_9] : memref<16x384xbf16, #tpu.memory_space<vmem>>, vector<4x384xbf16>
    tpu.vector_store %arg5[%c8, %c0_9], %7 {strides = array<i32>} : memref<16x384xbf16, #tpu.memory_space<vmem>>, vector<4x384xbf16>,
    %c0_10 = arith.constant 0 : index
    %c0_11 = arith.constant 0 : index
    %c18 = arith.constant 18 : index
    %9 = vector.load %arg1[%c0_10, %c0_11, %c18] : memref<1x4x512xbf16, #tpu.memory_space<vmem>>, vector<1x4x384xbf16>
    %10 = vector.shape_cast %9 : vector<1x4x384xbf16> to vector<4x384xbf16>
    %c12 = arith.constant 12 : index
    %c0_12 = arith.constant 0 : index
    %11 = vector.load %arg5[%c12, %c0_12] : memref<16x384xbf16, #tpu.memory_space<vmem>>, vector<4x384xbf16>
    tpu.vector_store %arg5[%c12, %c0_12], %10 {strides = array<i32>} : memref<16x384xbf16, #tpu.memory_space<vmem>>, vector<4x384xbf16>,
    %c0_13 = arith.constant 0 : index
    %c0_14 = arith.constant 0 : index
    %12 = vector.load %arg2[%c0_13, %c0_14] : memref<16x16xbf16, #tpu.memory_space<vmem>>, vector<16x16xbf16>
    %c0_15 = arith.constant 0 : index
    %c0_16 = arith.constant 0 : index
    %13 = vector.load %arg5[%c0_15, %c0_16] : memref<16x384xbf16, #tpu.memory_space<vmem>>, vector<16x384xbf16>
    %cst = arith.constant dense<0.000000e+00> : vector<16x384xf32>
    %14 = tpu.matmul %12, %13, %cst {dimension_numbers = #tpu.dot_dimension_numbers<[1], [0], [0], [1], [0, 0, 1, 1], [], []>} : vector<16x16xbf16>, vector<16x384xbf16>, vector<16x384xf32> -> vector<16x384xf32>
    %c0_17 = arith.constant 0 : index
    %c0_18 = arith.constant 0 : index
    %15 = vector.load %arg3[%c0_17, %c0_18] : memref<16x1xf32, #tpu.memory_space<vmem>>, vector<16x1xf32>
    %16 = vector.broadcast %15 : vector<16x1xf32> to vector<16x384xf32>
    %17 = arith.addf %14, %16 : vector<16x384xf32>
    %18 = arith.truncf %17 : vector<16x384xf32> to vector<16x384xbf16>
    %c0_19 = arith.constant 0 : index
    %c0_20 = arith.constant 0 : index
    %c0_21 = arith.constant 0 : index
    %19 = vector.load %arg4[%c0_19, %c0_20, %c0_21] : memref<1x16x384xbf16, #tpu.memory_space<vmem>>, vector<1x16x384xbf16>
    %20 = vector.shape_cast %19 : vector<1x16x384xbf16> to vector<16x384xbf16>
    %21 = vector.shape_cast %18 : vector<16x384xbf16> to vector<1x16x384xbf16>
    tpu.vector_store %arg4[%c0_19, %c0_20, %c0_21], %21 {strides = array<i32>} : memref<1x16x384xbf16, #tpu.memory_space<vmem>>, vector<1x16x384xbf16>,
    return
  }
  func.func @transform_0(%arg0: i32) -> (i32, i32, i32) {
    %c0_i32 = arith.constant 0 : i32
    %c0_i32_0 = arith.constant 0 : i32
    %c0_i32_1 = arith.constant 0 : i32
    return %arg0, %c0_i32, %c0_i32_0 : i32, i32, i32
  }
  func.func @transform_1(%arg0: i32) -> (i32, i32) {
    %c0_i32 = arith.constant 0 : i32
    %c0_i32_0 = arith.constant 0 : i32
    %c0_i32_1 = arith.constant 0 : i32
    return %c0_i32, %c0_i32_0 : i32, i32
  }
  func.func @transform_2(%arg0: i32) -> (i32, i32) {
    %c0_i32 = arith.constant 0 : i32
    %c0_i32_0 = arith.constant 0 : i32
    %c0_i32_1 = arith.constant 0 : i32
    return %c0_i32, %c0_i32_0 : i32, i32
  }
  func.func @transform_3(%arg0: i32) -> (i32, i32, i32) {
    %c0_i32 = arith.constant 0 : i32
    %c0_i32_0 = arith.constant 0 : i32
    %c0_i32_1 = arith.constant 0 : i32
    return %arg0, %c0_i32, %c0_i32_0 : i32, i32, i32
  }
}

module attributes {stable_mosaic.version = 11 : i64} {
  func.func @_dconv_kernel(%arg0: i32, %arg1: memref<1x1152xf32, #tpu.memory_space<vmem>>, %arg2: memref<1x4x1280xbf16, #tpu.memory_space<vmem>>, %arg3: memref<1x4x1280xbf16, #tpu.memory_space<vmem>>, %arg4: memref<8x72xbf16, #tpu.memory_space<vmem>>, %arg5: memref<8x1xf32, #tpu.memory_space<vmem>>, %arg6: memref<8x72xbf16, #tpu.memory_space<vmem>>, %arg7: memref<8x1xf32, #tpu.memory_space<vmem>>, %arg8: memref<1x8x1152xf32, #tpu.memory_space<vmem>>, %arg9: memref<72x1152xbf16, #tpu.memory_space<vmem>>, %arg10: memref<8x1280xbf16, #tpu.memory_space<vmem>>, %arg11: memref<72x1152xbf16, #tpu.memory_space<vmem>>) attributes {dimension_semantics = [#tpu.dimension_semantics<parallel>], iteration_bounds = array<i64: 2>, scalar_prefetch = 0 : i64, scratch_operands = 3 : i64, tpu.core_type = #tpu.core_type<tc>, window_params = [{pipeline_mode = #tpu.pipeline_mode<synchronous>, transform_indices = @transform_0, window_bounds = array<i64: 1, 1152>}, {transform_indices = @transform_1, window_bounds = array<i64: 1, 4, 1280>}, {transform_indices = @transform_2, window_bounds = array<i64: 1, 4, 1280>}, {pipeline_mode = #tpu.pipeline_mode<synchronous>, transform_indices = @transform_3, window_bounds = array<i64: 8, 72>}, {pipeline_mode = #tpu.pipeline_mode<synchronous>, transform_indices = @transform_4, window_bounds = array<i64: 8, 1>}, {pipeline_mode = #tpu.pipeline_mode<synchronous>, transform_indices = @transform_5, window_bounds = array<i64: 8, 72>}, {pipeline_mode = #tpu.pipeline_mode<synchronous>, transform_indices = @transform_6, window_bounds = array<i64: 8, 1>}, {transform_indices = @transform_7, window_bounds = array<i64: 1, 8, 1152>}]} {
    %c0 = arith.constant 0 : index
    %c0_0 = arith.constant 0 : index
    %c0_1 = arith.constant 0 : index
    %0 = vector.load %arg2[%c0, %c0_0, %c0_1] : memref<1x4x1280xbf16, #tpu.memory_space<vmem>>, vector<1x4x1152xbf16>
    %1 = vector.shape_cast %0 : vector<1x4x1152xbf16> to vector<4x1152xbf16>
    %c0_2 = arith.constant 0 : index
    %c0_3 = arith.constant 0 : index
    %2 = vector.load %arg9[%c0_2, %c0_3] : memref<72x1152xbf16, #tpu.memory_space<vmem>>, vector<4x1152xbf16>
    tpu.vector_store %arg9[%c0_2, %c0_3], %1 {strides = array<i32>} : memref<72x1152xbf16, #tpu.memory_space<vmem>>, vector<4x1152xbf16>,
    %c0_4 = arith.constant 0 : index
    %c0_5 = arith.constant 0 : index
    %c1 = arith.constant 1 : index
    %3 = vector.load %arg2[%c0_4, %c0_5, %c1] : memref<1x4x1280xbf16, #tpu.memory_space<vmem>>, vector<1x4x1152xbf16>
    %4 = vector.shape_cast %3 : vector<1x4x1152xbf16> to vector<4x1152xbf16>
    %c4 = arith.constant 4 : index
    %c0_6 = arith.constant 0 : index
    %5 = vector.load %arg9[%c4, %c0_6] : memref<72x1152xbf16, #tpu.memory_space<vmem>>, vector<4x1152xbf16>
    tpu.vector_store %arg9[%c4, %c0_6], %4 {strides = array<i32>} : memref<72x1152xbf16, #tpu.memory_space<vmem>>, vector<4x1152xbf16>,
    %c0_7 = arith.constant 0 : index
    %c0_8 = arith.constant 0 : index
    %c2 = arith.constant 2 : index
    %6 = vector.load %arg2[%c0_7, %c0_8, %c2] : memref<1x4x1280xbf16, #tpu.memory_space<vmem>>, vector<1x4x1152xbf16>
    %7 = vector.shape_cast %6 : vector<1x4x1152xbf16> to vector<4x1152xbf16>
    %c8 = arith.constant 8 : index
    %c0_9 = arith.constant 0 : index
    %8 = vector.load %arg9[%c8, %c0_9] : memref<72x1152xbf16, #tpu.memory_space<vmem>>, vector<4x1152xbf16>
    tpu.vector_store %arg9[%c8, %c0_9], %7 {strides = array<i32>} : memref<72x1152xbf16, #tpu.memory_space<vmem>>, vector<4x1152xbf16>,
    %c0_10 = arith.constant 0 : index
    %c0_11 = arith.constant 0 : index
    %c34 = arith.constant 34 : index
    %9 = vector.load %arg2[%c0_10, %c0_11, %c34] : memref<1x4x1280xbf16, #tpu.memory_space<vmem>>, vector<1x4x1152xbf16>
    %10 = vector.shape_cast %9 : vector<1x4x1152xbf16> to vector<4x1152xbf16>
    %c12 = arith.constant 12 : index
    %c0_12 = arith.constant 0 : index
    %11 = vector.load %arg9[%c12, %c0_12] : memref<72x1152xbf16, #tpu.memory_space<vmem>>, vector<4x1152xbf16>
    tpu.vector_store %arg9[%c12, %c0_12], %10 {strides = array<i32>} : memref<72x1152xbf16, #tpu.memory_space<vmem>>, vector<4x1152xbf16>,
    %c0_13 = arith.constant 0 : index
    %c0_14 = arith.constant 0 : index
    %c35 = arith.constant 35 : index
    %12 = vector.load %arg2[%c0_13, %c0_14, %c35] : memref<1x4x1280xbf16, #tpu.memory_space<vmem>>, vector<1x4x1152xbf16>
    %13 = vector.shape_cast %12 : vector<1x4x1152xbf16> to vector<4x1152xbf16>
    %c16 = arith.constant 16 : index
    %c0_15 = arith.constant 0 : index
    %14 = vector.load %arg9[%c16, %c0_15] : memref<72x1152xbf16, #tpu.memory_space<vmem>>, vector<4x1152xbf16>
    tpu.vector_store %arg9[%c16, %c0_15], %13 {strides = array<i32>} : memref<72x1152xbf16, #tpu.memory_space<vmem>>, vector<4x1152xbf16>,
    %c0_16 = arith.constant 0 : index
    %c0_17 = arith.constant 0 : index
    %c36 = arith.constant 36 : index
    %15 = vector.load %arg2[%c0_16, %c0_17, %c36] : memref<1x4x1280xbf16, #tpu.memory_space<vmem>>, vector<1x4x1152xbf16>
    %16 = vector.shape_cast %15 : vector<1x4x1152xbf16> to vector<4x1152xbf16>
    %c20 = arith.constant 20 : index
    %c0_18 = arith.constant 0 : index
    %17 = vector.load %arg9[%c20, %c0_18] : memref<72x1152xbf16, #tpu.memory_space<vmem>>, vector<4x1152xbf16>
    tpu.vector_store %arg9[%c20, %c0_18], %16 {strides = array<i32>} : memref<72x1152xbf16, #tpu.memory_space<vmem>>, vector<4x1152xbf16>,
    %c0_19 = arith.constant 0 : index
    %c0_20 = arith.constant 0 : index
    %c68 = arith.constant 68 : index
    %18 = vector.load %arg2[%c0_19, %c0_20, %c68] : memref<1x4x1280xbf16, #tpu.memory_space<vmem>>, vector<1x4x1152xbf16>
    %19 = vector.shape_cast %18 : vector<1x4x1152xbf16> to vector<4x1152xbf16>
    %c24 = arith.constant 24 : index
    %c0_21 = arith.constant 0 : index
    %20 = vector.load %arg9[%c24, %c0_21] : memref<72x1152xbf16, #tpu.memory_space<vmem>>, vector<4x1152xbf16>
    tpu.vector_store %arg9[%c24, %c0_21], %19 {strides = array<i32>} : memref<72x1152xbf16, #tpu.memory_space<vmem>>, vector<4x1152xbf16>,
    %c0_22 = arith.constant 0 : index
    %c0_23 = arith.constant 0 : index
    %c69 = arith.constant 69 : index
    %21 = vector.load %arg2[%c0_22, %c0_23, %c69] : memref<1x4x1280xbf16, #tpu.memory_space<vmem>>, vector<1x4x1152xbf16>
    %22 = vector.shape_cast %21 : vector<1x4x1152xbf16> to vector<4x1152xbf16>
    %c28 = arith.constant 28 : index
    %c0_24 = arith.constant 0 : index
    %23 = vector.load %arg9[%c28, %c0_24] : memref<72x1152xbf16, #tpu.memory_space<vmem>>, vector<4x1152xbf16>
    tpu.vector_store %arg9[%c28, %c0_24], %22 {strides = array<i32>} : memref<72x1152xbf16, #tpu.memory_space<vmem>>, vector<4x1152xbf16>,
    %c0_25 = arith.constant 0 : index
    %c0_26 = arith.constant 0 : index
    %c70 = arith.constant 70 : index
    %24 = vector.load %arg2[%c0_25, %c0_26, %c70] : memref<1x4x1280xbf16, #tpu.memory_space<vmem>>, vector<1x4x1152xbf16>
    %25 = vector.shape_cast %24 : vector<1x4x1152xbf16> to vector<4x1152xbf16>
    %c32 = arith.constant 32 : index
    %c0_27 = arith.constant 0 : index
    %26 = vector.load %arg9[%c32, %c0_27] : memref<72x1152xbf16, #tpu.memory_space<vmem>>, vector<4x1152xbf16>
    tpu.vector_store %arg9[%c32, %c0_27], %25 {strides = array<i32>} : memref<72x1152xbf16, #tpu.memory_space<vmem>>, vector<4x1152xbf16>,
    %c0_28 = arith.constant 0 : index
    %c0_29 = arith.constant 0 : index
    %c0_30 = arith.constant 0 : index
    %27 = vector.load %arg3[%c0_28, %c0_29, %c0_30] : memref<1x4x1280xbf16, #tpu.memory_space<vmem>>, vector<1x4x1152xbf16>
    %28 = vector.shape_cast %27 : vector<1x4x1152xbf16> to vector<4x1152xbf16>
    %c36_31 = arith.constant 36 : index
    %c0_32 = arith.constant 0 : index
    %29 = vector.load %arg9[%c36_31, %c0_32] : memref<72x1152xbf16, #tpu.memory_space<vmem>>, vector<4x1152xbf16>
    tpu.vector_store %arg9[%c36_31, %c0_32], %28 {strides = array<i32>} : memref<72x1152xbf16, #tpu.memory_space<vmem>>, vector<4x1152xbf16>,
    %c0_33 = arith.constant 0 : index
    %c0_34 = arith.constant 0 : index
    %c1_35 = arith.constant 1 : index
    %30 = vector.load %arg3[%c0_33, %c0_34, %c1_35] : memref<1x4x1280xbf16, #tpu.memory_space<vmem>>, vector<1x4x1152xbf16>
    %31 = vector.shape_cast %30 : vector<1x4x1152xbf16> to vector<4x1152xbf16>
    %c40 = arith.constant 40 : index
    %c0_36 = arith.constant 0 : index
    %32 = vector.load %arg9[%c40, %c0_36] : memref<72x1152xbf16, #tpu.memory_space<vmem>>, vector<4x1152xbf16>
    tpu.vector_store %arg9[%c40, %c0_36], %31 {strides = array<i32>} : memref<72x1152xbf16, #tpu.memory_space<vmem>>, vector<4x1152xbf16>,
    %c0_37 = arith.constant 0 : index
    %c0_38 = arith.constant 0 : index
    %c2_39 = arith.constant 2 : index
    %33 = vector.load %arg3[%c0_37, %c0_38, %c2_39] : memref<1x4x1280xbf16, #tpu.memory_space<vmem>>, vector<1x4x1152xbf16>
    %34 = vector.shape_cast %33 : vector<1x4x1152xbf16> to vector<4x1152xbf16>
    %c44 = arith.constant 44 : index
    %c0_40 = arith.constant 0 : index
    %35 = vector.load %arg9[%c44, %c0_40] : memref<72x1152xbf16, #tpu.memory_space<vmem>>, vector<4x1152xbf16>
    tpu.vector_store %arg9[%c44, %c0_40], %34 {strides = array<i32>} : memref<72x1152xbf16, #tpu.memory_space<vmem>>, vector<4x1152xbf16>,
    %c0_41 = arith.constant 0 : index
    %c0_42 = arith.constant 0 : index
    %c34_43 = arith.constant 34 : index
    %36 = vector.load %arg3[%c0_41, %c0_42, %c34_43] : memref<1x4x1280xbf16, #tpu.memory_space<vmem>>, vector<1x4x1152xbf16>
    %37 = vector.shape_cast %36 : vector<1x4x1152xbf16> to vector<4x1152xbf16>
    %c48 = arith.constant 48 : index
    %c0_44 = arith.constant 0 : index
    %38 = vector.load %arg9[%c48, %c0_44] : memref<72x1152xbf16, #tpu.memory_space<vmem>>, vector<4x1152xbf16>
    tpu.vector_store %arg9[%c48, %c0_44], %37 {strides = array<i32>} : memref<72x1152xbf16, #tpu.memory_space<vmem>>, vector<4x1152xbf16>,
    %c0_45 = arith.constant 0 : index
    %c0_46 = arith.constant 0 : index
    %c35_47 = arith.constant 35 : index
    %39 = vector.load %arg3[%c0_45, %c0_46, %c35_47] : memref<1x4x1280xbf16, #tpu.memory_space<vmem>>, vector<1x4x1152xbf16>
    %40 = vector.shape_cast %39 : vector<1x4x1152xbf16> to vector<4x1152xbf16>
    %c52 = arith.constant 52 : index
    %c0_48 = arith.constant 0 : index
    %41 = vector.load %arg9[%c52, %c0_48] : memref<72x1152xbf16, #tpu.memory_space<vmem>>, vector<4x1152xbf16>
    tpu.vector_store %arg9[%c52, %c0_48], %40 {strides = array<i32>} : memref<72x1152xbf16, #tpu.memory_space<vmem>>, vector<4x1152xbf16>,
    %c0_49 = arith.constant 0 : index
    %c0_50 = arith.constant 0 : index
    %c36_51 = arith.constant 36 : index
    %42 = vector.load %arg3[%c0_49, %c0_50, %c36_51] : memref<1x4x1280xbf16, #tpu.memory_space<vmem>>, vector<1x4x1152xbf16>
    %43 = vector.shape_cast %42 : vector<1x4x1152xbf16> to vector<4x1152xbf16>
    %c56 = arith.constant 56 : index
    %c0_52 = arith.constant 0 : index
    %44 = vector.load %arg9[%c56, %c0_52] : memref<72x1152xbf16, #tpu.memory_space<vmem>>, vector<4x1152xbf16>
    tpu.vector_store %arg9[%c56, %c0_52], %43 {strides = array<i32>} : memref<72x1152xbf16, #tpu.memory_space<vmem>>, vector<4x1152xbf16>,
    %c0_53 = arith.constant 0 : index
    %c0_54 = arith.constant 0 : index
    %c68_55 = arith.constant 68 : index
    %45 = vector.load %arg3[%c0_53, %c0_54, %c68_55] : memref<1x4x1280xbf16, #tpu.memory_space<vmem>>, vector<1x4x1152xbf16>
    %46 = vector.shape_cast %45 : vector<1x4x1152xbf16> to vector<4x1152xbf16>
    %c60 = arith.constant 60 : index
    %c0_56 = arith.constant 0 : index
    %47 = vector.load %arg9[%c60, %c0_56] : memref<72x1152xbf16, #tpu.memory_space<vmem>>, vector<4x1152xbf16>
    tpu.vector_store %arg9[%c60, %c0_56], %46 {strides = array<i32>} : memref<72x1152xbf16, #tpu.memory_space<vmem>>, vector<4x1152xbf16>,
    %c0_57 = arith.constant 0 : index
    %c0_58 = arith.constant 0 : index
    %c69_59 = arith.constant 69 : index
    %48 = vector.load %arg3[%c0_57, %c0_58, %c69_59] : memref<1x4x1280xbf16, #tpu.memory_space<vmem>>, vector<1x4x1152xbf16>
    %49 = vector.shape_cast %48 : vector<1x4x1152xbf16> to vector<4x1152xbf16>
    %c64 = arith.constant 64 : index
    %c0_60 = arith.constant 0 : index
    %50 = vector.load %arg9[%c64, %c0_60] : memref<72x1152xbf16, #tpu.memory_space<vmem>>, vector<4x1152xbf16>
    tpu.vector_store %arg9[%c64, %c0_60], %49 {strides = array<i32>} : memref<72x1152xbf16, #tpu.memory_space<vmem>>, vector<4x1152xbf16>,
    %c0_61 = arith.constant 0 : index
    %c0_62 = arith.constant 0 : index
    %c70_63 = arith.constant 70 : index
    %51 = vector.load %arg3[%c0_61, %c0_62, %c70_63] : memref<1x4x1280xbf16, #tpu.memory_space<vmem>>, vector<1x4x1152xbf16>
    %52 = vector.shape_cast %51 : vector<1x4x1152xbf16> to vector<4x1152xbf16>
    %c68_64 = arith.constant 68 : index
    %c0_65 = arith.constant 0 : index
    %53 = vector.load %arg9[%c68_64, %c0_65] : memref<72x1152xbf16, #tpu.memory_space<vmem>>, vector<4x1152xbf16>
    tpu.vector_store %arg9[%c68_64, %c0_65], %52 {strides = array<i32>} : memref<72x1152xbf16, #tpu.memory_space<vmem>>, vector<4x1152xbf16>,
    %c0_66 = arith.constant 0 : index
    %c0_67 = arith.constant 0 : index
    %54 = vector.load %arg4[%c0_66, %c0_67] : memref<8x72xbf16, #tpu.memory_space<vmem>>, vector<8x72xbf16>
    %c0_68 = arith.constant 0 : index
    %c0_69 = arith.constant 0 : index
    %55 = vector.load %arg9[%c0_68, %c0_69] : memref<72x1152xbf16, #tpu.memory_space<vmem>>, vector<72x1152xbf16>
    %cst = arith.constant dense<0.000000e+00> : vector<8x1152xf32>
    %56 = tpu.matmul %54, %55, %cst {dimension_numbers = #tpu.dot_dimension_numbers<[1], [0], [0], [1], [0, 0, 1, 1], [], []>} : vector<8x72xbf16>, vector<72x1152xbf16>, vector<8x1152xf32> -> vector<8x1152xf32>
    %c0_70 = arith.constant 0 : index
    %c0_71 = arith.constant 0 : index
    %57 = vector.load %arg5[%c0_70, %c0_71] : memref<8x1xf32, #tpu.memory_space<vmem>>, vector<8x1xf32>
    %58 = vector.broadcast %57 : vector<8x1xf32> to vector<8x1152xf32>
    %59 = arith.addf %56, %58 : vector<8x1152xf32>
    %cst_72 = arith.constant 0.000000e+00 : f32
    %60 = vector.broadcast %cst_72 : f32 to vector<8x1152xf32>
    %61 = arith.maximumf %59, %60 : vector<8x1152xf32>
    %c0_73 = arith.constant 0 : index
    %c0_74 = arith.constant 0 : index
    %62 = vector.load %arg1[%c0_73, %c0_74] : memref<1x1152xf32, #tpu.memory_space<vmem>>, vector<1x1152xf32>
    %63 = vector.broadcast %62 : vector<1x1152xf32> to vector<8x1152xf32>
    %64 = arith.mulf %61, %63 : vector<8x1152xf32>
    %cst_75 = arith.constant 0.000000e+00 : bf16
    %65 = vector.broadcast %cst_75 : bf16 to vector<8x1280xbf16>
    %c0_76 = arith.constant 0 : index
    %c0_77 = arith.constant 0 : index
    %66 = vector.load %arg10[%c0_76, %c0_77] : memref<8x1280xbf16, #tpu.memory_space<vmem>>, vector<8x1280xbf16>
    tpu.vector_store %arg10[%c0_76, %c0_77], %65 {strides = array<i32>} : memref<8x1280xbf16, #tpu.memory_space<vmem>>, vector<8x1280xbf16>,
    %67 = arith.truncf %64 : vector<8x1152xf32> to vector<8x1152xbf16>
    %c0_78 = arith.constant 0 : index
    %c35_79 = arith.constant 35 : index
    %68 = vector.load %arg10[%c0_78, %c35_79] : memref<8x1280xbf16, #tpu.memory_space<vmem>>, vector<8x1152xbf16>
    tpu.vector_store %arg10[%c0_78, %c35_79], %67 {strides = array<i32>} : memref<8x1280xbf16, #tpu.memory_space<vmem>>, vector<8x1152xbf16>,
    %c0_80 = arith.constant 0 : index
    %c0_81 = arith.constant 0 : index
    %69 = vector.load %arg10[%c0_80, %c0_81] : memref<8x1280xbf16, #tpu.memory_space<vmem>>, vector<8x1152xbf16>
    %c0_82 = arith.constant 0 : index
    %c0_83 = arith.constant 0 : index
    %70 = vector.load %arg11[%c0_82, %c0_83] : memref<72x1152xbf16, #tpu.memory_space<vmem>>, vector<8x1152xbf16>
    tpu.vector_store %arg11[%c0_82, %c0_83], %69 {strides = array<i32>} : memref<72x1152xbf16, #tpu.memory_space<vmem>>, vector<8x1152xbf16>,
    %c0_84 = arith.constant 0 : index
    %c1_85 = arith.constant 1 : index
    %71 = vector.load %arg10[%c0_84, %c1_85] : memref<8x1280xbf16, #tpu.memory_space<vmem>>, vector<8x1152xbf16>
    %c8_86 = arith.constant 8 : index
    %c0_87 = arith.constant 0 : index
    %72 = vector.load %arg11[%c8_86, %c0_87] : memref<72x1152xbf16, #tpu.memory_space<vmem>>, vector<8x1152xbf16>
    tpu.vector_store %arg11[%c8_86, %c0_87], %71 {strides = array<i32>} : memref<72x1152xbf16, #tpu.memory_space<vmem>>, vector<8x1152xbf16>,
    %c0_88 = arith.constant 0 : index
    %c2_89 = arith.constant 2 : index
    %73 = vector.load %arg10[%c0_88, %c2_89] : memref<8x1280xbf16, #tpu.memory_space<vmem>>, vector<8x1152xbf16>
    %c16_90 = arith.constant 16 : index
    %c0_91 = arith.constant 0 : index
    %74 = vector.load %arg11[%c16_90, %c0_91] : memref<72x1152xbf16, #tpu.memory_space<vmem>>, vector<8x1152xbf16>
    tpu.vector_store %arg11[%c16_90, %c0_91], %73 {strides = array<i32>} : memref<72x1152xbf16, #tpu.memory_space<vmem>>, vector<8x1152xbf16>,
    %c0_92 = arith.constant 0 : index
    %c34_93 = arith.constant 34 : index
    %75 = vector.load %arg10[%c0_92, %c34_93] : memref<8x1280xbf16, #tpu.memory_space<vmem>>, vector<8x1152xbf16>
    %c24_94 = arith.constant 24 : index
    %c0_95 = arith.constant 0 : index
    %76 = vector.load %arg11[%c24_94, %c0_95] : memref<72x1152xbf16, #tpu.memory_space<vmem>>, vector<8x1152xbf16>
    tpu.vector_store %arg11[%c24_94, %c0_95], %75 {strides = array<i32>} : memref<72x1152xbf16, #tpu.memory_space<vmem>>, vector<8x1152xbf16>,
    %c0_96 = arith.constant 0 : index
    %c35_97 = arith.constant 35 : index
    %77 = vector.load %arg10[%c0_96, %c35_97] : memref<8x1280xbf16, #tpu.memory_space<vmem>>, vector<8x1152xbf16>
    %c32_98 = arith.constant 32 : index
    %c0_99 = arith.constant 0 : index
    %78 = vector.load %arg11[%c32_98, %c0_99] : memref<72x1152xbf16, #tpu.memory_space<vmem>>, vector<8x1152xbf16>
    tpu.vector_store %arg11[%c32_98, %c0_99], %77 {strides = array<i32>} : memref<72x1152xbf16, #tpu.memory_space<vmem>>, vector<8x1152xbf16>,
    %c0_100 = arith.constant 0 : index
    %c36_101 = arith.constant 36 : index
    %79 = vector.load %arg10[%c0_100, %c36_101] : memref<8x1280xbf16, #tpu.memory_space<vmem>>, vector<8x1152xbf16>
    %c40_102 = arith.constant 40 : index
    %c0_103 = arith.constant 0 : index
    %80 = vector.load %arg11[%c40_102, %c0_103] : memref<72x1152xbf16, #tpu.memory_space<vmem>>, vector<8x1152xbf16>
    tpu.vector_store %arg11[%c40_102, %c0_103], %79 {strides = array<i32>} : memref<72x1152xbf16, #tpu.memory_space<vmem>>, vector<8x1152xbf16>,
    %c0_104 = arith.constant 0 : index
    %c68_105 = arith.constant 68 : index
    %81 = vector.load %arg10[%c0_104, %c68_105] : memref<8x1280xbf16, #tpu.memory_space<vmem>>, vector<8x1152xbf16>
    %c48_106 = arith.constant 48 : index
    %c0_107 = arith.constant 0 : index
    %82 = vector.load %arg11[%c48_106, %c0_107] : memref<72x1152xbf16, #tpu.memory_space<vmem>>, vector<8x1152xbf16>
    tpu.vector_store %arg11[%c48_106, %c0_107], %81 {strides = array<i32>} : memref<72x1152xbf16, #tpu.memory_space<vmem>>, vector<8x1152xbf16>,
    %c0_108 = arith.constant 0 : index
    %c69_109 = arith.constant 69 : index
    %83 = vector.load %arg10[%c0_108, %c69_109] : memref<8x1280xbf16, #tpu.memory_space<vmem>>, vector<8x1152xbf16>
    %c56_110 = arith.constant 56 : index
    %c0_111 = arith.constant 0 : index
    %84 = vector.load %arg11[%c56_110, %c0_111] : memref<72x1152xbf16, #tpu.memory_space<vmem>>, vector<8x1152xbf16>
    tpu.vector_store %arg11[%c56_110, %c0_111], %83 {strides = array<i32>} : memref<72x1152xbf16, #tpu.memory_space<vmem>>, vector<8x1152xbf16>,
    %c0_112 = arith.constant 0 : index
    %c70_113 = arith.constant 70 : index
    %85 = vector.load %arg10[%c0_112, %c70_113] : memref<8x1280xbf16, #tpu.memory_space<vmem>>, vector<8x1152xbf16>
    %c64_114 = arith.constant 64 : index
    %c0_115 = arith.constant 0 : index
    %86 = vector.load %arg11[%c64_114, %c0_115] : memref<72x1152xbf16, #tpu.memory_space<vmem>>, vector<8x1152xbf16>
    tpu.vector_store %arg11[%c64_114, %c0_115], %85 {strides = array<i32>} : memref<72x1152xbf16, #tpu.memory_space<vmem>>, vector<8x1152xbf16>,
    %c0_116 = arith.constant 0 : index
    %c0_117 = arith.constant 0 : index
    %87 = vector.load %arg6[%c0_116, %c0_117] : memref<8x72xbf16, #tpu.memory_space<vmem>>, vector<8x72xbf16>
    %c0_118 = arith.constant 0 : index
    %c0_119 = arith.constant 0 : index
    %88 = vector.load %arg11[%c0_118, %c0_119] : memref<72x1152xbf16, #tpu.memory_space<vmem>>, vector<72x1152xbf16>
    %cst_120 = arith.constant dense<0.000000e+00> : vector<8x1152xf32>
    %89 = tpu.matmul %87, %88, %cst_120 {dimension_numbers = #tpu.dot_dimension_numbers<[1], [0], [0], [1], [0, 0, 1, 1], [], []>} : vector<8x72xbf16>, vector<72x1152xbf16>, vector<8x1152xf32> -> vector<8x1152xf32>
    %c0_121 = arith.constant 0 : index
    %c0_122 = arith.constant 0 : index
    %90 = vector.load %arg7[%c0_121, %c0_122] : memref<8x1xf32, #tpu.memory_space<vmem>>, vector<8x1xf32>
    %91 = vector.broadcast %90 : vector<8x1xf32> to vector<8x1152xf32>
    %92 = arith.addf %89, %91 : vector<8x1152xf32>
    %cst_123 = arith.constant 0.000000e+00 : f32
    %93 = vector.broadcast %cst_123 : f32 to vector<8x1152xf32>
    %94 = arith.maximumf %92, %93 : vector<8x1152xf32>
    %c0_124 = arith.constant 0 : index
    %c0_125 = arith.constant 0 : index
    %c0_126 = arith.constant 0 : index
    %95 = vector.load %arg8[%c0_124, %c0_125, %c0_126] : memref<1x8x1152xf32, #tpu.memory_space<vmem>>, vector<1x8x1152xf32>
    %96 = vector.shape_cast %95 : vector<1x8x1152xf32> to vector<8x1152xf32>
    %97 = vector.shape_cast %94 : vector<8x1152xf32> to vector<1x8x1152xf32>
    tpu.vector_store %arg8[%c0_124, %c0_125, %c0_126], %97 {strides = array<i32>} : memref<1x8x1152xf32, #tpu.memory_space<vmem>>, vector<1x8x1152xf32>,
    return
  }
  func.func @transform_0(%arg0: i32) -> (i32, i32) {
    %c0_i32 = arith.constant 0 : i32
    %c0_i32_0 = arith.constant 0 : i32
    %c0_i32_1 = arith.constant 0 : i32
    return %c0_i32, %c0_i32_0 : i32, i32
  }
  func.func @transform_1(%arg0: i32) -> (i32, i32, i32) {
    %c0_i32 = arith.constant 0 : i32
    %c0_i32_0 = arith.constant 0 : i32
    %c0_i32_1 = arith.constant 0 : i32
    return %arg0, %c0_i32, %c0_i32_0 : i32, i32, i32
  }
  func.func @transform_2(%arg0: i32) -> (i32, i32, i32) {
    %c0_i32 = arith.constant 0 : i32
    %c0_i32_0 = arith.constant 0 : i32
    %c0_i32_1 = arith.constant 0 : i32
    return %arg0, %c0_i32, %c0_i32_0 : i32, i32, i32
  }
  func.func @transform_3(%arg0: i32) -> (i32, i32) {
    %c0_i32 = arith.constant 0 : i32
    %c0_i32_0 = arith.constant 0 : i32
    %c0_i32_1 = arith.constant 0 : i32
    return %c0_i32, %c0_i32_0 : i32, i32
  }
  func.func @transform_4(%arg0: i32) -> (i32, i32) {
    %c0_i32 = arith.constant 0 : i32
    %c0_i32_0 = arith.constant 0 : i32
    %c0_i32_1 = arith.constant 0 : i32
    return %c0_i32, %c0_i32_0 : i32, i32
  }
  func.func @transform_5(%arg0: i32) -> (i32, i32) {
    %c0_i32 = arith.constant 0 : i32
    %c0_i32_0 = arith.constant 0 : i32
    %c0_i32_1 = arith.constant 0 : i32
    return %c0_i32, %c0_i32_0 : i32, i32
  }
  func.func @transform_6(%arg0: i32) -> (i32, i32) {
    %c0_i32 = arith.constant 0 : i32
    %c0_i32_0 = arith.constant 0 : i32
    %c0_i32_1 = arith.constant 0 : i32
    return %c0_i32, %c0_i32_0 : i32, i32
  }
  func.func @transform_7(%arg0: i32) -> (i32, i32, i32) {
    %c0_i32 = arith.constant 0 : i32
    %c0_i32_0 = arith.constant 0 : i32
    %c0_i32_1 = arith.constant 0 : i32
    return %arg0, %c0_i32, %c0_i32_0 : i32, i32, i32
  }
}

</mosaic_0001>

<bundles_post_ra>
// kernel: tile.8
= control target key start
LH: loop header
LB: loop body
LE: loop exit
PB: predicated region body
PF: predicated region fallthrough
CT: control target
= control target key end

     0   :  { %s22_s0 = inlined_call_operand.vmem [shape: f32[4], index: 0, kind: input, shape index: {}]   ;;  %s23_s1 = inlined_call_operand.vmem [shape: f32[4,4], index: 1, kind: output, shape index: {}]  }
   0x1   :  { %v4_v0 = vld [vmem:[%s22_s0] ss:$0 sm:$0xff] }
   0x2   :  { %5 = vst [vmem:[%s23_s1] sm:$0xf] %v4_v0 }

// kernel: tile.0
= control target key start
LH: loop header
LB: loop body
LE: loop exit
PB: predicated region body
PF: predicated region fallthrough
CT: control target
= control target key end

     0   :  { %s34_s8 = smov 125   ;;  %s35_s9 = smov 126   ;;  %vm7_vm0 = vcmask 7168   ;;  %s61_s0 = inlined_call_operand.vmem [shape: f32[4,4], index: 0, kind: input, shape index: {}]   ;;  %s62_s1 = inlined_call_operand.vmem [shape: f32[16,1], index: 1, kind: output, shape index: {}]  }
   0x1   :  { %v4_v0 = vld [vmem:[%s61_s0] sm:$0xf]  ;;  %s33_s0 = smov 127  }
   0x2   :  { %5 = vst [vmem:[#allocation0] sm:$0xf] %v4_v0 }
   0x9   :  { %v9_v1 = vld [vmem:[#allocation0] sm:$0xf]  }
   0xa   :  { %v21_v2 = vld [vmem:[#allocation0] sm:$0xf]   ;;  %10 = vrot.lane.b32.xlu0 %v9_v1, %s33_s0 }
   0xb   :  { %22 = vrot.lane.b32.xlu1 %v21_v2, %s34_s8  ;;  %v15_v3 = vld [vmem:[#allocation0] sm:$0xf]  }
   0xc   :  { %v6_v4 = vld [vmem:[#allocation0] sm:$0xf]  }
   0xd   :  { %8 = vst.msk [vmem:[%s62_s1] ss:$4 sm:$0xf] %vm7_vm0, %v6_v4  }
  0x12   :  { %16 = vrot.lane.b32.xlu0 %v15_v3, %s35_s9 }
  0x7c   :  { %v11_v5 = vpop.permute.xlu0 %10  }
  0x7d   :  { %v23_v6 = vpop.permute.xlu1 %22   ;;  %27 = vst.msk [vmem:[%s62_s1 + $0x1] ss:$4 sm:$0xf] %vm7_vm0, %v11_v5  }
  0x7e   :  { %29 = vst.msk [vmem:[%s62_s1 + $0x3] ss:$4 sm:$0xf] %vm7_vm0, %v23_v6  }
  0x84   :  { %v17_v7 = vpop.permute.xlu0 %16  }
  0x85   :  { %28 = vst.msk [vmem:[%s62_s1 + $0x2] ss:$4 sm:$0xf] %vm7_vm0, %v17_v7  }

// kernel: up_forward.2
= control target key start
LH: loop header
LB: loop body
LE: loop exit
PB: predicated region body
PF: predicated region fallthrough
CT: control target
= control target key end

     0   :  { %s476_s12 = smov 0   ;;  %s511_s0 = inlined_call_operand.vmem [shape: bf16[2,4,512], index: 0, kind: input, shape index: {}]   ;;  %s512_s1 = inlined_call_operand.vmem [shape: bf16[16,16], index: 1, kind: input, shape index: {}]   ;;  %s513_s2 = inlined_call_operand.vmem [shape: f32[16,1], index: 2, kind: input, shape index: {}]   ;;  %s514_s3 = inlined_call_operand.vmem [shape: bf16[2,16,384], index: 3, kind: output, shape index: {}]  }
   0x1 LB: > { %s395_s13 = sadd.s32 4294967295, %s450_s12   ;;  %p399_p0 = scmp.ge.s32.totalorder %s450_s12, 1  ;;  %s450_s12 = sphi %s476_s12, %s13_s12  }
   0x2   : > { %p137_p1 = scmp.lt.s32.totalorder %s450_s12, 3 }
   0x4   : > { %p138_p2 = pnand %p399_p0, %p137_p1 }
   0x5   : > { %p161_p3 = scmp.lt.s32.totalorder (!%p138_p2), %s395_s13, 1  ;;  %s452_s18 = smov (!%p138_p2), 127  }
   0x6   : > { %141 = sbr.rel (%p138_p2) target bundleno = 327 (0x147), region = 32  ;;  %s453_s19 = smov (!%p138_p2), 111  }
   0x7   : > { %s454_s20 = smov (!%p138_p2), 110  }
   0xb   : > { %s516_s13 = smov (!%p161_p3, %s395_s13), 1  ;;  %vm197_vm0 = vcmask 1039360   ;;  %vm195_vm1 = vcmask 1043456   ;;  %vm218_vm2 = vcmask 908288   ;;  %v253_v17 = vld [vmem:[%s513_s2] sm:$0xff]  ;;  %v254_v18 = vld [vmem:[%s513_s2 + $0x8] sm:$0xff] }
   0xc   : > { %s424_s14 = sshll.u32 %s516_s13, 3  ;;  %v455_v21 = vmov 0   ;;  %vm240_vm3 = vcmask 900096   ;;  %v425_v37 = vld [vmem:[%s512_s1] sm:$0xff]  ;;  %vm286_vm4 = vcmask 130048   ;;  %s429_s27 = smul.u32 24, %s516_s13 }
   0xd   : > { %s165_s17 = scalar_lea.vmem %s511_s0, %s424_s14  ;;  %442 = vset.pattern.permute.xlu0 %v455_v21  ;;  %443 = vset.pattern.permute.xlu1 %v455_v21 }
   0xe   : > { %v172_v0 = vld [vmem:[%s165_s17] sm:$0x3f]  ;;  %s170_s30 = scalar_lea.vmem %s514_s3, %s429_s27 }
   0xf   : > { %174 = vst [vmem:[#allocation1] ss:$2 sm:$0xff] %v172_v0  ;;  %v181_v1 = vld [vmem:[%s165_s17] sm:$0xff] }
  0x16   : > { %v175_v2 = vld.sshfl [vmem:[#allocation1] sm:$0xff pattern:$0x75643120]  ;;  %v176_v3 = vld.sshfl [vmem:[#allocation1 + $0x8] sm:$0xff pattern:$0x75643120] }
  0x17   : > { %180 = vst [vmem:[#allocation2 + $0x8] sm:$0x3] %v176_v3 }
  0x18   : > { %184 = vst [vmem:[#allocation1 + $0x1] ss:$2 sm:$0xff] %v181_v1 }
  0x19   : > { %179 = vst [vmem:[#allocation2] sm:$0x33] %v175_v2 }
  0x1f   : > { %v187_v4 = vld.sshfl [vmem:[#allocation1 + $0x8] sm:$0xff pattern:$0x75643120]  ;;  %v185_v5 = vld.sshfl [vmem:[#allocation1] sm:$0xff pattern:$0x75643120] }
  0x20   : > { %191 = vrot.lane.b32.xlu0 %v187_v4, %s452_s18  ;;  %206 = vst [vmem:[#allocation1] ss:$2 sm:$0xff] %v181_v1 }
  0x27   : > { %v209_v6 = vld.sshfl [vmem:[#allocation1 + $0x8] sm:$0xff pattern:$0x75643120]  ;;  %v207_v7 = vld.sshfl [vmem:[#allocation1] sm:$0xff pattern:$0x75643120] }
  0x28   : > { %213 = vrot.lane.b32.xlu0 %v209_v6, %s453_s19  ;;  %228 = vst [vmem:[#allocation1 + $0x1] ss:$2 sm:$0xff] %v181_v1  ;;  %211 = vrot.lane.b32.xlu2 %v207_v7, %s453_s19 }
  0x2f   : > { %v231_v8 = vld.sshfl [vmem:[#allocation1 + $0x8] sm:$0xff pattern:$0x75643120]  ;;  %v229_v9 = vld.sshfl [vmem:[#allocation1] sm:$0xff pattern:$0x75643120] }
  0x30   : > { %235 = vrot.lane.b32.xlu1 %v231_v8, %s454_s20  ;;  %233 = vrot.lane.b32.xlu2 %v229_v9, %s454_s20 }
  0x31   : > { %257 = vperm.xlu0 %442, %v253_v17  }
  0x38   : > { %189 = vrot.lane.b32.xlu1 %v185_v5, %s452_s18 }
  0x40   : > { %262 = vperm.xlu1 %443, %v254_v18  }
  0x82   : > { %v212_v12 = vpop.permute.xlu2 %211 }
  0x83   : > { %v215_v14 = vrot.slane %v212_v12, 4 }
  0x8a   : > { %v234_v23 = vpop.permute.xlu2 %233 }
  0x8b   : > { %v237_v24 = vrot.slane %v234_v23, 4 }
  0x92   : > { %v192_v10 = vpop.permute.xlu0 %191 }
  0x93   : > { %v194_v11 = vrot.slane %v192_v10, 4 }
  0x95   : > { %v199_v13 = vsel %vm197_vm0, %v192_v10, %v194_v11 }
  0x96   : > { %203 = vst [vmem:[#allocation2 + $0x8] sm:$0xc] %v199_v13 }
  0x9a   : > { %v214_v15 = vpop.permute.xlu0 %213 }
  0x9b   : > { %v216_v16 = vrot.slane %v214_v15, 4 }
  0x9d   : > { %v217_v19 = vsel %vm195_vm1, %v215_v14, %v216_v16  ;;  %v220_v20 = vsel %vm218_vm2, %v214_v15, %v216_v16  ;;  %v417_v33 = vld [vmem:[#allocation2 + $0x8] sm:$0xf] }
  0x9e   : > { %v219_v22 = vsel %vm218_vm2, %v212_v12, %v217_v19  ;;  %224 = vst [vmem:[#allocation2 + $0x14] sm:$0x3] %v220_v20 }
  0x9f   : > { %223 = vst [vmem:[#allocation2 + $0xc] sm:$0x33] %v219_v22 }
  0xa2   : > { %v236_v25 = vpop.permute.xlu1 %235 }
  0xa3   : > { %v238_v26 = vrot.slane %v236_v25, 4  ;;  %v258_v44 = vpop.permute.xlu0 %257 }
  0xa5   : > { %v242_v27 = vsel %vm240_vm3, %v236_v25, %v238_v26  ;;  %v239_v28 = vsel %vm195_vm1, %v237_v24, %v238_v26 }
  0xa6   : > { %246 = vst [vmem:[#allocation2 + $0x14] sm:$0xc] %v242_v27  ;;  %v241_v29 = vsel %vm240_vm3, %v234_v23, %v239_v28 }
  0xa7   : > { %245 = vst [vmem:[#allocation2 + $0xc] sm:$0xcc] %v241_v29 }
  0xaa   : > { %v190_v30 = vpop.permute.xlu1 %189 }
  0xab   : > { %v193_v31 = vrot.slane %v190_v30, 4 }
  0xad   : > { %v196_v32 = vsel %vm195_vm1, %v193_v31, %v194_v11  ;;  %v428_v34 = vld [vmem:[#allocation2 + $0x10] sm:$0xf0] }
  0xae   : > { %v198_v35 = vsel %vm197_vm0, %v190_v30, %v196_v32  ;;  %v418_v36 = vor.u32 %v428_v34, %v417_v33  ;;  %v427_v38 = vld [vmem:[#allocation2 + $0x8] sm:$0xf0]  ;;  %v411_v41 = vld [vmem:[#allocation2 + $0xc] sm:$0xf0] }
  0xaf   : > { %202 = vst [vmem:[#allocation2] sm:$0xcc] %v198_v35 }
  0xb0   : > { %325 = vmatpush.bf16.msra.mxu2 %v418_v36 }
  0xb2   : > { %v263_v53 = vpop.permute.xlu1 %262 }
  0xb3   : > { %421 = vmatmul.msk.bf16.vlgmr.msra.gmra.mxu2 %vm286_vm4, %v425_v37 }
  0xb6   : > { %v409_v39 = vld [vmem:[#allocation2] sm:$0xf]  ;;  %v426_v40 = vld [vmem:[#allocation2 + $0x4] sm:$0xf] }
  0xb7   : > { %v410_v42 = vor.u32 %v427_v38, %v409_v39  ;;  %v414_v43 = vor.u32 %v426_v40, %v411_v41 }
  0xb9   : > { %297 = vmatpush.bf16.msra.mxu0 %v410_v42  ;;  %311 = vmatpush.bf16.msra.mxu1 %v414_v43 }
  0xbc   : > { %419 = vmatmul.msk.bf16.vlgmr.msra.gmra.mxu0 %vm286_vm4, %v425_v37  ;;  %420 = vmatmul.msk.bf16.vlgmr.msra.gmra.mxu1 %vm286_vm4, %v425_v37 }
 0x136   : > { %v327_v45 = vpop.f32.mrf.mxu2 }
 0x137   : > { %v328_v46 = vadd.f32 %v327_v45, %v258_v44 }
 0x139   : > { %v333_v47 = vpack.c.bf16 %v328_v46, %v328_v46  ;;  %v299_v48 = vpop.f32.mrf.mxu0  ;;  %v313_v49 = vpop.f32.mrf.mxu1 }
 0x13a   : > { %v300_v50 = vadd.f32 %v299_v48, %v258_v44  ;;  %v314_v51 = vadd.f32 %v313_v49, %v258_v44 }
 0x13b   : > { %337 = vst [vmem:[%s170_s30 + $0x8] sm:$0xf] %v333_v47 }
 0x13c   : > { %v332_v52 = vpack.c.bf16 %v314_v51, %v300_v50 }
 0x13e   : > { %336 = vst [vmem:[%s170_s30] sm:$0xff] %v332_v52  ;;  %v329_v54 = vpop.f32.mrf.mxu2 }
 0x13f   : > { %v330_v55 = vadd.f32 %v329_v54, %v263_v53 }
 0x141   : > { %v335_v56 = vpack.c.bf16 %v330_v55, %v330_v55  ;;  %v301_v57 = vpop.f32.mrf.mxu0  ;;  %v315_v58 = vpop.f32.mrf.mxu1 }
 0x142   : > { %v302_v59 = vadd.f32 %v301_v57, %v263_v53  ;;  %v316_v60 = vadd.f32 %v315_v58, %v263_v53 }
 0x143   : > { %339 = vst [vmem:[%s170_s30 + $0x14] sm:$0xf] %v335_v56 }
 0x144   : > { %v334_v61 = vpack.c.bf16 %v316_v60, %v302_v59 }
 0x146   : > { %338 = vst [vmem:[%s170_s30 + $0xc] sm:$0xff] %v334_v61 }
 0x147 PF: > { %s13_s12 = sadd.s32 1, %s450_s12  }
 0x148   : > { %p10_p4 = scmp.ge.s32.totalorder %s13_s12, 4  }
 0x14a   :  { %12 = sbr.rel (!%p10_p4) target bundleno = 1 (0x1), region = 64 }

// kernel: up_forward.3
= control target key start
LH: loop header
LB: loop body
LE: loop exit
PB: predicated region body
PF: predicated region fallthrough
CT: control target
= control target key end

     0   :  { %s3075_s24 = smov 0   ;;  %s3997_s0 = inlined_call_operand.vmem [shape: f32[1,1152], index: 0, kind: input, shape index: {}]   ;;  %s3998_s1 = inlined_call_operand.vmem [shape: bf16[2,4,1280], index: 1, kind: input, shape index: {}]   ;;  %s3999_s2 = inlined_call_operand.vmem [shape: bf16[2,4,1280], index: 2, kind: input, shape index: {}]   ;;  %s4000_s3 = inlined_call_operand.vmem [shape: bf16[8,72], index: 3, kind: input, shape index: {}]   ;;  %s4001_s4 = inlined_call_operand.vmem [shape: f32[8,1], index: 4, kind: input, shape index: {}]   ;;  %s4002_s5 = inlined_call_operand.vmem [shape: bf16[8,72], index: 5, kind: input, shape index: {}]   ;;  %s4003_s6 = inlined_call_operand.vmem [shape: f32[8,1], index: 6, kind: input, shape index: {}]   ;;  %s4004_s7 = inlined_call_operand.vmem [shape: f32[2,8,1152], index: 7, kind: output, shape index: {}]  }
   0x1 LB: > { %s2606_s25 = sadd.s32 4294967295, %s3023_s24   ;;  %p2610_p0 = scmp.ge.s32.totalorder %s3023_s24, 1  ;;  %s3023_s24 = sphi %s3075_s24, %s17_s24  }
   0x2   : > { %p247_p1 = scmp.lt.s32.totalorder %s3023_s24, 3 }
   0x4   : > { %p248_p2 = pnand %p2610_p0, %p247_p1 }
   0x5   : > { %p284_p3 = scmp.lt.s32.totalorder (!%p248_p2), %s2606_s25, 1  ;;  %s3025_s30 = smov (!%p248_p2), 127  }
   0x6   : > { %251 = sbr.rel (%p248_p2) target bundleno = 985 (0x3d9), region = 48  ;;  %s3026_s8 = smov (!%p248_p2), 126  }
   0x7   : > { %s3027_s9 = smov (!%p248_p2), 94   ;;  %s3028_s10 = smov (!%p248_p2), 93  }
   0x8   : > { %s3029_s11 = smov (!%p248_p2), 92   ;;  %s3030_s12 = smov (!%p248_p2), 60  }
   0x9   : > { %s3031_s16 = smov (!%p248_p2), 59   ;;  %s3032_s17 = smov (!%p248_p2), 58  }
   0xb   : > { %s4006_s25 = smov (!%p284_p3, %s2606_s25), 1  ;;  %vm363_vm0 = vcmask 1043456   ;;  %vm365_vm1 = vcmask 1039360   ;;  %vm421_vm2 = vcmask 1031168   ;;  %vm478_vm3 = vcmask 769024  }
   0xc   : > { %s2994_s26 = smul.u32 20, %s4006_s25  ;;  %vm534_vm4 = vcmask 760832   ;;  %vm591_vm5 = vcmask 752640   ;;  %vm647_vm6 = vcmask 490496   ;;  %vm704_vm7 = vcmask 482304  }
   0xd   : > { %vm760_vm8 = vcmask 474112   ;;  %vm1509_vm9 = vcmask 588800   ;;  %vm1743_vm10 = vcmask 1043736   ;;  %vm1744_vm11 = vcmask 1047556  }
   0xe   : > { %s3091_s29 = scalar_lea.vmem %s3998_s1, %s2994_s26  ;;  %s3173_s15 = scalar_lea.vmem %s3999_s2, %s2994_s26  ;;  %vm1728_vm12 = vcmask 285696   ;;  %vm1745_vm13 = vmor %vm1744_vm11, %vm1743_vm10  ;;  %vm1750_vm14 = vcmask 285700  }
   0xf   : > { %v3094_v0 = vld [vmem:[%s3091_s29 + $0x8] sm:$0xff]  ;;  %v3097_v1 = vld [vmem:[%s3091_s29] sm:$0xff]  ;;  %v302_v2 = vld [vmem:[%s3091_s29 + $0x10] sm:$0x3]  ;;  %s3034_s26 = smov 35  }
  0x10   : > { %307 = vst [vmem:[#allocation1 + $0x10] ss:$2 sm:$0xff] %v3094_v0  ;;  %v328_v7 = vld [vmem:[%s3091_s29 + $0x10] sm:$0xf]  ;;  %v3181_v50 = vld [vmem:[%s3173_s15 + $0x8] sm:$0xff]  ;;  %v3189_v54 = vld [vmem:[%s3173_s15] sm:$0xff] }
  0x11   : > { %304 = vst [vmem:[#allocation1] ss:$2 sm:$0xff] %v3097_v1  ;;  %v386_v13 = vld [vmem:[%s3091_s29 + $0x10] sm:$0xf]  ;;  %vm1751_vm15 = vmor %vm1750_vm14, %vm363_vm0 }
  0x12   : > { %310 = vst [vmem:[#allocation1 + $0x20] ss:$2 sm:$0xff] %v302_v2  ;;  %v442_v19 = vld [vmem:[%s3091_s29 + $0x10] sm:$0xf] }
  0x13   : > { %v499_v25 = vld [vmem:[%s3091_s29 + $0x10] sm:$0xf] }
  0x14   : > { %v555_v31 = vld [vmem:[%s3091_s29 + $0x10] sm:$0xf] }
  0x15   : > { %v612_v37 = vld [vmem:[%s3091_s29 + $0x10] sm:$0xf] }
  0x16   : > { %v668_v43 = vld [vmem:[%s3091_s29 + $0x10] sm:$0xf] }
  0x17   : > { %v313_v3 = vld.sshfl [vmem:[#allocation1 + $0x10] sm:$0xff pattern:$0x75643120]  ;;  %v314_v4 = vld.sshfl [vmem:[#allocation1 + $0x18] sm:$0xff pattern:$0x75643120] }
  0x18   : > { %334 = vst [vmem:[#allocation1 + $0x11] ss:$2 sm:$0xff] %v3094_v0  ;;  %v311_v5 = vld.sshfl [vmem:[#allocation1] sm:$0xff pattern:$0x75643120] }
  0x19   : > { %323 = vst [vmem:[#allocation2 + $0x10] sm:$0x33] %v313_v3  ;;  %v312_v6 = vld.sshfl [vmem:[#allocation1 + $0x8] sm:$0xff pattern:$0x75643120] }
  0x1a   : > { %324 = vst [vmem:[#allocation2 + $0x18] sm:$0x33] %v314_v4  ;;  %v315_v8 = vld.sshfl [vmem:[#allocation1 + $0x20] sm:$0xff pattern:$0x75643120] }
  0x1b   : > { %331 = vst [vmem:[#allocation1 + $0x1] ss:$2 sm:$0xff] %v3097_v1  ;;  %v725_v49 = vld [vmem:[%s3091_s29 + $0x10] sm:$0xf] }
  0x1c   : > { %321 = vst [vmem:[#allocation2] sm:$0x33] %v311_v5  ;;  %v781_v57 = vld [vmem:[%s3173_s15 + $0x10] sm:$0x3] }
  0x1d   : > { %322 = vst [vmem:[#allocation2 + $0x8] sm:$0x33] %v312_v6  ;;  %v808_v61 = vld [vmem:[%s3173_s15 + $0x10] sm:$0xf] }
  0x1e   : > { %337 = vst [vmem:[#allocation1 + $0x21] ss:$2 sm:$0xff] %v328_v7  ;;  %v863_v3 = vld [vmem:[%s3173_s15 + $0x10] sm:$0xf] }
  0x1f   : > { %v342_v9 = vld.sshfl [vmem:[#allocation1 + $0x10] sm:$0xff pattern:$0x75643120]  ;;  %v3105_v10 = vld.sshfl [vmem:[#allocation1 + $0x18] sm:$0xff pattern:$0x75643120] }
  0x20   : > { %352 = vrot.lane.b32.xlu0 %v342_v9, %s3025_s30  ;;  %391 = vst [vmem:[#allocation1 + $0x10] ss:$2 sm:$0xff] %v3094_v0  ;;  %v919_v9 = vld [vmem:[%s3173_s15 + $0x10] sm:$0xf] }
  0x21   : > { %325 = vst [vmem:[#allocation2 + $0x20] sm:$0x3] %v315_v8 }
  0x22   : > { %v338_v11 = vld.sshfl [vmem:[#allocation1] sm:$0xff pattern:$0x75643120]  ;;  %v340_v12 = vld.sshfl [vmem:[#allocation1 + $0x8] sm:$0xff pattern:$0x75643120] }
  0x23   : > { %348 = vrot.lane.b32.xlu1 %v338_v11, %s3025_s30  ;;  %350 = vrot.lane.b32.xlu2 %v340_v12, %s3025_s30  ;;  %388 = vst [vmem:[#allocation1] ss:$2 sm:$0xff] %v3097_v1 }
  0x25   : > { %v3113_v14 = vld.sshfl [vmem:[#allocation1 + $0x20] sm:$0xff pattern:$0x75643120] }
  0x26   : > { %394 = vst [vmem:[#allocation1 + $0x20] ss:$2 sm:$0xff] %v386_v13 }
  0x27   : > { %v399_v15 = vld.sshfl [vmem:[#allocation1 + $0x10] sm:$0xff pattern:$0x75643120]  ;;  %v3115_v16 = vld.sshfl [vmem:[#allocation1 + $0x18] sm:$0xff pattern:$0x75643120] }
  0x28   : > { %409 = vrot.lane.b32.xlu0 %v399_v15, %s3026_s8  ;;  %448 = vst [vmem:[#allocation1 + $0x11] ss:$2 sm:$0xff] %v3094_v0 }
  0x2a   : > { %v395_v17 = vld.sshfl [vmem:[#allocation1] sm:$0xff pattern:$0x75643120]  ;;  %v397_v18 = vld.sshfl [vmem:[#allocation1 + $0x8] sm:$0xff pattern:$0x75643120] }
  0x2b   : > { %405 = vrot.lane.b32.xlu1 %v395_v17, %s3026_s8  ;;  %407 = vrot.lane.b32.xlu2 %v397_v18, %s3026_s8  ;;  %445 = vst [vmem:[#allocation1 + $0x1] ss:$2 sm:$0xff] %v3097_v1  ;;  %v974_v18 = vld [vmem:[%s3173_s15 + $0x10] sm:$0xf] }
  0x2d   : > { %v3123_v20 = vld.sshfl [vmem:[#allocation1 + $0x20] sm:$0xff pattern:$0x75643120] }
  0x2e   : > { %451 = vst [vmem:[#allocation1 + $0x21] ss:$2 sm:$0xff] %v442_v19 }
  0x2f   : > { %v456_v21 = vld.sshfl [vmem:[#allocation1 + $0x10] sm:$0xff pattern:$0x75643120]  ;;  %v3125_v22 = vld.sshfl [vmem:[#allocation1 + $0x18] sm:$0xff pattern:$0x75643120] }
  0x30   : > { %466 = vrot.lane.b32.xlu0 %v456_v21, %s3027_s9  ;;  %504 = vst [vmem:[#allocation1 + $0x10] ss:$2 sm:$0xff] %v3094_v0 }
  0x32   : > { %v452_v23 = vld.sshfl [vmem:[#allocation1] sm:$0xff pattern:$0x75643120]  ;;  %v454_v24 = vld.sshfl [vmem:[#allocation1 + $0x8] sm:$0xff pattern:$0x75643120] }
  0x33   : > { %462 = vrot.lane.b32.xlu1 %v452_v23, %s3027_s9  ;;  %464 = vrot.lane.b32.xlu2 %v454_v24, %s3027_s9  ;;  %501 = vst [vmem:[#allocation1] ss:$2 sm:$0xff] %v3097_v1 }
  0x35   : > { %v3133_v26 = vld.sshfl [vmem:[#allocation1 + $0x20] sm:$0xff pattern:$0x75643120] }
  0x36   : > { %507 = vst [vmem:[#allocation1 + $0x20] ss:$2 sm:$0xff] %v499_v25 }
  0x37   : > { %v512_v27 = vld.sshfl [vmem:[#allocation1 + $0x10] sm:$0xff pattern:$0x75643120]  ;;  %v3135_v28 = vld.sshfl [vmem:[#allocation1 + $0x18] sm:$0xff pattern:$0x75643120] }
  0x38   : > { %561 = vst [vmem:[#allocation1 + $0x11] ss:$2 sm:$0xff] %v3094_v0 }
  0x3a   : > { %v510_v29 = vld.sshfl [vmem:[#allocation1 + $0x8] sm:$0xff pattern:$0x75643120]  ;;  %v508_v30 = vld.sshfl [vmem:[#allocation1] sm:$0xff pattern:$0x75643120] }
  0x3b   : > { %520 = vrot.lane.b32.xlu1 %v510_v29, %s3028_s10  ;;  %518 = vrot.lane.b32.xlu0 %v508_v30, %s3028_s10  ;;  %558 = vst [vmem:[#allocation1 + $0x1] ss:$2 sm:$0xff] %v3097_v1  ;;  %v1030_v29 = vld [vmem:[%s3173_s15 + $0x10] sm:$0xf] }
  0x3c   : > { %522 = vrot.lane.b32.xlu2 %v512_v27, %s3028_s10 }
  0x3d   : > { %v3143_v32 = vld.sshfl [vmem:[#allocation1 + $0x20] sm:$0xff pattern:$0x75643120] }
  0x3e   : > { %564 = vst [vmem:[#allocation1 + $0x21] ss:$2 sm:$0xff] %v555_v31 }
  0x3f   : > { %v569_v33 = vld.sshfl [vmem:[#allocation1 + $0x10] sm:$0xff pattern:$0x75643120]  ;;  %v3145_v34 = vld.sshfl [vmem:[#allocation1 + $0x18] sm:$0xff pattern:$0x75643120] }
  0x40   : > { %617 = vst [vmem:[#allocation1 + $0x10] ss:$2 sm:$0xff] %v3094_v0 }
  0x42   : > { %v567_v35 = vld.sshfl [vmem:[#allocation1 + $0x8] sm:$0xff pattern:$0x75643120]  ;;  %v565_v36 = vld.sshfl [vmem:[#allocation1] sm:$0xff pattern:$0x75643120] }
  0x43   : > { %577 = vrot.lane.b32.xlu1 %v567_v35, %s3029_s11  ;;  %575 = vrot.lane.b32.xlu0 %v565_v36, %s3029_s11  ;;  %614 = vst [vmem:[#allocation1] ss:$2 sm:$0xff] %v3097_v1 }
  0x44   : > { %579 = vrot.lane.b32.xlu2 %v569_v33, %s3029_s11 }
  0x45   : > { %v3153_v38 = vld.sshfl [vmem:[#allocation1 + $0x20] sm:$0xff pattern:$0x75643120] }
  0x46   : > { %620 = vst [vmem:[#allocation1 + $0x20] ss:$2 sm:$0xff] %v612_v37 }
  0x47   : > { %v625_v39 = vld.sshfl [vmem:[#allocation1 + $0x10] sm:$0xff pattern:$0x75643120]  ;;  %v3155_v40 = vld.sshfl [vmem:[#allocation1 + $0x18] sm:$0xff pattern:$0x75643120] }
  0x48   : > { %674 = vst [vmem:[#allocation1 + $0x11] ss:$2 sm:$0xff] %v3094_v0 }
  0x4a   : > { %v623_v41 = vld.sshfl [vmem:[#allocation1 + $0x8] sm:$0xff pattern:$0x75643120]  ;;  %v621_v42 = vld.sshfl [vmem:[#allocation1] sm:$0xff pattern:$0x75643120] }
  0x4b   : > { %633 = vrot.lane.b32.xlu1 %v623_v41, %s3030_s12  ;;  %631 = vrot.lane.b32.xlu0 %v621_v42, %s3030_s12  ;;  %671 = vst [vmem:[#allocation1 + $0x1] ss:$2 sm:$0xff] %v3097_v1 }
  0x4c   : > { %635 = vrot.lane.b32.xlu2 %v625_v39, %s3030_s12  ;;  %v1085_v39 = vld [vmem:[%s3173_s15 + $0x10] sm:$0xf] }
  0x4d   : > { %v3163_v44 = vld.sshfl [vmem:[#allocation1 + $0x20] sm:$0xff pattern:$0x75643120] }
  0x4e   : > { %677 = vst [vmem:[#allocation1 + $0x21] ss:$2 sm:$0xff] %v668_v43 }
  0x4f   : > { %v682_v45 = vld.sshfl [vmem:[#allocation1 + $0x10] sm:$0xff pattern:$0x75643120]  ;;  %v3165_v46 = vld.sshfl [vmem:[#allocation1 + $0x18] sm:$0xff pattern:$0x75643120] }
  0x50   : > { %730 = vst [vmem:[#allocation1 + $0x10] ss:$2 sm:$0xff] %v3094_v0 }
  0x52   : > { %v680_v47 = vld.sshfl [vmem:[#allocation1 + $0x8] sm:$0xff pattern:$0x75643120]  ;;  %v678_v48 = vld.sshfl [vmem:[#allocation1] sm:$0xff pattern:$0x75643120] }
  0x53   : > { %690 = vrot.lane.b32.xlu1 %v680_v47, %s3031_s16  ;;  %688 = vrot.lane.b32.xlu0 %v678_v48, %s3031_s16  ;;  %727 = vst [vmem:[#allocation1] ss:$2 sm:$0xff] %v3097_v1 }
  0x54   : > { %692 = vrot.lane.b32.xlu2 %v682_v45, %s3031_s16 }
  0x55   : > { %v3183_v51 = vld.sshfl [vmem:[#allocation1 + $0x20] sm:$0xff pattern:$0x75643120] }
  0x56   : > { %733 = vst [vmem:[#allocation1 + $0x20] ss:$2 sm:$0xff] %v725_v49 }
  0x57   : > { %v738_v52 = vld.sshfl [vmem:[#allocation1 + $0x10] sm:$0xff pattern:$0x75643120]  ;;  %v3185_v53 = vld.sshfl [vmem:[#allocation1 + $0x18] sm:$0xff pattern:$0x75643120] }
  0x58   : > { %787 = vst [vmem:[#allocation1 + $0x11] ss:$2 sm:$0xff] %v3181_v50 }
  0x5a   : > { %v736_v55 = vld.sshfl [vmem:[#allocation1 + $0x8] sm:$0xff pattern:$0x75643120]  ;;  %v734_v56 = vld.sshfl [vmem:[#allocation1] sm:$0xff pattern:$0x75643120] }
  0x5b   : > { %746 = vrot.lane.b32.xlu1 %v736_v55, %s3032_s17  ;;  %744 = vrot.lane.b32.xlu0 %v734_v56, %s3032_s17  ;;  %784 = vst [vmem:[#allocation1 + $0x1] ss:$2 sm:$0xff] %v3189_v54 }
  0x5c   : > { %748 = vrot.lane.b32.xlu2 %v738_v52, %s3032_s17 }
  0x5d   : > { %v3196_v58 = vld.sshfl [vmem:[#allocation1 + $0x20] sm:$0xff pattern:$0x75643120] }
  0x5e   : > { %790 = vst [vmem:[#allocation1 + $0x21] ss:$2 sm:$0xff] %v781_v57  ;;  %v1141_v57 = vld [vmem:[%s3173_s15 + $0x10] sm:$0xf] }
  0x5f   : > { %v793_v59 = vld.sshfl [vmem:[#allocation1 + $0x10] sm:$0xff pattern:$0x75643120]  ;;  %v794_v60 = vld.sshfl [vmem:[#allocation1 + $0x18] sm:$0xff pattern:$0x75643120] }
  0x60   : > { %813 = vst [vmem:[#allocation1 + $0x10] ss:$2 sm:$0xff] %v3181_v50 }
  0x61   : > { %803 = vst [vmem:[#allocation2 + $0xa0] sm:$0xcc] %v793_v59 }
  0x62   : > { %804 = vst [vmem:[#allocation2 + $0xa8] sm:$0xcc] %v794_v60  ;;  %v791_v62 = vld.sshfl [vmem:[#allocation1] sm:$0xff pattern:$0x75643120] }
  0x63   : > { %v792_v63 = vld.sshfl [vmem:[#allocation1 + $0x8] sm:$0xff pattern:$0x75643120]  ;;  %801 = vst [vmem:[#allocation2 + $0x90] sm:$0xcc] %v791_v62 }
  0x64   : > { %810 = vst [vmem:[#allocation1] ss:$2 sm:$0xff] %v3189_v54 }
  0x65   : > { %802 = vst [vmem:[#allocation2 + $0x98] sm:$0xcc] %v792_v63  ;;  %v795_v0 = vld.sshfl [vmem:[#allocation1 + $0x20] sm:$0xff pattern:$0x75643120] }
  0x66   : > { %816 = vst [vmem:[#allocation1 + $0x20] ss:$2 sm:$0xff] %v808_v61 }
  0x67   : > { %v821_v1 = vld.sshfl [vmem:[#allocation1 + $0x10] sm:$0xff pattern:$0x75643120]  ;;  %v3201_v2 = vld.sshfl [vmem:[#allocation1 + $0x18] sm:$0xff pattern:$0x75643120] }
  0x68   : > { %831 = vrot.lane.b32.xlu2 %v821_v1, %s3025_s30  ;;  %869 = vst [vmem:[#allocation1 + $0x11] ss:$2 sm:$0xff] %v3181_v50 }
  0x69   : > { %805 = vst [vmem:[#allocation2 + $0xb0] sm:$0xc] %v795_v0 }
  0x6b   : > { %v819_v4 = vld.sshfl [vmem:[#allocation1 + $0x8] sm:$0xff pattern:$0x75643120]  ;;  %v817_v5 = vld.sshfl [vmem:[#allocation1] sm:$0xff pattern:$0x75643120] }
  0x6c   : > { %829 = vrot.lane.b32.xlu1 %v819_v4, %s3025_s30  ;;  %827 = vrot.lane.b32.xlu0 %v817_v5, %s3025_s30  ;;  %866 = vst [vmem:[#allocation1 + $0x1] ss:$2 sm:$0xff] %v3189_v54 }
  0x6d   : > { %v3209_v6 = vld.sshfl [vmem:[#allocation1 + $0x20] sm:$0xff pattern:$0x75643120] }
  0x6e   : > { %872 = vst [vmem:[#allocation1 + $0x21] ss:$2 sm:$0xff] %v863_v3 }
  0x6f   : > { %v877_v7 = vld.sshfl [vmem:[#allocation1 + $0x10] sm:$0xff pattern:$0x75643120]  ;;  %v3211_v8 = vld.sshfl [vmem:[#allocation1 + $0x18] sm:$0xff pattern:$0x75643120] }
  0x70   : > { %887 = vrot.lane.b32.xlu2 %v877_v7, %s3026_s8  ;;  %924 = vst [vmem:[#allocation1 + $0x10] ss:$2 sm:$0xff] %v3181_v50 }
  0x73   : > { %v875_v11 = vld.sshfl [vmem:[#allocation1 + $0x8] sm:$0xff pattern:$0x75643120]  ;;  %v873_v12 = vld.sshfl [vmem:[#allocation1] sm:$0xff pattern:$0x75643120] }
  0x74   : > { %885 = vrot.lane.b32.xlu1 %v875_v11, %s3026_s8  ;;  %883 = vrot.lane.b32.xlu0 %v873_v12, %s3026_s8  ;;  %921 = vst [vmem:[#allocation1] ss:$2 sm:$0xff] %v3189_v54 }
  0x75   : > { %v3219_v13 = vld.sshfl [vmem:[#allocation1 + $0x20] sm:$0xff pattern:$0x75643120] }
  0x76   : > { %927 = vst [vmem:[#allocation1 + $0x20] ss:$2 sm:$0xff] %v919_v9 }
  0x77   : > { %v932_v15 = vld.sshfl [vmem:[#allocation1 + $0x10] sm:$0xff pattern:$0x75643120]  ;;  %v934_v17 = vld.sshfl [vmem:[#allocation1 + $0x18] sm:$0xff pattern:$0x75643120] }
  0x78   : > { %942 = vrot.lane.b32.xlu2 %v932_v15, %s3027_s9  ;;  %980 = vst [vmem:[#allocation1 + $0x11] ss:$2 sm:$0xff] %v3181_v50  ;;  %v1196_v15 = vld [vmem:[%s3173_s15 + $0x10] sm:$0xf] }
  0x7b   : > { %v930_v19 = vld.sshfl [vmem:[#allocation1 + $0x8] sm:$0xff pattern:$0x75643120]  ;;  %v928_v21 = vld.sshfl [vmem:[#allocation1] sm:$0xff pattern:$0x75643120] }
  0x7c   : > { %940 = vrot.lane.b32.xlu1 %v930_v19, %s3027_s9  ;;  %938 = vrot.lane.b32.xlu0 %v928_v21, %s3027_s9  ;;  %977 = vst [vmem:[#allocation1 + $0x1] ss:$2 sm:$0xff] %v3189_v54 }
  0x7d   : > { %v936_v23 = vld.sshfl [vmem:[#allocation1 + $0x20] sm:$0xff pattern:$0x75643120]  ;;  %v351_v24 = vpop.permute.xlu2 %350 }
  0x7e   : > { %983 = vst [vmem:[#allocation1 + $0x21] ss:$2 sm:$0xff] %v974_v18  ;;  %v359_v49 = vrot.slane %v351_v24, 4 }
  0x7f   : > { %v988_v25 = vld.sshfl [vmem:[#allocation1 + $0x10] sm:$0xff pattern:$0x75643120]  ;;  %v990_v27 = vld.sshfl [vmem:[#allocation1 + $0x18] sm:$0xff pattern:$0x75643120] }
  0x80   : > { %946 = vrot.lane.b32.xlu2 %v936_v23, %s3027_s9  ;;  %1035 = vst [vmem:[#allocation1 + $0x10] ss:$2 sm:$0xff] %v3181_v50 }
  0x83   : > { %v984_v30 = vld.sshfl [vmem:[#allocation1] sm:$0xff pattern:$0x75643120]  ;;  %v986_v31 = vld.sshfl [vmem:[#allocation1 + $0x8] sm:$0xff pattern:$0x75643120] }
  0x84   : > { %944 = vrot.lane.b32.xlu1 %v934_v17, %s3027_s9  ;;  %994 = vrot.lane.b32.xlu0 %v984_v30, %s3028_s10  ;;  %1032 = vst [vmem:[#allocation1] ss:$2 sm:$0xff] %v3189_v54 }
  0x85   : > { %v3233_v33 = vpop.permute.xlu2 %407  ;;  %v992_v35 = vld.sshfl [vmem:[#allocation1 + $0x20] sm:$0xff pattern:$0x75643120] }
  0x86   : > { %1038 = vst [vmem:[#allocation1 + $0x20] ss:$2 sm:$0xff] %v1030_v29  ;;  %v416_v11 = vrot.slane %v3233_v33, 4 }
  0x87   : > { %v1043_v36 = vld.sshfl [vmem:[#allocation1 + $0x10] sm:$0xff pattern:$0x75643120]  ;;  %v1045_v37 = vld.sshfl [vmem:[#allocation1 + $0x18] sm:$0xff pattern:$0x75643120] }
  0x88   : > { %998 = vrot.lane.b32.xlu2 %v988_v25, %s3028_s10  ;;  %1091 = vst [vmem:[#allocation1 + $0x11] ss:$2 sm:$0xff] %v3181_v50 }
  0x8b   : > { %v1039_v41 = vld.sshfl [vmem:[#allocation1] sm:$0xff pattern:$0x75643120]  ;;  %v1041_v42 = vld.sshfl [vmem:[#allocation1 + $0x8] sm:$0xff pattern:$0x75643120] }
  0x8c   : > { %996 = vrot.lane.b32.xlu1 %v986_v31, %s3028_s10  ;;  %1000 = vrot.lane.b32.xlu0 %v990_v27, %s3028_s10  ;;  %1088 = vst [vmem:[#allocation1 + $0x1] ss:$2 sm:$0xff] %v3189_v54 }
  0x8d   : > { %v3241_v43 = vpop.permute.xlu2 %464  ;;  %v1047_v45 = vld.sshfl [vmem:[#allocation1 + $0x20] sm:$0xff pattern:$0x75643120] }
  0x8e   : > { %1094 = vst [vmem:[#allocation1 + $0x21] ss:$2 sm:$0xff] %v1085_v39 }
  0x8f   : > { %v1099_v47 = vld.sshfl [vmem:[#allocation1 + $0x10] sm:$0xff pattern:$0x75643120]  ;;  %v3243_v48 = vld.sshfl [vmem:[#allocation1 + $0x18] sm:$0xff pattern:$0x75643120] }
  0x90   : > { %1053 = vrot.lane.b32.xlu2 %v1043_v36, %s3029_s11  ;;  %1146 = vst [vmem:[#allocation1 + $0x10] ss:$2 sm:$0xff] %v3181_v50 }
  0x92   : > { %v3247_v52 = vpop.permute.xlu0 %352 }
  0x93   : > { %v360_v55 = vrot.slane %v3247_v52, 4  ;;  %v1097_v56 = vld.sshfl [vmem:[#allocation1 + $0x8] sm:$0xff pattern:$0x75643120] }
  0x94   : > { %1002 = vrot.lane.b32.xlu1 %v992_v35, %s3028_s10  ;;  %1049 = vrot.lane.b32.xlu0 %v1039_v41, %s3029_s11  ;;  %v1095_v59 = vld.sshfl [vmem:[#allocation1] sm:$0xff pattern:$0x75643120] }
  0x95   : > { %v367_v60 = vsel %vm363_vm0, %v359_v49, %v360_v55  ;;  %v349_v61 = vpop.permute.xlu1 %348  ;;  %v1103_v62 = vld.sshfl [vmem:[#allocation1 + $0x20] sm:$0xff pattern:$0x75643120]  ;;  %1143 = vst [vmem:[#allocation1] ss:$2 sm:$0xff] %v3189_v54 }
  0x96   : > { %v368_v63 = vsel %vm365_vm1, %v351_v24, %v367_v60  ;;  %v358_v0 = vrot.slane %v349_v61, 4  ;;  %v3258_v1 = vpop.permute.xlu2 %522  ;;  %1149 = vst [vmem:[#allocation1 + $0x20] ss:$2 sm:$0xff] %v1141_v57 }
  0x97   : > { %380 = vst [vmem:[#allocation2 + $0x8] sm:$0xcc] %v368_v63  ;;  %v1154_v3 = vld.sshfl [vmem:[#allocation1 + $0x10] sm:$0xff pattern:$0x75643120] }
  0x98   : > { %v364_v4 = vsel %vm363_vm0, %v358_v0, %v359_v49  ;;  %1055 = vrot.lane.b32.xlu2 %v1045_v37, %s3029_s11  ;;  %v3262_v5 = vld.sshfl [vmem:[#allocation1 + $0x18] sm:$0xff pattern:$0x75643120] }
  0x99   : > { %v366_v7 = vsel %vm365_vm1, %v349_v61, %v364_v4  ;;  %1202 = vst [vmem:[#allocation1 + $0x11] ss:$2 sm:$0xff] %v3181_v50 }
  0x9a   : > { %379 = vst [vmem:[#allocation2] sm:$0xcc] %v366_v7  ;;  %v3266_v9 = vpop.permute.xlu0 %409 }
  0x9b   : > { %v417_v12 = vrot.slane %v3266_v9, 4 }
  0x9c   : > { %1051 = vrot.lane.b32.xlu1 %v1041_v42, %s3029_s11  ;;  %1057 = vrot.lane.b32.xlu0 %v1047_v45, %s3029_s11  ;;  %v1150_v17 = vld.sshfl [vmem:[#allocation1] sm:$0xff pattern:$0x75643120]  ;;  %v1152_v18 = vld.sshfl [vmem:[#allocation1 + $0x8] sm:$0xff pattern:$0x75643120] }
  0x9d   : > { %v423_v19 = vsel %vm363_vm0, %v416_v11, %v417_v12  ;;  %v406_v50 = vpop.permute.xlu1 %405  ;;  %1199 = vst [vmem:[#allocation1 + $0x1] ss:$2 sm:$0xff] %v3189_v54  ;;  %v1158_v21 = vld.sshfl [vmem:[#allocation1 + $0x20] sm:$0xff pattern:$0x75643120]  ;;  %v473_v54 = vrot.slane %v3241_v43, 4 }
  0x9e   : > { %v424_v23 = vsel %vm421_vm2, %v3233_v33, %v423_v19  ;;  %v415_v24 = vrot.slane %v406_v50, 4  ;;  %v3279_v25 = vpop.permute.xlu2 %579  ;;  %1205 = vst [vmem:[#allocation1 + $0x21] ss:$2 sm:$0xff] %v1196_v15  ;;  %v530_v45 = vrot.slane %v3258_v1, 4 }
  0x9f   : > { %436 = vst [vmem:[#allocation2 + $0x2c] sm:$0x33] %v424_v23  ;;  %v587_v63 = vrot.slane %v3279_v25, 4 }
  0xa0   : > { %v420_v27 = vsel %vm363_vm0, %v415_v24, %v416_v11  ;;  %1109 = vrot.lane.b32.xlu2 %v1099_v47, %s3030_s12  ;;  %v1210_v7 = vld.sshfl [vmem:[#allocation1 + $0x10] sm:$0xff pattern:$0x75643120] }
  0xa1   : > { %v422_v29 = vsel %vm421_vm2, %v406_v50, %v420_v27 }
  0xa2   : > { %435 = vst [vmem:[#allocation2 + $0x24] sm:$0x33] %v422_v29  ;;  %v3284_v30 = vpop.permute.xlu0 %466  ;;  %v1212_v29 = vld.sshfl [vmem:[#allocation1 + $0x18] sm:$0xff pattern:$0x75643120] }
  0xa3   : > { %v474_v31 = vrot.slane %v3284_v30, 4 }
  0xa4   : > { %1107 = vrot.lane.b32.xlu1 %v1097_v56, %s3030_s12  ;;  %1105 = vrot.lane.b32.xlu0 %v1095_v59, %s3030_s12  ;;  %v1208_v49 = vld.sshfl [vmem:[#allocation1 + $0x8] sm:$0xff pattern:$0x75643120] }
  0xa5   : > { %v480_v33 = vsel %vm363_vm0, %v473_v54, %v474_v31  ;;  %v463_v35 = vpop.permute.xlu1 %462 }
  0xa6   : > { %v481_v36 = vsel %vm478_vm3, %v3241_v43, %v480_v33  ;;  %v472_v37 = vrot.slane %v463_v35, 4  ;;  %v3295_v39 = vpop.permute.xlu2 %635 }
  0xa7   : > { %493 = vst [vmem:[#allocation2 + $0x2c] sm:$0xcc] %v481_v36  ;;  %v643_v23 = vrot.slane %v3295_v39, 4 }
  0xa8   : > { %v477_v41 = vsel %vm363_vm0, %v472_v37, %v473_v54  ;;  %1113 = vrot.lane.b32.xlu2 %v1103_v62, %s3030_s12 }
  0xa9   : > { %v479_v42 = vsel %vm478_vm3, %v463_v35, %v477_v41  ;;  %v1214_v41 = vld.sshfl [vmem:[#allocation1 + $0x20] sm:$0xff pattern:$0x75643120] }
  0xaa   : > { %492 = vst [vmem:[#allocation2 + $0x24] sm:$0xcc] %v479_v42 }
  0xac   : > { %1111 = vrot.lane.b32.xlu1 %v3243_v48, %s3030_s12  ;;  %1160 = vrot.lane.b32.xlu0 %v1150_v17, %s3031_s16 }
  0xad   : > { %v521_v47 = vpop.permute.xlu1 %520  ;;  %v519_v43 = vpop.permute.xlu0 %518 }
  0xae   : > { %v529_v56 = vrot.slane %v521_v47, 4  ;;  %v528_v57 = vrot.slane %v519_v43, 4  ;;  %v3304_v59 = vpop.permute.xlu2 %692 }
  0xb0   : > { %v536_v60 = vsel %vm363_vm0, %v529_v56, %v530_v45  ;;  %v533_v61 = vsel %vm363_vm0, %v528_v57, %v529_v56  ;;  %1218 = vrot.lane.b32.xlu2 %v1208_v49, %s3032_s17 }
  0xb1   : > { %v537_v48 = vsel %vm534_vm4, %v521_v47, %v536_v60  ;;  %v535_v62 = vsel %vm534_vm4, %v519_v43, %v533_v61  ;;  %v700_v47 = vrot.slane %v3304_v59, 4 }
  0xb2   : > { %549 = vst [vmem:[#allocation2 + $0x50] sm:$0x33] %v537_v48 }
  0xb3   : > { %548 = vst [vmem:[#allocation2 + $0x48] sm:$0x33] %v535_v62 }
  0xb4   : > { %1164 = vrot.lane.b32.xlu1 %v1154_v3, %s3031_s16  ;;  %1162 = vrot.lane.b32.xlu0 %v1152_v18, %s3031_s16 }
  0xb5   : > { %v578_v0 = vpop.permute.xlu1 %577  ;;  %v576_v4 = vpop.permute.xlu0 %575 }
  0xb6   : > { %v586_v11 = vrot.slane %v578_v0, 4  ;;  %v585_v15 = vrot.slane %v576_v4, 4  ;;  %v3321_v50 = vpop.permute.xlu2 %748 }
  0xb8   : > { %v593_v17 = vsel %vm363_vm0, %v586_v11, %v587_v63  ;;  %v590_v19 = vsel %vm363_vm0, %v585_v15, %v586_v11  ;;  %1220 = vrot.lane.b32.xlu2 %v1210_v7, %s3032_s17 }
  0xb9   : > { %v594_v3 = vsel %vm591_vm5, %v578_v0, %v593_v17  ;;  %v592_v18 = vsel %vm591_vm5, %v576_v4, %v590_v19  ;;  %v756_v4 = vrot.slane %v3321_v50, 4 }
  0xba   : > { %606 = vst [vmem:[#allocation2 + $0x50] sm:$0xcc] %v594_v3 }
  0xbb   : > { %605 = vst [vmem:[#allocation2 + $0x48] sm:$0xcc] %v592_v18 }
  0xbc   : > { %1168 = vrot.lane.b32.xlu1 %v1158_v21, %s3031_s16  ;;  %1166 = vrot.lane.b32.xlu0 %v3262_v5, %s3031_s16  ;;  %v1206_v5 = vld.sshfl [vmem:[#allocation1] sm:$0xff pattern:$0x75643120] }
  0xbd   : > { %v634_v24 = vpop.permute.xlu1 %633  ;;  %v632_v27 = vpop.permute.xlu0 %631 }
  0xbe   : > { %v642_v54 = vrot.slane %v634_v24, 4  ;;  %v641_v33 = vrot.slane %v632_v27, 4 }
  0xc0   : > { %v649_v35 = vsel %vm363_vm0, %v642_v54, %v643_v23  ;;  %v646_v36 = vsel %vm363_vm0, %v641_v33, %v642_v54  ;;  %1222 = vrot.lane.b32.xlu2 %v1212_v29, %s3032_s17 }
  0xc1   : > { %v650_v37 = vsel %vm647_vm6, %v634_v24, %v649_v35  ;;  %v648_v21 = vsel %vm647_vm6, %v632_v27, %v646_v36 }
  0xc2   : > { %662 = vst [vmem:[#allocation2 + $0x74] sm:$0x33] %v650_v37  ;;  %v3336_v42 = vpop.permute.xlu2 %831 }
  0xc3   : > { %661 = vst [vmem:[#allocation2 + $0x6c] sm:$0x33] %v648_v21  ;;  %v839_v24 = vrot.slane %v3336_v42, 4 }
  0xc4   : > { %1224 = vrot.lane.b32.xlu0 %v1214_v41, %s3032_s17  ;;  %1216 = vrot.lane.b32.xlu1 %v1206_v5, %s3032_s17 }
  0xc5   : > { %v691_v43 = vpop.permute.xlu1 %690  ;;  %v689_v49 = vpop.permute.xlu0 %688 }
  0xc6   : > { %v699_v56 = vrot.slane %v691_v43, 4  ;;  %v698_v57 = vrot.slane %v689_v49, 4 }
  0xc8   : > { %v706_v60 = vsel %vm363_vm0, %v699_v56, %v700_v47  ;;  %v703_v61 = vsel %vm363_vm0, %v698_v57, %v699_v56  ;;  %833 = vrot.lane.b32.xlu2 %v3201_v2, %s3025_s30 }
  0xc9   : > { %v707_v48 = vsel %vm704_vm7, %v691_v43, %v706_v60  ;;  %v705_v62 = vsel %vm704_vm7, %v689_v49, %v703_v61 }
  0xca   : > { %719 = vst [vmem:[#allocation2 + $0x74] sm:$0xcc] %v707_v48  ;;  %v3349_v0 = vpop.permute.xlu2 %887 }
  0xcb   : > { %718 = vst [vmem:[#allocation2 + $0x6c] sm:$0xcc] %v705_v62 }
  0xcc   : > { %750 = vrot.lane.b32.xlu0 %v3185_v53, %s3032_s17  ;;  %752 = vrot.lane.b32.xlu1 %v3196_v58, %s3032_s17 }
  0xcd   : > { %v747_v7 = vpop.permute.xlu1 %746  ;;  %v745_v11 = vpop.permute.xlu0 %744 }
  0xce   : > { %v755_v2 = vrot.slane %v747_v7, 4  ;;  %v754_v15 = vrot.slane %v745_v11, 4 }
  0xd0   : > { %v762_v17 = vsel %vm363_vm0, %v755_v2, %v756_v4  ;;  %891 = vrot.lane.b32.xlu2 %v3219_v13, %s3026_s8  ;;  %v759_v19 = vsel %vm363_vm0, %v754_v15, %v755_v2 }
  0xd1   : > { %v763_v3 = vsel %vm760_vm8, %v747_v7, %v762_v17  ;;  %v761_v53 = vsel %vm760_vm8, %v745_v11, %v759_v19 }
  0xd2   : > { %775 = vst [vmem:[#allocation2 + $0x98] sm:$0x33] %v763_v3  ;;  %v3364_v58 = vpop.permute.xlu2 %942 }
  0xd3   : > { %774 = vst [vmem:[#allocation2 + $0x90] sm:$0x33] %v761_v53 }
  0xd4   : > { %835 = vrot.lane.b32.xlu0 %v3209_v6, %s3025_s30  ;;  %889 = vrot.lane.b32.xlu1 %v3211_v8, %s3026_s8 }
  0xd8   : > { %581 = vrot.lane.b32.xlu2 %v3145_v34, %s3029_s11 }
  0xda   : > { %v947_v13 = vpop.permute.xlu2 %946 }
  0xdb   : > { %v952_v18 = vrot.slane %v947_v13, 4 }
  0xdc   : > { %524 = vrot.lane.b32.xlu0 %v3135_v28, %s3028_s10  ;;  %526 = vrot.lane.b32.xlu1 %v3143_v32, %s3028_s10 }
  0xdd   : > { %v961_v27 = vsel %vm478_vm3, %v947_v13, %v952_v18 }
  0xde   : > { %971 = vst [vmem:[#allocation2 + $0xf8] sm:$0x3] %v961_v27  ;;  %v830_v6 = vpop.permute.xlu1 %829  ;;  %v828_v29 = vpop.permute.xlu0 %827 }
  0xdf   : > { %v838_v54 = vrot.slane %v830_v6, 4  ;;  %v837_v8 = vrot.slane %v828_v29, 4 }
  0xe0   : > { %639 = vrot.lane.b32.xlu2 %v3163_v44, %s3030_s12  ;;  %v895_v44 = vrot.slane %v3349_v0, 4 }
  0xe1   : > { %v844_v34 = vsel %vm363_vm0, %v838_v54, %v839_v24  ;;  %v842_v28 = vsel %vm363_vm0, %v837_v8, %v838_v54 }
  0xe2   : > { %v845_v32 = vsel %vm365_vm1, %v830_v6, %v844_v34  ;;  %v843_v33 = vsel %vm365_vm1, %v828_v29, %v842_v28  ;;  %v3386_v35 = vpop.permute.xlu2 %998 }
  0xe3   : > { %857 = vst [vmem:[#allocation2 + $0xbc] sm:$0x33] %v845_v32 }
  0xe4   : > { %856 = vst [vmem:[#allocation2 + $0xb4] sm:$0x33] %v843_v33  ;;  %583 = vrot.lane.b32.xlu0 %v3153_v38, %s3029_s11  ;;  %637 = vrot.lane.b32.xlu1 %v3155_v40, %s3030_s12 }
  0xe6   : > { %v886_v36 = vpop.permute.xlu1 %885  ;;  %v884_v37 = vpop.permute.xlu0 %883 }
  0xe7   : > { %v894_v21 = vrot.slane %v886_v36, 4  ;;  %v893_v41 = vrot.slane %v884_v37, 4 }
  0xe8   : > { %354 = vrot.lane.b32.xlu2 %v3105_v10, %s3025_s30  ;;  %v950_v10 = vrot.slane %v3364_v58, 4 }
  0xe9   : > { %v900_v5 = vsel %vm363_vm0, %v894_v21, %v895_v44  ;;  %v898_v43 = vsel %vm363_vm0, %v893_v41, %v894_v21 }
  0xea   : > { %v901_v38 = vsel %vm421_vm2, %v886_v36, %v900_v5  ;;  %v899_v49 = vsel %vm421_vm2, %v884_v37, %v898_v43  ;;  %v3401_v40 = vpop.permute.xlu2 %1053 }
  0xeb   : > { %913 = vst [vmem:[#allocation2 + $0xbc] sm:$0xcc] %v901_v38 }
  0xec   : > { %912 = vst [vmem:[#allocation2 + $0xb4] sm:$0xcc] %v899_v49  ;;  %694 = vrot.lane.b32.xlu0 %v3165_v46, %s3031_s16  ;;  %696 = vrot.lane.b32.xlu1 %v3183_v51, %s3031_s16  ;;  %v1061_v51 = vrot.slane %v3401_v40, 4 }
  0xee   : > { %v941_v56 = vpop.permute.xlu1 %940  ;;  %v939_v57 = vpop.permute.xlu0 %938 }
  0xef   : > { %v949_v60 = vrot.slane %v941_v56, 4  ;;  %v948_v61 = vrot.slane %v939_v57, 4 }
  0xf0   : > { %413 = vrot.lane.b32.xlu2 %v3123_v20, %s3026_s8 }
  0xf1   : > { %v955_v48 = vsel %vm363_vm0, %v949_v60, %v950_v10  ;;  %v953_v62 = vsel %vm363_vm0, %v948_v61, %v949_v60 }
  0xf2   : > { %v956_v7 = vsel %vm478_vm3, %v941_v56, %v955_v48  ;;  %v954_v46 = vsel %vm478_vm3, %v939_v57, %v953_v62  ;;  %v3414_v11 = vpop.permute.xlu2 %1055 }
  0xf3   : > { %968 = vst [vmem:[#allocation2 + $0xe0] sm:$0x33] %v956_v7  ;;  %v1062_v2 = vrot.slane %v3414_v11, 4 }
  0xf4   : > { %967 = vst [vmem:[#allocation2 + $0xd8] sm:$0x33] %v954_v46  ;;  %356 = vrot.lane.b32.xlu0 %v3113_v14, %s3025_s30  ;;  %411 = vrot.lane.b32.xlu1 %v3115_v16, %s3026_s8  ;;  %v1006_v16 = vrot.slane %v3386_v35, 4 }
  0xf5   : > { %v1068_v20 = vsel %vm363_vm0, %v1061_v51, %v1062_v2 }
  0xf6   : > { %v1069_v15 = vsel %vm591_vm5, %v3401_v40, %v1068_v20  ;;  %v945_v17 = vpop.permute.xlu1 %944  ;;  %v995_v19 = vpop.permute.xlu0 %994 }
  0xf7   : > { %1080 = vst [vmem:[#allocation2 + $0x10c] sm:$0x33] %v1069_v15  ;;  %v951_v3 = vrot.slane %v945_v17, 4  ;;  %v1004_v29 = vrot.slane %v995_v19, 4 }
  0xf9   : > { %v957_v53 = vsel %vm363_vm0, %v950_v10, %v951_v3  ;;  %v959_v13 = vsel %vm363_vm0, %v951_v3, %v952_v18 }
  0xfa   : > { %v958_v27 = vsel %vm478_vm3, %v3364_v58, %v957_v53  ;;  %v960_v14 = vsel %vm478_vm3, %v945_v17, %v959_v13  ;;  %v3430_v6 = vpop.permute.xlu2 %1109 }
  0xfb   : > { %969 = vst [vmem:[#allocation2 + $0xe8] sm:$0x33] %v958_v27  ;;  %v1117_v13 = vrot.slane %v3430_v6, 4 }
  0xfc   : > { %970 = vst [vmem:[#allocation2 + $0xf0] sm:$0x33] %v960_v14  ;;  %468 = vrot.lane.b32.xlu0 %v3125_v22, %s3027_s9  ;;  %470 = vrot.lane.b32.xlu1 %v3133_v26, %s3027_s9 }
  0xfe   : > { %v997_v54 = vpop.permute.xlu1 %996  ;;  %v1001_v18 = vpop.permute.xlu0 %1000 }
  0xff   : > { %v1005_v8 = vrot.slane %v997_v54, 4  ;;  %v1007_v34 = vrot.slane %v1001_v18, 4 }
 0x101   : > { %v1009_v58 = vsel %vm363_vm0, %v1004_v29, %v1005_v8  ;;  %v1011_v28 = vsel %vm363_vm0, %v1005_v8, %v1006_v16  ;;  %v1013_v32 = vsel %vm363_vm0, %v1006_v16, %v1007_v34 }
 0x102   : > { %v1010_v33 = vsel %vm534_vm4, %v995_v19, %v1009_v58  ;;  %v1012_v22 = vsel %vm534_vm4, %v997_v54, %v1011_v28  ;;  %v1014_v26 = vsel %vm534_vm4, %v3386_v35, %v1013_v32  ;;  %v1114_v36 = vpop.permute.xlu2 %1113 }
 0x103   : > { %1023 = vst [vmem:[#allocation2 + $0xd8] sm:$0xcc] %v1010_v33  ;;  %v1119_v37 = vrot.slane %v1114_v36, 4 }
 0x104   : > { %1024 = vst [vmem:[#allocation2 + $0xe0] sm:$0xcc] %v1012_v22 }
 0x105   : > { %1025 = vst [vmem:[#allocation2 + $0xe8] sm:$0xcc] %v1014_v26  ;;  %v1128_v21 = vsel %vm647_vm6, %v1114_v36, %v1119_v37 }
 0x106   : > { %1138 = vst [vmem:[#allocation2 + $0x11c] sm:$0xc] %v1128_v21  ;;  %v1003_v41 = vpop.permute.xlu1 %1002  ;;  %v1050_v5 = vpop.permute.xlu0 %1049 }
 0x107   : > { %v1008_v43 = vrot.slane %v1003_v41, 4  ;;  %v1059_v35 = vrot.slane %v1050_v5, 4 }
 0x109   : > { %v1015_v38 = vsel %vm363_vm0, %v1007_v34, %v1008_v43  ;;  %v1017_v49 = vsel %vm534_vm4, %v1003_v41, %v1008_v43 }
 0x10a   : > { %v1016_v40 = vsel %vm534_vm4, %v1001_v18, %v1015_v38  ;;  %1027 = vst [vmem:[#allocation2 + $0xf8] sm:$0xc] %v1017_v49  ;;  %v3448_v10 = vpop.permute.xlu2 %1218 }
 0x10b   : > { %1026 = vst [vmem:[#allocation2 + $0xf0] sm:$0xcc] %v1016_v40  ;;  %v1227_v48 = vrot.slane %v3448_v10, 4 }
 0x10e   : > { %v1052_v56 = vpop.permute.xlu1 %1051  ;;  %v1058_v57 = vpop.permute.xlu0 %1057 }
 0x10f   : > { %v1060_v60 = vrot.slane %v1052_v56, 4  ;;  %v1063_v61 = vrot.slane %v1058_v57, 4 }
 0x111   : > { %v1064_v62 = vsel %vm363_vm0, %v1059_v35, %v1060_v60  ;;  %v1066_v7 = vsel %vm363_vm0, %v1060_v60, %v1061_v51  ;;  %v1070_v46 = vsel %vm363_vm0, %v1062_v2, %v1063_v61  ;;  %v1072_v20 = vsel %vm591_vm5, %v1058_v57, %v1063_v61 }
 0x112   : > { %v1065_v15 = vsel %vm591_vm5, %v1050_v5, %v1064_v62  ;;  %v1067_v17 = vsel %vm591_vm5, %v1052_v56, %v1066_v7  ;;  %v1071_v19 = vsel %vm591_vm5, %v3414_v11, %v1070_v46  ;;  %1082 = vst [vmem:[#allocation2 + $0x11c] sm:$0x3] %v1072_v20  ;;  %v1221_v3 = vpop.permute.xlu2 %1220 }
 0x113   : > { %1078 = vst [vmem:[#allocation2 + $0xfc] sm:$0x33] %v1065_v15  ;;  %v1228_v53 = vrot.slane %v1221_v3, 4 }
 0x114   : > { %1079 = vst [vmem:[#allocation2 + $0x104] sm:$0x33] %v1067_v17 }
 0x115   : > { %1081 = vst [vmem:[#allocation2 + $0x114] sm:$0x33] %v1071_v19  ;;  %v1233_v51 = vsel %vm363_vm0, %v1227_v48, %v1228_v53 }
 0x116   : > { %v1108_v2 = vpop.permute.xlu1 %1107  ;;  %v1106_v27 = vpop.permute.xlu0 %1105  ;;  %v1234_v14 = vsel %vm760_vm8, %v3448_v10, %v1233_v51  ;;  %v2945_v10 = vld [vmem:[#allocation2 + $0xb8] sm:$0xf0] }
 0x117   : > { %v1116_v16 = vrot.slane %v1108_v2, 4  ;;  %v1115_v29 = vrot.slane %v1106_v27, 4  ;;  %1246 = vst [vmem:[#allocation2 + $0x128] sm:$0xcc] %v1234_v14 }
 0x119   : > { %v1122_v11 = vsel %vm363_vm0, %v1116_v16, %v1117_v13  ;;  %v1120_v54 = vsel %vm363_vm0, %v1115_v29, %v1116_v16 }
 0x11a   : > { %v1123_v18 = vsel %vm647_vm6, %v1108_v2, %v1122_v11  ;;  %v1121_v8 = vsel %vm647_vm6, %v1106_v27, %v1120_v54  ;;  %v3469_v34 = vpop.permute.xlu2 %1222 }
 0x11b   : > { %1135 = vst [vmem:[#allocation2 + $0x104] sm:$0xcc] %v1123_v18  ;;  %v1229_v58 = vrot.slane %v3469_v34, 4 }
 0x11c   : > { %1134 = vst [vmem:[#allocation2 + $0xfc] sm:$0xcc] %v1121_v8 }
 0x11d   : > { %v1235_v28 = vsel %vm363_vm0, %v1228_v53, %v1229_v58 }
 0x11e   : > { %v1112_v32 = vpop.permute.xlu1 %1111  ;;  %v1161_v33 = vpop.permute.xlu0 %1160  ;;  %v1236_v22 = vsel %vm760_vm8, %v1221_v3, %v1235_v28 }
 0x11f   : > { %v1118_v26 = vrot.slane %v1112_v32, 4  ;;  %1247 = vst [vmem:[#allocation2 + $0x130] sm:$0xcc] %v1236_v22  ;;  %v1170_v49 = vrot.slane %v1161_v33, 4 }
 0x121   : > { %v1124_v36 = vsel %vm363_vm0, %v1117_v13, %v1118_v26  ;;  %v1126_v21 = vsel %vm363_vm0, %v1118_v26, %v1119_v37 }
 0x122   : > { %v1125_v41 = vsel %vm647_vm6, %v3430_v6, %v1124_v36  ;;  %v1127_v5 = vsel %vm647_vm6, %v1112_v32, %v1126_v21  ;;  %v3481_v43 = vpop.permute.xlu2 %833 }
 0x123   : > { %1136 = vst [vmem:[#allocation2 + $0x10c] sm:$0xcc] %v1125_v41  ;;  %v840_v38 = vrot.slane %v3481_v43, 4  ;;  %v2954_v41 = vld [vmem:[#allocation2 + $0x100] sm:$0xf0] }
 0x124   : > { %1137 = vst [vmem:[#allocation2 + $0x114] sm:$0xcc] %v1127_v5  ;;  %v2734_v5 = vld [vmem:[#allocation2 + $0x104] sm:$0xf0] }
 0x125   : > { %v846_v40 = vsel %vm363_vm0, %v839_v24, %v840_v38 }
 0x126   : > { %v1165_v35 = vpop.permute.xlu1 %1164  ;;  %v1163_v37 = vpop.permute.xlu0 %1162  ;;  %v847_v6 = vsel %vm365_vm1, %v3336_v42, %v846_v40 }
 0x127   : > { %v1172_v56 = vrot.slane %v1165_v35, 4  ;;  %v1171_v57 = vrot.slane %v1163_v37, 4  ;;  %858 = vst [vmem:[#allocation2 + $0xc4] sm:$0x33] %v847_v6  ;;  %v2950_v6 = vld [vmem:[#allocation2 + $0xe4] sm:$0xf] }
 0x129   : > { %v1175_v60 = vsel %vm363_vm0, %v1170_v49, %v1171_v57  ;;  %v1177_v61 = vsel %vm363_vm0, %v1171_v57, %v1172_v56  ;;  %v2737_v57 = vor.u32 %v2950_v6, %v2734_v5  ;;  %v2927_v5 = vld [vmem:[#allocation2 + $0x28] sm:$0xf0] }
 0x12a   : > { %v1176_v62 = vsel %vm704_vm7, %v1161_v33, %v1175_v60  ;;  %v1178_v7 = vsel %vm704_vm7, %v1163_v37, %v1177_v61  ;;  %v3495_v46 = vpop.permute.xlu2 %891  ;;  %v2732_v37 = vld [vmem:[#allocation2 + $0xe0] sm:$0xf] }
 0x12b   : > { %1189 = vst [vmem:[#allocation2 + $0x120] sm:$0x33] %v1176_v62  ;;  %v897_v24 = vrot.slane %v3495_v46, 4 }
 0x12c   : > { %1190 = vst [vmem:[#allocation2 + $0x128] sm:$0x33] %v1178_v7  ;;  %v2696_v7 = vld [vmem:[#allocation2 + $0x98] sm:$0xf] }
 0x12d   : > { %v906_v42 = vsel %vm421_vm2, %v3495_v46, %v897_v24  ;;  %v3576_v46 = vld [vmem:[%s4000_s3] sm:$0xf] }
 0x12e   : > { %v1169_v20 = vpop.permute.xlu1 %1168  ;;  %v1167_v15 = vpop.permute.xlu0 %1166  ;;  %916 = vst [vmem:[#allocation2 + $0xd4] sm:$0xc] %v906_v42  ;;  %v2941_v42 = vld [vmem:[#allocation2 + $0x9c] sm:$0xf] }
 0x12f   : > { %v1174_v17 = vrot.slane %v1169_v20, 4  ;;  %v1173_v19 = vrot.slane %v1167_v15, 4 }
 0x131   : > { %v1183_v3 = vsel %vm704_vm7, %v1169_v20, %v1174_v17  ;;  %v1179_v53 = vsel %vm363_vm0, %v1172_v56, %v1173_v19  ;;  %v1181_v13 = vsel %vm363_vm0, %v1173_v19, %v1174_v17  ;;  %v2697_v17 = vor.u32 %v2945_v10, %v2696_v7 }
 0x132   : > { %1193 = vst [vmem:[#allocation2 + $0x140] sm:$0x3] %v1183_v3  ;;  %v1180_v51 = vsel %vm704_vm7, %v1165_v35, %v1179_v53  ;;  %v1182_v2 = vsel %vm704_vm7, %v1167_v15, %v1181_v13  ;;  %v3507_v27 = vpop.permute.xlu2 %581  ;;  %v2936_v3 = vld [vmem:[#allocation2 + $0x70] sm:$0xf0]  ;;  %v2662_v53 = vld [vmem:[#allocation2 + $0x74] sm:$0xf0] }
 0x133   : > { %1191 = vst [vmem:[#allocation2 + $0x130] sm:$0x33] %v1180_v51  ;;  %v588_v14 = vrot.slane %v3507_v27, 4  ;;  %v1292_v16 = vld [vmem:[#allocation2 + $0x128] sm:$0xff] }
 0x134   : > { %1192 = vst [vmem:[#allocation2 + $0x138] sm:$0x33] %v1182_v2  ;;  %v1421_v29 = vunpack.c.l.b16 %v1292_v16  ;;  %v1422_v11 = vunpack.c.h.b16 %v1292_v16  ;;  %v2660_v16 = vld [vmem:[#allocation2 + $0x50] sm:$0xf] }
 0x135   : > { %v595_v54 = vsel %vm363_vm0, %v587_v63, %v588_v14 }
 0x136   : > { %v1225_v18 = vpop.permute.xlu0 %1224  ;;  %v596_v8 = vsel %vm591_vm5, %v3279_v25, %v595_v54  ;;  %v1217_v28 = vpop.permute.xlu1 %1216  ;;  %v1466_v32 = vpack.c.b16 %v1421_v29, %v1421_v29  ;;  %v1467_v33 = vpack.c.b16 %v1422_v11, %v1422_v11  ;;  %v2661_v54 = vor.u32 %v2936_v3, %v2660_v16  ;;  %v2724_v3 = vld [vmem:[#allocation2 + $0xd8] sm:$0xf] }
 0x137   : > { %v1230_v22 = vrot.slane %v1225_v18, 4  ;;  %607 = vst [vmem:[#allocation2 + $0x58] sm:$0xcc] %v596_v8  ;;  %v1226_v26 = vrot.slane %v1217_v28, 4  ;;  %v2750_v16 = vld [vmem:[#allocation2 + $0x114] sm:$0xf0] }
 0x138   : > { %v1521_v36 = vsel %vm363_vm0, %v1466_v32, 0  ;;  %v1524_v21 = vsel %vm363_vm0, %v1467_v33, 0 }
 0x139   : > { %v1237_v63 = vsel %vm363_vm0, %v1229_v58, %v1230_v22  ;;  %v1239_v49 = vsel %vm760_vm8, %v1225_v18, %v1230_v22  ;;  %v1231_v25 = vsel %vm363_vm0, %v1226_v26, %v1227_v48  ;;  %1570 = vmatpush.bf16.msra.mxu2 %v1521_v36  ;;  %1583 = vmatpush.bf16.msra.mxu3 %v1524_v21  ;;  %v2698_v48 = vld [vmem:[#allocation2 + $0xbc] sm:$0xf0]  ;;  %v2932_v18 = vld [vmem:[#allocation2 + $0x54] sm:$0xf]  ;;  %v2923_v26 = vld [vmem:[#allocation2 + $0xc] sm:$0xf] }
 0x13a   : > { %v1238_v40 = vsel %vm760_vm8, %v3469_v34, %v1237_v63  ;;  %1249 = vst [vmem:[#allocation2 + $0x140] sm:$0xc] %v1239_v49  ;;  %v1232_v35 = vsel %vm760_vm8, %v1217_v28, %v1231_v25  ;;  %v3529_v56 = vpop.permute.xlu2 %639  ;;  %v2733_v58 = vor.u32 %v2954_v41, %v2732_v37  ;;  %v2701_v19 = vor.u32 %v2941_v42, %v2698_v48  ;;  %v2624_v28 = vld [vmem:[#allocation2 + $0x8] sm:$0xf]  ;;  %v2626_v63 = vld [vmem:[#allocation2 + $0x2c] sm:$0xf0] }
 0x13b   : > { %1248 = vst [vmem:[#allocation2 + $0x138] sm:$0xcc] %v1238_v40  ;;  %v645_v60 = vrot.slane %v3529_v56, 4 }
 0x13c   : > { %1245 = vst [vmem:[#allocation2 + $0x120] sm:$0xcc] %v1232_v35 }
 0x13d   : > { %1571 = vmatpush.bf16.msra.mxu2 %v2733_v58  ;;  %1584 = vmatpush.bf16.msra.mxu3 %v2737_v57  ;;  %v655_v34 = vsel %vm647_vm6, %v3529_v56, %v645_v60 }
 0x13e   : > { %v751_v61 = vpop.permute.xlu0 %750  ;;  %665 = vst [vmem:[#allocation2 + $0x8c] sm:$0x3] %v655_v34  ;;  %v753_v62 = vpop.permute.xlu1 %752  ;;  %v2625_v34 = vor.u32 %v2927_v5, %v2624_v28  ;;  %v1293_v28 = vld [vmem:[#allocation2 + $0x130] sm:$0xff] }
 0x13f   : > { %v757_v20 = vrot.slane %v751_v61, 4  ;;  %v758_v15 = vrot.slane %v753_v62, 4 }
 0x141   : > { %v764_v13 = vsel %vm363_vm0, %v756_v4, %v757_v20  ;;  %v766_v51 = vsel %vm363_vm0, %v757_v20, %v758_v15  ;;  %v768_v2 = vsel %vm760_vm8, %v753_v62, %v758_v15  ;;  %1572 = vmatpush.bf16.msra.mxu2 %v2697_v17  ;;  %1585 = vmatpush.bf16.msra.mxu3 %v2701_v19  ;;  %v2953_v20 = vld [vmem:[#allocation2 + $0xf8] sm:$0xf0] }
 0x142   : > { %v765_v29 = vsel %vm760_vm8, %v3321_v50, %v764_v13  ;;  %v767_v11 = vsel %vm760_vm8, %v751_v61, %v766_v51  ;;  %778 = vst [vmem:[#allocation2 + $0xb0] sm:$0x3] %v768_v2  ;;  %v3544_v8 = vpop.permute.xlu2 %354  ;;  %v1294_v32 = vld [vmem:[#allocation2 + $0x138] sm:$0xff]  ;;  %v2665_v4 = vor.u32 %v2932_v18, %v2662_v53  ;;  %v2629_v61 = vor.u32 %v2923_v26, %v2626_v63  ;;  %v2726_v53 = vld [vmem:[#allocation2 + $0xfc] sm:$0xf0] }
 0x143   : > { %776 = vst [vmem:[#allocation2 + $0xa0] sm:$0x33] %v765_v29  ;;  %v361_v33 = vrot.slane %v3544_v8, 4  ;;  %v1291_v22 = vld [vmem:[#allocation2 + $0x120] sm:$0xff]  ;;  %v1425_v36 = vunpack.c.l.b16 %v1294_v32  ;;  %v1426_v21 = vunpack.c.h.b16 %v1294_v32  ;;  %v2956_v13 = vld [vmem:[#allocation2 + $0x110] sm:$0xf0] }
 0x144   : > { %777 = vst [vmem:[#allocation2 + $0xa8] sm:$0x33] %v767_v11  ;;  %v1419_v41 = vunpack.c.l.b16 %v1291_v22  ;;  %v1420_v50 = vunpack.c.h.b16 %v1291_v22  ;;  %v2748_v29 = vld [vmem:[#allocation2 + $0xf0] sm:$0xf]  ;;  %v2690_v11 = vld [vmem:[#allocation2 + $0xb4] sm:$0xf0] }
 0x145   : > { %1573 = vmatpush.bf16.msra.mxu2 %v2661_v54  ;;  %1586 = vmatpush.bf16.msra.mxu3 %v2665_v4  ;;  %v369_v49 = vsel %vm363_vm0, %v360_v55, %v361_v33  ;;  %v1470_v25 = vpack.c.b16 %v1425_v36, %v1425_v36  ;;  %v1471_v40 = vpack.c.b16 %v1426_v21, %v1426_v21  ;;  %v2952_v18 = vld [vmem:[#allocation2 + $0xf4] sm:$0xf]  ;;  %v2688_v26 = vld [vmem:[#allocation2 + $0x90] sm:$0xf]  ;;  %v2935_v63 = vld [vmem:[#allocation2 + $0x68] sm:$0xf0] }
 0x146   : > { %v836_v35 = vpop.permute.xlu0 %835  ;;  %v370_v37 = vsel %vm365_vm1, %v3247_v52, %v369_v49  ;;  %v890_v6 = vpop.permute.xlu1 %889  ;;  %v1464_v58 = vpack.c.b16 %v1419_v41, %v1419_v41  ;;  %v1465_v57 = vpack.c.b16 %v1420_v50, %v1420_v50  ;;  %v2749_v54 = vor.u32 %v2956_v13, %v2748_v29  ;;  %v2940_v50 = vld [vmem:[#allocation2 + $0x94] sm:$0xf] }
 0x147   : > { %v841_v10 = vrot.slane %v836_v35, 4  ;;  %381 = vst [vmem:[#allocation2 + $0x10] sm:$0xcc] %v370_v37  ;;  %v896_v48 = vrot.slane %v890_v6, 4  ;;  %v1533_v55 = vsel %vm363_vm0, %v1470_v25, 0  ;;  %v1536_v42 = vsel %vm363_vm0, %v1471_v40, 0 }
 0x148   : > { %v1515_v62 = vsel %vm363_vm0, %v1464_v58, 0  ;;  %v1518_v7 = vsel %vm363_vm0, %v1465_v57, 0  ;;  %v2753_v32 = vor.u32 %v2952_v18, %v2750_v16  ;;  %v2693_v5 = vor.u32 %v2940_v50, %v2690_v11  ;;  %v2654_v58 = vld [vmem:[#allocation2 + $0x6c] sm:$0xf0]  ;;  %v2922_v16 = vld [vmem:[#allocation2 + $0x4] sm:$0xf] }
 0x149   : > { %v848_v52 = vsel %vm363_vm0, %v840_v38, %v841_v10  ;;  %v850_v15 = vsel %vm365_vm1, %v836_v35, %v841_v10  ;;  %v902_v17 = vsel %vm363_vm0, %v895_v44, %v896_v48  ;;  %v904_v19 = vsel %vm363_vm0, %v896_v48, %v897_v24  ;;  %1544 = vmatpush.bf16.msra.mxu0 %v1515_v62  ;;  %v2944_v44 = vld [vmem:[#allocation2 + $0xb0] sm:$0xf0] }
 0x14a   : > { %v849_v51 = vsel %vm365_vm1, %v3481_v43, %v848_v52  ;;  %860 = vst [vmem:[#allocation2 + $0xd4] sm:$0x3] %v850_v15  ;;  %v903_v38 = vsel %vm421_vm2, %v3349_v0, %v902_v17  ;;  %v905_v2 = vsel %vm421_vm2, %v890_v6, %v904_v19  ;;  %1557 = vmatpush.bf16.msra.mxu1 %v1518_v7  ;;  %v2949_v43 = vld [vmem:[#allocation2 + $0xdc] sm:$0xf]  ;;  %v1423_v49 = vunpack.c.l.b16 %v1293_v28  ;;  %v2652_v6 = vld [vmem:[#allocation2 + $0x48] sm:$0xf]  ;;  %v3587_v10 = vpop.permute.xlu2 %413 }
 0x14b   : > { %1574 = vmatpush.bf16.msra.mxu2 %v2625_v34  ;;  %859 = vst [vmem:[#allocation2 + $0xcc] sm:$0x33] %v849_v51  ;;  %1587 = vmatpush.bf16.msra.mxu3 %v2629_v61  ;;  %v2725_v24 = vor.u32 %v2953_v20, %v2724_v3  ;;  %v2729_v0 = vor.u32 %v2949_v43, %v2726_v53  ;;  %v1424_v25 = vunpack.c.h.b16 %v1293_v28  ;;  %v2712_v57 = vld [vmem:[#allocation2 + $0xa8] sm:$0xf]  ;;  %v2943_v61 = vld [vmem:[#allocation2 + $0xac] sm:$0xf] }
 0x14c   : > { %914 = vst [vmem:[#allocation2 + $0xc4] sm:$0xcc] %v903_v38  ;;  %v2689_v41 = vor.u32 %v2944_v44, %v2688_v26  ;;  %v2653_v62 = vor.u32 %v2935_v63, %v2652_v6  ;;  %v2931_v7 = vld [vmem:[#allocation2 + $0x4c] sm:$0xf]  ;;  %v1468_v20 = vpack.c.b16 %v1423_v49, %v1423_v49  ;;  %v2618_v19 = vld [vmem:[#allocation2 + $0x24] sm:$0xf0] }
 0x14d   : > { %915 = vst [vmem:[#allocation2 + $0xcc] sm:$0xcc] %v905_v2  ;;  %1545 = vmatpush.bf16.msra.mxu0 %v2725_v24  ;;  %v1469_v52 = vpack.c.b16 %v1424_v25, %v1424_v25  ;;  %v2616_v38 = vld [vmem:[#allocation2] sm:$0xf]  ;;  %v3033_v2 = vmov 0  }
 0x14e   : > { %2760 = vmatmul.msk.bf16.vlgmr.msra.gmra.mxu2 %vm1509_vm9, %v3576_v46  ;;  %1558 = vmatpush.bf16.msra.mxu1 %v2729_v0  ;;  %v525_v4 = vpop.permute.xlu0 %524  ;;  %v527_v22 = vpop.permute.xlu1 %526  ;;  %1698 = vst [vmem:[#allocation3] sm:$0xff] %v3033_v2  ;;  %v2621_v0 = vor.u32 %v2922_v16, %v2618_v19  ;;  %v1527_v29 = vsel %vm363_vm0, %v1468_v20, 0  ;;  %v2704_v25 = vld [vmem:[#allocation2 + $0xa0] sm:$0xf] }
 0x14f   : > { %1622 = vmatpush.bf16.msrb.mxu2 %v1533_v55  ;;  %1635 = vmatpush.bf16.msrb.mxu3 %v1536_v42  ;;  %v531_v36 = vrot.slane %v525_v4, 4  ;;  %v532_v21 = vrot.slane %v527_v22, 4  ;;  %v2926_v55 = vld [vmem:[#allocation2 + $0x20] sm:$0xf0]  ;;  %v2657_v42 = vor.u32 %v2931_v7, %v2654_v58  ;;  %1702 = vst [vmem:[#allocation3 + $0x20] sm:$0xff] %v3033_v2  ;;  %v1530_v11 = vsel %vm363_vm0, %v1469_v52, 0 }
 0x150   : > { %2761 = vmatmul.msk.bf16.vlgmr.msra.gmra.mxu3 %vm1509_vm9, %v3576_v46  ;;  %3014 = vset.pattern.permute.xlu2 %v3033_v2  ;;  %v2617_v43 = vor.u32 %v2926_v55, %v2616_v38 }
 0x151   : > { %v538_v40 = vsel %vm363_vm0, %v530_v45, %v531_v36  ;;  %v540_v35 = vsel %vm363_vm0, %v531_v36, %v532_v21  ;;  %v542_v37 = vsel %vm534_vm4, %v527_v22, %v532_v21  ;;  %1546 = vmatpush.bf16.msra.mxu0 %v2689_v41  ;;  %v419_v45 = vrot.slane %v3587_v10, 4  ;;  %3015 = vset.pattern.permute.xlu0 %v3033_v2  ;;  %v2742_v36 = vld [vmem:[#allocation2 + $0x10c] sm:$0xf0] }
 0x152   : > { %v539_v48 = vsel %vm534_vm4, %v3258_v1, %v538_v40  ;;  %v541_v34 = vsel %vm534_vm4, %v525_v4, %v540_v35  ;;  %552 = vst [vmem:[#allocation2 + $0x68] sm:$0x3] %v542_v37  ;;  %1559 = vmatpush.bf16.msra.mxu1 %v2693_v5  ;;  %v2955_v4 = vld [vmem:[#allocation2 + $0x108] sm:$0xf0]  ;;  %v1296_v5 = vld [vmem:[%s4001_s4] sm:$0xff] }
 0x153   : > { %1623 = vmatpush.bf16.msrb.mxu2 %v2749_v54  ;;  %1636 = vmatpush.bf16.msrb.mxu3 %v2753_v32  ;;  %550 = vst [vmem:[#allocation2 + $0x58] sm:$0x33] %v539_v48  ;;  %v429_v1 = vsel %vm421_vm2, %v3587_v10, %v419_v45  ;;  %v2706_v50 = vld [vmem:[#allocation2 + $0xc4] sm:$0xf0]  ;;  %v2942_v35 = vld [vmem:[#allocation2 + $0xa4] sm:$0xf] }
 0x154   : > { %551 = vst [vmem:[#allocation2 + $0x60] sm:$0x33] %v541_v34  ;;  %v2947_v15 = vld [vmem:[#allocation2 + $0xc8] sm:$0xf0]  ;;  %v2714_v17 = vld [vmem:[#allocation2 + $0xcc] sm:$0xf0]  ;;  %1299 = vperm.xlu2 %3014, %v1296_v5  }
 0x155   : > { %1547 = vmatpush.bf16.msra.mxu0 %v2653_v62  ;;  %v2713_v3 = vor.u32 %v2947_v15, %v2712_v57  ;;  %v2717_v53 = vor.u32 %v2943_v61, %v2714_v17  ;;  %439 = vst [vmem:[#allocation2 + $0x44] sm:$0x3] %v429_v1  ;;  %v2709_v57 = vor.u32 %v2942_v35, %v2706_v50  ;;  %v2720_v5 = vld [vmem:[#allocation2 + $0xb0] sm:$0xf] }
 0x156   : > { %1560 = vmatpush.bf16.msra.mxu1 %v2657_v42  ;;  %v584_v13 = vpop.permute.xlu0 %583  ;;  %v638_v51 = vpop.permute.xlu1 %637 }
 0x157   : > { %v589_v44 = vrot.slane %v584_v13, 4  ;;  %v644_v24 = vrot.slane %v638_v51, 4  ;;  %1624 = vmatpush.bf16.msrb.mxu2 %v2713_v3  ;;  %1637 = vmatpush.bf16.msrb.mxu3 %v2717_v53 }
 0x159   : > { %v597_v54 = vsel %vm363_vm0, %v588_v14, %v589_v44  ;;  %v599_v18 = vsel %vm591_vm5, %v584_v13, %v589_v44  ;;  %v651_v28 = vsel %vm363_vm0, %v643_v23, %v644_v24  ;;  %v653_v32 = vsel %vm363_vm0, %v644_v24, %v645_v60  ;;  %1548 = vmatpush.bf16.msra.mxu0 %v2617_v43  ;;  %v2740_v23 = vld [vmem:[#allocation2 + $0xe8] sm:$0xf]  ;;  %v2951_v60 = vld [vmem:[#allocation2 + $0xec] sm:$0xf] }
 0x15a   : > { %v598_v22 = vsel %vm591_vm5, %v3507_v27, %v597_v54  ;;  %609 = vst [vmem:[#allocation2 + $0x68] sm:$0xc] %v599_v18  ;;  %v652_v26 = vsel %vm647_vm6, %v3295_v39, %v651_v28  ;;  %v654_v14 = vsel %vm647_vm6, %v638_v51, %v653_v32  ;;  %1561 = vmatpush.bf16.msra.mxu1 %v2621_v0  ;;  %v2946_v39 = vld [vmem:[#allocation2 + $0xc0] sm:$0xf0]  ;;  %v2933_v52 = vld [vmem:[#allocation2 + $0x5c] sm:$0xf] }
 0x15b   : > { %608 = vst [vmem:[#allocation2 + $0x60] sm:$0xcc] %v598_v22  ;;  %v2741_v56 = vor.u32 %v2955_v4, %v2740_v23  ;;  %v2745_v27 = vor.u32 %v2951_v60, %v2742_v36  ;;  %v2705_v40 = vor.u32 %v2946_v39, %v2704_v25  ;;  %v1295_v54 = vld [vmem:[#allocation2 + $0x140] sm:$0xf]  ;;  %v2632_v28 = vld [vmem:[#allocation2 + $0x10] sm:$0xf] }
 0x15c   : > { %663 = vst [vmem:[#allocation2 + $0x7c] sm:$0x33] %v652_v26  ;;  %2758 = vmatmul.msk.bf16.vlgmr.msra.gmra.mxu0 %vm1509_vm9, %v3576_v46  ;;  %v1427_v18 = vunpack.c.l.b16 %v1295_v54  ;;  %v2924_v26 = vld [vmem:[#allocation2 + $0x14] sm:$0xf] }
 0x15d   : > { %1596 = vmatpush.bf16.msrb.mxu0 %v1527_v29  ;;  %664 = vst [vmem:[#allocation2 + $0x84] sm:$0x33] %v654_v14  ;;  %2759 = vmatmul.msk.bf16.vlgmr.msra.gmra.mxu1 %vm1509_vm9, %v3576_v46 }
 0x15e   : > { %1609 = vmatpush.bf16.msrb.mxu1 %v1530_v11  ;;  %v695_v21 = vpop.permute.xlu0 %694  ;;  %v697_v41 = vpop.permute.xlu1 %696  ;;  %v1472_v14 = vpack.c.b16 %v1427_v18, %v1427_v18 }
 0x15f   : > { %v701_v63 = vrot.slane %v695_v21, 4  ;;  %v702_v49 = vrot.slane %v697_v41, 4 }
 0x160   : > { %v1539_v39 = vsel %vm363_vm0, %v1472_v14, 0 }
 0x161   : > { %1597 = vmatpush.bf16.msrb.mxu0 %v2741_v56  ;;  %v708_v37 = vsel %vm363_vm0, %v700_v47, %v701_v63  ;;  %v710_v6 = vsel %vm363_vm0, %v701_v63, %v702_v49  ;;  %v712_v58 = vsel %vm704_vm7, %v697_v41, %v702_v49  ;;  %v2668_v47 = vld [vmem:[#allocation2 + $0x58] sm:$0xf]  ;;  %v2948_v63 = vld [vmem:[#allocation2 + $0xd0] sm:$0xf0]  ;;  %v2684_v25 = vld [vmem:[#allocation2 + $0x68] sm:$0xf] }
 0x162   : > { %1610 = vmatpush.bf16.msrb.mxu1 %v2745_v27  ;;  %v709_v48 = vsel %vm704_vm7, %v3304_v59, %v708_v37  ;;  %v711_v34 = vsel %vm704_vm7, %v695_v21, %v710_v6  ;;  %722 = vst [vmem:[#allocation2 + $0x8c] sm:$0xc] %v712_v58  ;;  %v2676_v15 = vld [vmem:[#allocation2 + $0x60] sm:$0xf]  ;;  %v2934_v17 = vld [vmem:[#allocation2 + $0x64] sm:$0xf]  ;;  %v2721_v49 = vor.u32 %v2948_v63, %v2720_v5 }
 0x163   : > { %720 = vst [vmem:[#allocation2 + $0x7c] sm:$0xcc] %v709_v48  ;;  %v2957_v21 = vld [vmem:[#allocation2 + $0x118] sm:$0xf0]  ;;  %v2756_v41 = vld [vmem:[#allocation2 + $0xf8] sm:$0xf] }
 0x164   : > { %721 = vst [vmem:[#allocation2 + $0x84] sm:$0xcc] %v711_v34  ;;  %v2757_v50 = vor.u32 %v2957_v21, %v2756_v41  ;;  %v1667_v48 = vld [vmem:[%s3997_s0] sm:$0xff]  ;;  %v3016_v63 = vld [vmem:[%s3997_s0 + $0x8] ss:$0 sm:$0xff] }
 0x165   : > { %1598 = vmatpush.bf16.msrb.mxu0 %v2705_v40  ;;  %v1678_v14 = vperm.slane %v1667_v48, 7 }
 0x166   : > { %1611 = vmatpush.bf16.msrb.mxu1 %v2709_v57  ;;  %v357_v61 = vpop.permute.xlu0 %356  ;;  %v412_v62 = vpop.permute.xlu1 %411 }
 0x167   : > { %v362_v7 = vrot.slane %v357_v61, 4  ;;  %v418_v55 = vrot.slane %v412_v62, 4 }
 0x169   : > { %v371_v42 = vsel %vm363_vm0, %v361_v33, %v362_v7  ;;  %v373_v20 = vsel %vm365_vm1, %v357_v61, %v362_v7  ;;  %v425_v59 = vsel %vm363_vm0, %v417_v12, %v418_v55  ;;  %v427_v1 = vsel %vm363_vm0, %v418_v55, %v419_v45  ;;  %v2939_v40 = vld [vmem:[#allocation2 + $0x88] sm:$0xf0] }
 0x16a   : > { %v372_v19 = vsel %vm365_vm1, %v3544_v8, %v371_v42  ;;  %383 = vst [vmem:[#allocation2 + $0x20] sm:$0xc] %v373_v20  ;;  %v426_v33 = vsel %vm421_vm2, %v3266_v9, %v425_v59  ;;  %v2937_v3 = vld [vmem:[#allocation2 + $0x78] sm:$0xf0]  ;;  %v2670_v53 = vld [vmem:[#allocation2 + $0x7c] sm:$0xf0]  ;;  %v428_v13 = vsel %vm421_vm2, %v412_v62, %v427_v1  ;;  %v2685_v35 = vor.u32 %v2939_v40, %v2684_v25 }
 0x16b   : > { %382 = vst [vmem:[#allocation2 + $0x18] sm:$0xcc] %v372_v19  ;;  %v2669_v12 = vor.u32 %v2937_v3, %v2668_v47  ;;  %v2673_v51 = vor.u32 %v2933_v52, %v2670_v53  ;;  %v2938_v38 = vld [vmem:[#allocation2 + $0x80] sm:$0xf0]  ;;  %v2678_v2 = vld [vmem:[#allocation2 + $0x84] sm:$0xf0] }
 0x16c   : > { %437 = vst [vmem:[#allocation2 + $0x34] sm:$0x33] %v426_v33  ;;  %v2677_v10 = vor.u32 %v2938_v38, %v2676_v15  ;;  %v2681_v44 = vor.u32 %v2934_v17, %v2678_v2  ;;  %v1673_v7 = vperm.slane %v1667_v48, 2  ;;  %v1674_v47 = vperm.slane %v1667_v48, 3 }
 0x16d   : > { %1599 = vmatpush.bf16.msrb.mxu0 %v2669_v12  ;;  %1612 = vmatpush.bf16.msrb.mxu1 %v2673_v51  ;;  %438 = vst [vmem:[#allocation2 + $0x3c] sm:$0x33] %v428_v13  ;;  %v1671_v33 = vperm.slane %v1667_v48, 0  ;;  %v1672_v13 = vperm.slane %v1667_v48, 1 }
 0x16e   : > { %1625 = vmatpush.bf16.msrb.mxu2 %v2677_v10  ;;  %1638 = vmatpush.bf16.msrb.mxu3 %v2681_v44  ;;  %v469_v8 = vpop.permute.xlu0 %468  ;;  %v471_v45 = vpop.permute.xlu1 %470 }
 0x16f   : > { %v475_v9 = vrot.slane %v469_v8, 4  ;;  %v476_v24 = vrot.slane %v471_v45, 4 }
 0x171   : > { %v482_v43 = vsel %vm363_vm0, %v474_v31, %v475_v9  ;;  %v484_v16 = vsel %vm363_vm0, %v475_v9, %v476_v24  ;;  %v486_v0 = vsel %vm478_vm3, %v471_v45, %v476_v24  ;;  %v2648_v37 = vld [vmem:[#allocation2 + $0x20] sm:$0xf] }
 0x172   : > { %v483_v29 = vsel %vm478_vm3, %v3284_v30, %v482_v43  ;;  %v485_v11 = vsel %vm478_vm3, %v469_v8, %v484_v16  ;;  %496 = vst [vmem:[#allocation2 + $0x44] sm:$0xc] %v486_v0  ;;  %v2640_v32 = vld [vmem:[#allocation2 + $0x18] sm:$0xf]  ;;  %v2925_v4 = vld [vmem:[#allocation2 + $0x1c] sm:$0xf] }
 0x173   : > { %494 = vst [vmem:[#allocation2 + $0x34] sm:$0xcc] %v483_v29  ;;  %v1675_v43 = vperm.slane %v1667_v48, 4  ;;  %v1676_v0 = vperm.slane %v1667_v48, 5 }
 0x174   : > { %495 = vst [vmem:[#allocation2 + $0x3c] sm:$0xcc] %v485_v11 }
 0x179   : > { %v2930_v6 = vld [vmem:[#allocation2 + $0x40] sm:$0xf0] }
 0x17a   : > { %v2928_v22 = vld [vmem:[#allocation2 + $0x30] sm:$0xf0]  ;;  %v2634_v31 = vld [vmem:[#allocation2 + $0x34] sm:$0xf0]  ;;  %v2649_v58 = vor.u32 %v2930_v6, %v2648_v37 }
 0x17b   : > { %v2633_v36 = vor.u32 %v2928_v22, %v2632_v28  ;;  %v2637_v23 = vor.u32 %v2924_v26, %v2634_v31  ;;  %v2929_v56 = vld [vmem:[#allocation2 + $0x38] sm:$0xf0]  ;;  %v2642_v60 = vld [vmem:[#allocation2 + $0x3c] sm:$0xf0]  ;;  %v1677_v26 = vperm.slane %v1667_v48, 6 }
 0x17c   : > { %v2641_v27 = vor.u32 %v2929_v56, %v2640_v32  ;;  %v2645_v30 = vor.u32 %v2925_v4, %v2642_v60 }
 0x17d   : > { %1600 = vmatpush.bf16.msrb.mxu0 %v2633_v36  ;;  %1613 = vmatpush.bf16.msrb.mxu1 %v2637_v23 }
 0x17e   : > { %1626 = vmatpush.bf16.msrb.mxu2 %v2641_v27  ;;  %1639 = vmatpush.bf16.msrb.mxu3 %v2645_v30 }
 0x180   : > { %2762 = vmatmul.msk.bf16.vlgmr.msrb.gmra.mxu0 %vm1509_vm9, %v3576_v46  ;;  %2763 = vmatmul.msk.bf16.vlgmr.msrb.gmra.mxu1 %vm1509_vm9, %v3576_v46 }
 0x181   : > { %1648 = vmatpush.bf16.msra.mxu0 %v1539_v39  ;;  %2764 = vmatmul.msk.bf16.vlgmr.msrb.gmra.mxu2 %vm1509_vm9, %v3576_v46 }
 0x182   : > { %2765 = vmatmul.msk.bf16.vlgmr.msrb.gmra.mxu3 %vm1509_vm9, %v3576_v46 }
 0x185   : > { %1649 = vmatpush.bf16.msra.mxu0 %v2757_v50 }
 0x189   : > { %1650 = vmatpush.bf16.msra.mxu0 %v2721_v49 }
 0x18d   : > { %1651 = vmatpush.bf16.msra.mxu0 %v2685_v35 }
 0x191   : > { %1652 = vmatpush.bf16.msra.mxu0 %v2649_v58 }
 0x194   : > { %2766 = vmatmul.msk.bf16.vlgmr.msra.gmra.mxu0 %vm1509_vm9, %v3576_v46 }
 0x1ae   : > { %v1300_v57 = vpop.permute.xlu2 %1299 }
 0x1d1   : > { %v1576_v34 = vpop.f32.mrf.mxu2 }
 0x1d2   : > { %v1577_v62 = vadd.f32 %v1576_v34, %v1300_v57 }
 0x1d3   : > { %v1589_v61 = vpop.f32.mrf.mxu3 }
 0x1d4   : > { %v1590_v55 = vadd.f32 %v1589_v61, %v1300_v57  ;;  %v1660_v42 = vmax.f32 %v1577_v62, 0.0 }
 0x1d6   : > { %v1661_v20 = vmax.f32 %v1590_v55, 0.0  ;;  %v1691_v59 = vmul.f32 %v1673_v7, %v1660_v42 }
 0x1d8   : > { %v1692_v52 = vmul.f32 %v1674_v47, %v1661_v20 }
 0x1d9   : > { %v1578_v17 = vpop.f32.mrf.mxu2  ;;  %v1550_v1 = vpop.f32.mrf.mxu0 }
 0x1da   : > { %v1704_v15 = vpack.c.bf16 %v1692_v52, %v1691_v59  ;;  %v1551_v46 = vadd.f32 %v1550_v1, %v1300_v57  ;;  %v1563_v3 = vpop.f32.mrf.mxu1 }
 0x1db   : > { %v1591_v19 = vpop.f32.mrf.mxu3  ;;  %v1564_v53 = vadd.f32 %v1563_v3, %v1300_v57 }
 0x1dc   : > { %1715 = vrot.lane.b32.xlu1 %v1704_v15, %s3034_s26  ;;  %v1658_v12 = vmax.f32 %v1551_v46, 0.0 }
 0x1dd   : > { %v1659_v51 = vmax.f32 %v1564_v53, 0.0 }
 0x1de   : > { %v1689_v38 = vmul.f32 %v1671_v33, %v1658_v12 }
 0x1df   : > { %v1690_v2 = vmul.f32 %v1672_v13, %v1659_v51 }
 0x1e1   : > { %v1552_v10 = vpop.f32.mrf.mxu0  ;;  %v1703_v44 = vpack.c.bf16 %v1690_v2, %v1689_v38 }
 0x1e2   : > { %v1565_v8 = vpop.f32.mrf.mxu1 }
 0x1e3   : > { %1713 = vrot.lane.b32.xlu0 %v1703_v44, %s3034_s26 }
 0x1fd   : > { %v1602_v45 = vpop.f32.mrf.mxu0  ;;  %v1615_v9 = vpop.f32.mrf.mxu1 }
 0x1fe   : > { %v1603_v24 = vadd.f32 %v1602_v45, %v1300_v57  ;;  %v1616_v16 = vadd.f32 %v1615_v9, %v1300_v57 }
 0x200   : > { %v1662_v29 = vmax.f32 %v1603_v24, 0.0  ;;  %v1663_v11 = vmax.f32 %v1616_v16, 0.0 }
 0x202   : > { %v1693_v54 = vmul.f32 %v1675_v43, %v1662_v29  ;;  %v1694_v18 = vmul.f32 %v1676_v0, %v1663_v11 }
 0x204   : > { %v1628_v28 = vpop.f32.mrf.mxu2  ;;  %v1705_v4 = vpack.c.bf16 %v1694_v18, %v1693_v54 }
 0x205   : > { %v1641_v32 = vpop.f32.mrf.mxu3  ;;  %v1629_v22 = vadd.f32 %v1628_v28, %v1300_v57  ;;  %v1604_v36 = vpop.f32.mrf.mxu0 }
 0x206   : > { %v1642_v31 = vadd.f32 %v1641_v32, %v1300_v57  ;;  %v1617_v23 = vpop.f32.mrf.mxu1  ;;  %1717 = vrot.lane.b32.xlu2 %v1705_v4, %s3034_s26 }
 0x207   : > { %v1664_v56 = vmax.f32 %v1629_v22, 0.0 }
 0x208   : > { %v1665_v60 = vmax.f32 %v1642_v31, 0.0 }
 0x209   : > { %v1695_v27 = vmul.f32 %v1677_v26, %v1664_v56 }
 0x20a   : > { %v1696_v30 = vmul.f32 %v1678_v14, %v1665_v60 }
 0x20c   : > { %v1706_v39 = vpack.c.bf16 %v1696_v30, %v1695_v27  ;;  %v1630_v21 = vpop.f32.mrf.mxu2 }
 0x20d   : > { %v1643_v41 = vpop.f32.mrf.mxu3 }
 0x20e   : > { %1719 = vrot.lane.b32.xlu0 %v1706_v39, %s3034_s26 }
 0x211   : > { %v1654_v50 = vpop.f32.mrf.mxu0 }
 0x212   : > { %v1655_v5 = vadd.f32 %v1654_v50, %v1300_v57 }
 0x214   : > { %v1666_v49 = vmax.f32 %v1655_v5, 0.0 }
 0x216   : > { %v1697_v25 = vmul.f32 %v3016_v63, %v1666_v49 }
 0x218   : > { %v1707_v40 = vpack.c.bf16 %v1697_v25, %v1697_v25 }
 0x219   : > { %v1656_v35 = vpop.f32.mrf.mxu0 }
 0x21a   : > { %1721 = vrot.lane.b32.xlu1 %v1707_v40, %s3034_s26 }
 0x24e   : > { %v1716_v37 = vpop.permute.xlu1 %1715 }
 0x24f   : > { %v1724_v6 = vrot.slane %v1716_v37, 4 }
 0x255   : > { %v1714_v58 = vpop.permute.xlu0 %1713 }
 0x256   : > { %v1723_v48 = vrot.slane %v1714_v58, 4 }
 0x258   : > { %v1729_v57 = vsel %vm1728_vm12, %v1723_v48, %v1714_v58  ;;  %v1730_v34 = vsel %vm363_vm0, %v1723_v48, %v1724_v6 }
 0x259   : > { %v1731_v61 = vsel %vm1728_vm12, %v1730_v34, %v1716_v37  ;;  %1746 = vst.msk [vmem:[#allocation3] sm:$0xff] %vm1745_vm13, %v1729_v57 }
 0x25a   : > { %1759 = vst [vmem:[#allocation4 + $0x8] sm:$0xff] %v1731_v61 }
 0x260   : > { %v1753_v62 = vld [vmem:[#allocation3] sm:$0xff]  ;;  %v1718_v7 = vpop.permute.xlu2 %1717 }
 0x261   : > { %1758 = vst [vmem:[#allocation4] sm:$0xff] %v1753_v62  ;;  %2081 = vrot.lane.b32.xlu2 %v1753_v62, %s3032_s17  ;;  %2037 = vrot.lane.b32.xlu0 %v1753_v62, %s3031_s16  ;;  %v1725_v55 = vrot.slane %v1718_v7, 4 }
 0x262   : > { %1993 = vrot.lane.b32.xlu1 %v1753_v62, %s3030_s12 }
 0x263   : > { %v1732_v47 = vsel %vm363_vm0, %v1724_v6, %v1725_v55 }
 0x264   : > { %v1733_v42 = vsel %vm1728_vm12, %v1732_v47, %v1718_v7 }
 0x265   : > { %1760 = vst [vmem:[#allocation4 + $0x10] sm:$0xff] %v1733_v42 }
 0x269   : > { %1949 = vrot.lane.b32.xlu2 %v1753_v62, %s3029_s11  ;;  %1905 = vrot.lane.b32.xlu0 %v1753_v62, %s3028_s10 }
 0x26a   : > { %1817 = vrot.lane.b32.xlu1 %v1753_v62, %s3026_s8 }
 0x271   : > { %1861 = vrot.lane.b32.xlu0 %v1753_v62, %s3027_s9  ;;  %1773 = vrot.lane.b32.xlu2 %v1753_v62, %s3025_s30 }
 0x272   : > { %2039 = vrot.lane.b32.xlu1 %v1731_v61, %s3031_s16 }
 0x279   : > { %2083 = vrot.lane.b32.xlu0 %v1731_v61, %s3032_s17  ;;  %1995 = vrot.lane.b32.xlu2 %v1731_v61, %s3030_s12 }
 0x27a   : > { %1907 = vrot.lane.b32.xlu1 %v1731_v61, %s3028_s10 }
 0x280   : > { %v1720_v20 = vpop.permute.xlu0 %1719 }
 0x281   : > { %v1726_v59 = vrot.slane %v1720_v20, 4  ;;  %1951 = vrot.lane.b32.xlu0 %v1731_v61, %s3029_s11  ;;  %1819 = vrot.lane.b32.xlu2 %v1731_v61, %s3026_s8 }
 0x282   : > { %1863 = vrot.lane.b32.xlu1 %v1731_v61, %s3027_s9 }
 0x283   : > { %v1734_v52 = vsel %vm363_vm0, %v1725_v55, %v1726_v59 }
 0x284   : > { %v1735_v15 = vsel %vm1728_vm12, %v1734_v52, %v1720_v20 }
 0x285   : > { %1761 = vst [vmem:[#allocation4 + $0x18] sm:$0xff] %v1735_v15 }
 0x289   : > { %1775 = vrot.lane.b32.xlu0 %v1731_v61, %s3025_s30  ;;  %2085 = vrot.lane.b32.xlu2 %v1733_v42, %s3032_s17 }
 0x28a   : > { %2041 = vrot.lane.b32.xlu1 %v1733_v42, %s3031_s16 }
 0x28c   : > { %v1722_v17 = vpop.permute.xlu1 %1721 }
 0x28d   : > { %v1727_v1 = vrot.slane %v1722_v17, 4 }
 0x28f   : > { %v1736_v19 = vsel %vm363_vm0, %v1726_v59, %v1727_v1 }
 0x290   : > { %v1737_v46 = vsel %vm1728_vm12, %v1736_v19, %v1722_v17 }
 0x291   : > { %1752 = vst.msk [vmem:[#allocation3 + $0x20] sm:$0xff] %vm1751_vm15, %v1737_v46  ;;  %1997 = vrot.lane.b32.xlu0 %v1733_v42, %s3030_s12  ;;  %1953 = vrot.lane.b32.xlu2 %v1733_v42, %s3029_s11 }
 0x292   : > { %1909 = vrot.lane.b32.xlu1 %v1733_v42, %s3028_s10 }
 0x298   : > { %v1757_v33 = vld [vmem:[#allocation3 + $0x20] sm:$0xf] }
 0x299   : > { %1762 = vst [vmem:[#allocation4 + $0x20] sm:$0xf] %v1757_v33  ;;  %1865 = vrot.lane.b32.xlu0 %v1733_v42, %s3027_s9  ;;  %1821 = vrot.lane.b32.xlu2 %v1733_v42, %s3026_s8  ;;  %v2075_v3 = vld [vmem:[#allocation3 + $0x20] sm:$0xff] }
 0x29a   : > { %1777 = vrot.lane.b32.xlu1 %v1733_v42, %s3025_s30 }
 0x2a1   : > { %2087 = vrot.lane.b32.xlu2 %v1735_v15, %s3032_s17  ;;  %1999 = vrot.lane.b32.xlu0 %v1735_v15, %s3030_s12 }
 0x2a2   : > { %2043 = vrot.lane.b32.xlu1 %v1735_v15, %s3031_s16 }
 0x2a9   : > { %1955 = vrot.lane.b32.xlu0 %v1735_v15, %s3029_s11  ;;  %1911 = vrot.lane.b32.xlu2 %v1735_v15, %s3028_s10 }
 0x2aa   : > { %2089 = vrot.lane.b32.xlu1 %v2075_v3, %s3032_s17 }
 0x2b1   : > { %1867 = vrot.lane.b32.xlu0 %v1735_v15, %s3027_s9  ;;  %1823 = vrot.lane.b32.xlu2 %v1735_v15, %s3026_s8 }
 0x2b2   : > { %2001 = vrot.lane.b32.xlu1 %v2075_v3, %s3030_s12 }
 0x2b9   : > { %2045 = vrot.lane.b32.xlu2 %v2075_v3, %s3031_s16  ;;  %1779 = vrot.lane.b32.xlu0 %v1735_v15, %s3025_s30 }
 0x2ba   : > { %1913 = vrot.lane.b32.xlu1 %v2075_v3, %s3028_s10  ;;  %s2995_s10 = smul.u32 72, %s4006_s25 }
 0x2bb   : > { %v2082_v53 = vpop.permute.xlu2 %2081 }
 0x2bc   : > { %v2091_v36 = vrot.slane %v2082_v53, 4  ;;  %s3983_s13 = scalar_lea.vmem %s4004_s7, %s2995_s10 }
 0x2c1   : > { %1957 = vrot.lane.b32.xlu2 %v2075_v3, %s3029_s11  ;;  %1825 = vrot.lane.b32.xlu0 %v2075_v3, %s3026_s8 }
 0x2c2   : > { %1869 = vrot.lane.b32.xlu1 %v2075_v3, %s3027_s9 }
 0x2c3   : > { %v3723_v13 = vpop.permute.xlu2 %1949 }
 0x2c4   : > { %v1959_v57 = vrot.slane %v3723_v13, 4 }
 0x2c9   : > { %1781 = vrot.lane.b32.xlu2 %v2075_v3, %s3025_s30 }
 0x2cb   : > { %v3726_v12 = vpop.permute.xlu2 %1773 }
 0x2d3   : > { %v3728_v51 = vpop.permute.xlu2 %1995  ;;  %v2038_v38 = vpop.permute.xlu0 %2037 }
 0x2d4   : > { %v1994_v2 = vpop.permute.xlu1 %1993  ;;  %v2004_v10 = vrot.slane %v3728_v51, 4  ;;  %v2047_v32 = vrot.slane %v2038_v38, 4 }
 0x2d5   : > { %v2003_v44 = vrot.slane %v1994_v2, 4 }
 0x2d7   : > { %v2008_v8 = vsel %vm363_vm0, %v2003_v44, %v2004_v10 }
 0x2d8   : > { %v2009_v45 = vsel %vm647_vm6, %v1994_v2, %v2008_v8 }
 0x2d9   : > { %2022 = vst [vmem:[#allocation4 + $0xd8] sm:$0xff] %v2009_v45 }
 0x2db   : > { %v3735_v9 = vpop.permute.xlu2 %1819  ;;  %v1906_v24 = vpop.permute.xlu0 %1905 }
 0x2dc   : > { %v1818_v43 = vpop.permute.xlu1 %1817  ;;  %v1828_v16 = vrot.slane %v3735_v9, 4  ;;  %v1915_v27 = vrot.slane %v1906_v24, 4 }
 0x2dd   : > { %v1827_v0 = vrot.slane %v1818_v43, 4 }
 0x2df   : > { %v1832_v29 = vsel %vm363_vm0, %v1827_v0, %v1828_v16 }
 0x2e0   : > { %v1833_v11 = vsel %vm421_vm2, %v1818_v43, %v1832_v29  ;;  %v2877_v47 = vld [vmem:[#allocation4 + $0xd8] sm:$0xf]  ;;  %v2985_v2 = vld [vmem:[#allocation4 + $0xdc] sm:$0xf] }
 0x2e1   : > { %1846 = vst [vmem:[#allocation4 + $0x48] sm:$0xff] %v1833_v11 }
 0x2e3   : > { %v3740_v54 = vpop.permute.xlu2 %2085  ;;  %v1862_v18 = vpop.permute.xlu0 %1861 }
 0x2e4   : > { %v3742_v28 = vpop.permute.xlu1 %2039  ;;  %v2093_v23 = vrot.slane %v3740_v54, 4  ;;  %v1871_v34 = vrot.slane %v1862_v18, 4 }
 0x2e5   : > { %v2048_v4 = vrot.slane %v3742_v28, 4 }
 0x2e7   : > { %v2052_v22 = vsel %vm363_vm0, %v2047_v32, %v2048_v4 }
 0x2e8   : > { %v2053_v26 = vsel %vm704_vm7, %v2038_v38, %v2052_v22 }
 0x2e9   : > { %2066 = vst [vmem:[#allocation4 + $0xfc] sm:$0xff] %v2053_v26 }
 0x2eb   : > { %v3749_v31 = vpop.permute.xlu2 %1953  ;;  %v2084_v14 = vpop.permute.xlu0 %2083 }
 0x2ec   : > { %v3752_v56 = vpop.permute.xlu1 %1907  ;;  %v2092_v60 = vrot.slane %v2084_v14, 4  ;;  %v1961_v61 = vrot.slane %v3749_v31, 4 }
 0x2ed   : > { %v1916_v30 = vrot.slane %v3752_v56, 4 }
 0x2ee   : > { %v2096_v39 = vsel %vm363_vm0, %v2091_v36, %v2092_v60  ;;  %v2098_v21 = vsel %vm363_vm0, %v2092_v60, %v2093_v23 }
 0x2ef   : > { %v1920_v41 = vsel %vm363_vm0, %v1915_v27, %v1916_v30  ;;  %v2097_v50 = vsel %vm760_vm8, %v2082_v53, %v2096_v39  ;;  %v2099_v5 = vsel %vm760_vm8, %v2084_v14, %v2098_v21 }
 0x2f0   : > { %v1921_v63 = vsel %vm534_vm4, %v1906_v24, %v1920_v41  ;;  %v2284_v49 = vunpack.c.l.b16 %v2097_v50  ;;  %v2285_v25 = vunpack.c.h.b16 %v2097_v50  ;;  %v2286_v40 = vunpack.c.l.b16 %v2099_v5  ;;  %v2989_v48 = vld [vmem:[#allocation4 + $0xf8] sm:$0xf0]  ;;  %v2879_v17 = vld [vmem:[#allocation4 + $0xfc] sm:$0xf0] }
 0x2f1   : > { %1934 = vst [vmem:[#allocation4 + $0x90] sm:$0xff] %v1921_v63  ;;  %v2287_v35 = vunpack.c.h.b16 %v2099_v5  ;;  %v2878_v33 = vor.u32 %v2989_v48, %v2877_v47  ;;  %v2882_v24 = vor.u32 %v2985_v2, %v2879_v17  ;;  %v2958_v17 = vld [vmem:[#allocation4 + $0x4] sm:$0xf] }
 0x2f2   : > { %v2329_v37 = vpack.c.b16 %v2284_v49, %v2284_v49  ;;  %v2330_v6 = vpack.c.b16 %v2285_v25, %v2285_v25  ;;  %v2331_v58 = vpack.c.b16 %v2286_v40, %v2286_v40 }
 0x2f3   : > { %v3767_v62 = vpop.permute.xlu2 %1821  ;;  %v1952_v7 = vpop.permute.xlu0 %1951  ;;  %v2332_v55 = vpack.c.b16 %v2287_v35, %v2287_v35 }
 0x2f4   : > { %v3769_v42 = vpop.permute.xlu1 %1863  ;;  %v1829_v20 = vrot.slane %v3767_v62, 4  ;;  %v1960_v59 = vrot.slane %v1952_v7, 4  ;;  %v2378_v52 = vsel %vm363_vm0, %v2329_v37, 0  ;;  %v2381_v15 = vsel %vm363_vm0, %v2330_v6, 0  ;;  %v2805_v6 = vld [vmem:[#allocation4 + $0x48] sm:$0xf] }
 0x2f5   : > { %v1872_v1 = vrot.slane %v3769_v42, 4  ;;  %2407 = vmatpush.bf16.msra.mxu1 %v2378_v52  ;;  %2420 = vmatpush.bf16.msra.mxu2 %v2381_v15  ;;  %v2384_v19 = vsel %vm363_vm0, %v2331_v58, 0  ;;  %v2387_v46 = vsel %vm363_vm0, %v2332_v55, 0  ;;  %v2967_v58 = vld [vmem:[#allocation4 + $0x4c] sm:$0xf] }
 0x2f6   : > { %v1834_v3 = vsel %vm363_vm0, %v1828_v16, %v1829_v20  ;;  %v1964_v53 = vsel %vm363_vm0, %v1959_v57, %v1960_v59  ;;  %v1966_v38 = vsel %vm363_vm0, %v1960_v59, %v1961_v61  ;;  %2433 = vmatpush.bf16.msra.mxu3 %v2384_v19  ;;  %2446 = vmatpush.bf16.msrb.mxu0 %v2387_v46 }
 0x2f7   : > { %v1876_v44 = vsel %vm363_vm0, %v1871_v34, %v1872_v1  ;;  %v1835_v8 = vsel %vm421_vm2, %v3735_v9, %v1834_v3  ;;  %v1965_v45 = vsel %vm591_vm5, %v3723_v13, %v1964_v53  ;;  %v1967_v16 = vsel %vm591_vm5, %v1952_v7, %v1966_v38 }
 0x2f8   : > { %v1877_v43 = vsel %vm478_vm3, %v1862_v18, %v1876_v44  ;;  %1847 = vst [vmem:[#allocation4 + $0x50] sm:$0xff] %v1835_v8  ;;  %v1783_v9 = vrot.slane %v3726_v12, 4  ;;  %v2976_v39 = vld [vmem:[#allocation4 + $0x94] sm:$0xf] }
 0x2f9   : > { %1890 = vst [vmem:[#allocation4 + $0x6c] sm:$0xff] %v1877_v43  ;;  %2408 = vmatpush.bf16.msra.mxu1 %v2878_v33  ;;  %2421 = vmatpush.bf16.msra.mxu2 %v2882_v24 }
 0x2fa   : > { %1978 = vst [vmem:[#allocation4 + $0xb4] sm:$0xff] %v1965_v45  ;;  %v3857_v45 = vld [vmem:[%s4002_s5] sm:$0xf] }
 0x2fb   : > { %1979 = vst [vmem:[#allocation4 + $0xbc] sm:$0xff] %v1967_v16  ;;  %v3793_v0 = vpop.permute.xlu2 %2087  ;;  %v3795_v29 = vpop.permute.xlu0 %1775 }
 0x2fc   : > { %v3798_v11 = vpop.permute.xlu1 %2041  ;;  %v2094_v13 = vrot.slane %v3793_v0, 4  ;;  %v1784_v18 = vrot.slane %v3795_v29, 4 }
 0x2fd   : > { %v2049_v32 = vrot.slane %v3798_v11, 4 }
 0x2fe   : > { %v2100_v22 = vsel %vm363_vm0, %v2093_v23, %v2094_v13  ;;  %v1788_v26 = vsel %vm363_vm0, %v1783_v9, %v1784_v18  ;;  %v2841_v23 = vld [vmem:[#allocation4 + $0x90] sm:$0xf] }
 0x2ff   : > { %v2054_v14 = vsel %vm363_vm0, %v2048_v4, %v2049_v32  ;;  %v2101_v36 = vsel %vm760_vm8, %v3740_v54, %v2100_v22  ;;  %v1789_v60 = vsel %vm365_vm1, %v3726_v12, %v1788_v26 }
 0x300   : > { %v2055_v27 = vsel %vm704_vm7, %v3742_v28, %v2054_v14  ;;  %1802 = vst [vmem:[#allocation4 + $0x24] sm:$0xff] %v1789_v60  ;;  %v2971_v49 = vld [vmem:[#allocation4 + $0x68] sm:$0xf0]  ;;  %v2807_v54 = vld [vmem:[#allocation4 + $0x6c] sm:$0xf0]  ;;  %v2288_v25 = vunpack.c.l.b16 %v2101_v36  ;;  %v2289_v35 = vunpack.c.h.b16 %v2101_v36 }
 0x301   : > { %2067 = vst [vmem:[#allocation4 + $0x104] sm:$0xff] %v2055_v27  ;;  %v2980_v21 = vld [vmem:[#allocation4 + $0xb0] sm:$0xf0]  ;;  %v2843_v41 = vld [vmem:[#allocation4 + $0xb4] sm:$0xf0]  ;;  %v2806_v57 = vor.u32 %v2971_v49, %v2805_v6  ;;  %v2810_v34 = vor.u32 %v2967_v58, %v2807_v54 }
 0x302   : > { %v2842_v50 = vor.u32 %v2980_v21, %v2841_v23  ;;  %v2846_v5 = vor.u32 %v2976_v39, %v2843_v41  ;;  %v2333_v59 = vpack.c.b16 %v2288_v25, %v2288_v25  ;;  %v2334_v19 = vpack.c.b16 %v2289_v35, %v2289_v35  ;;  %v2981_v21 = vld [vmem:[#allocation4 + $0xb8] sm:$0xf0]  ;;  %v2851_v41 = vld [vmem:[#allocation4 + $0xbc] sm:$0xf0] }
 0x303   : > { %v3822_v63 = vpop.permute.xlu2 %1911  ;;  %v3824_v4 = vpop.permute.xlu0 %1997 }
 0x304   : > { %v1910_v40 = vpop.permute.xlu1 %1909  ;;  %v1918_v12 = vrot.slane %v3822_v63, 4  ;;  %v2005_v28 = vrot.slane %v3824_v4, 4  ;;  %2409 = vmatpush.bf16.msra.mxu1 %v2842_v50  ;;  %2422 = vmatpush.bf16.msra.mxu2 %v2846_v5  ;;  %v2390_v44 = vsel %vm363_vm0, %v2333_v59, 0  ;;  %v2393_v8 = vsel %vm363_vm0, %v2334_v19, 0 }
 0x305   : > { %v1917_v37 = vrot.slane %v1910_v40, 4 }
 0x306   : > { %v2010_v48 = vsel %vm363_vm0, %v2004_v10, %v2005_v28  ;;  %v2769_v10 = vld [vmem:[#allocation4] sm:$0xf] }
 0x307   : > { %v1922_v7 = vsel %vm363_vm0, %v1916_v30, %v1917_v37  ;;  %v1924_v55 = vsel %vm363_vm0, %v1917_v37, %v1918_v12  ;;  %v2011_v47 = vsel %vm647_vm6, %v3728_v51, %v2010_v48  ;;  %v2962_v30 = vld [vmem:[#allocation4 + $0x20] sm:$0xf0]  ;;  %v2771_v46 = vld [vmem:[#allocation4 + $0x24] sm:$0xf0] }
 0x308   : > { %v1923_v52 = vsel %vm534_vm4, %v3752_v56, %v1922_v7  ;;  %v1925_v15 = vsel %vm534_vm4, %v1910_v40, %v1924_v55  ;;  %2023 = vst [vmem:[#allocation4 + $0xe0] sm:$0xff] %v2011_v47  ;;  %2410 = vmatpush.bf16.msra.mxu1 %v2806_v57  ;;  %2423 = vmatpush.bf16.msra.mxu2 %v2810_v34  ;;  %v2990_v9 = vld [vmem:[#allocation4 + $0x100] sm:$0xf0]  ;;  %v2887_v60 = vld [vmem:[#allocation4 + $0x104] sm:$0xf0] }
 0x309   : > { %1935 = vst [vmem:[#allocation4 + $0x98] sm:$0xff] %v1923_v52  ;;  %v2770_v33 = vor.u32 %v2962_v30, %v2769_v10  ;;  %v2774_v3 = vor.u32 %v2958_v17, %v2771_v46  ;;  %v2813_v34 = vld [vmem:[#allocation4 + $0x50] sm:$0xf]  ;;  %v2777_v30 = vld [vmem:[#allocation4 + $0x8] sm:$0xf] }
 0x30a   : > { %1936 = vst [vmem:[#allocation4 + $0xa0] sm:$0xff] %v1925_v15  ;;  %v2161_v52 = vld [vmem:[%s4003_s6] sm:$0xff] }
 0x30b   : > { %v3844_v53 = vpop.permute.xlu2 %1823  ;;  %v3846_v51 = vpop.permute.xlu0 %1865  ;;  %2164 = vperm.xlu0 %3015, %v2161_v52  }
 0x30c   : > { %v3848_v38 = vpop.permute.xlu1 %1777  ;;  %v1830_v56 = vrot.slane %v3844_v53, 4  ;;  %v1873_v2 = vrot.slane %v3846_v51, 4  ;;  %2411 = vmatpush.bf16.msra.mxu1 %v2770_v33  ;;  %2424 = vmatpush.bf16.msra.mxu2 %v2774_v3  ;;  %v2959_v3 = vld [vmem:[#allocation4 + $0xc] sm:$0xf] }
 0x30d   : > { %v1785_v24 = vrot.slane %v3848_v38, 4 }
 0x30e   : > { %v1836_v43 = vsel %vm363_vm0, %v1829_v20, %v1830_v56  ;;  %v1878_v16 = vsel %vm363_vm0, %v1872_v1, %v1873_v2 }
 0x30f   : > { %v1790_v22 = vsel %vm363_vm0, %v1784_v18, %v1785_v24  ;;  %v1837_v26 = vsel %vm421_vm2, %v3767_v62, %v1836_v43  ;;  %v1879_v14 = vsel %vm478_vm3, %v3769_v42, %v1878_v16  ;;  %v2885_v20 = vld [vmem:[#allocation4 + $0xe0] sm:$0xf]  ;;  %v2986_v36 = vld [vmem:[#allocation4 + $0xe4] sm:$0xf]  ;;  %2911 = vmatmul.msk.bf16.vlgmr.msra.gmra.mxu1 %vm1509_vm9, %v3857_v45  ;;  %2912 = vmatmul.msk.bf16.vlgmr.msra.gmra.mxu2 %vm1509_vm9, %v3857_v45 }
 0x310   : > { %2459 = vmatpush.bf16.msrb.mxu1 %v2390_v44  ;;  %2472 = vmatpush.bf16.msrb.mxu2 %v2393_v8  ;;  %v1791_v1 = vsel %vm365_vm1, %v3795_v29, %v1790_v22  ;;  %1848 = vst [vmem:[#allocation4 + $0x58] sm:$0xff] %v1837_v26  ;;  %v2886_v18 = vor.u32 %v2990_v9, %v2885_v20  ;;  %v2849_v62 = vld [vmem:[#allocation4 + $0x98] sm:$0xf]  ;;  %v2977_v23 = vld [vmem:[#allocation4 + $0x9c] sm:$0xf] }
 0x311   : > { %v2890_v27 = vor.u32 %v2986_v36, %v2887_v60  ;;  %1803 = vst [vmem:[#allocation4 + $0x2c] sm:$0xff] %v1791_v1  ;;  %v2850_v54 = vor.u32 %v2981_v21, %v2849_v62  ;;  %v2854_v29 = vor.u32 %v2977_v23, %v2851_v41 }
 0x312   : > { %1891 = vst [vmem:[#allocation4 + $0x74] sm:$0xff] %v1879_v14  ;;  %2434 = vmatpush.bf16.msra.mxu3 %v2886_v18 }
 0x313   : > { %2447 = vmatpush.bf16.msrb.mxu0 %v2890_v27  ;;  %v2046_v42 = vpop.permute.xlu2 %2045  ;;  %v3885_v39 = vpop.permute.xlu0 %1999 }
 0x314   : > { %v2044_v50 = vpop.permute.xlu1 %2043  ;;  %v2051_v5 = vrot.slane %v2046_v42, 4  ;;  %v2006_v49 = vrot.slane %v3885_v39, 4 }
 0x315   : > { %v2050_v25 = vrot.slane %v2044_v50, 4 }
 0x316   : > { %v2060_v40 = vsel %vm704_vm7, %v2046_v42, %v2051_v5  ;;  %v2012_v35 = vsel %vm363_vm0, %v2005_v28, %v2006_v49  ;;  %2435 = vmatpush.bf16.msra.mxu3 %v2850_v54  ;;  %v2968_v28 = vld [vmem:[#allocation4 + $0x54] sm:$0xf] }
 0x317   : > { %2448 = vmatpush.bf16.msrb.mxu0 %v2854_v29  ;;  %v2056_v37 = vsel %vm363_vm0, %v2049_v32, %v2050_v25  ;;  %v2058_v6 = vsel %vm363_vm0, %v2050_v25, %v2051_v5  ;;  %2070 = vst [vmem:[#allocation4 + $0x11c] sm:$0xf] %v2060_v40  ;;  %v2013_v58 = vsel %vm647_vm6, %v3824_v4, %v2012_v35 }
 0x318   : > { %v2057_v48 = vsel %vm704_vm7, %v3798_v11, %v2056_v37  ;;  %v2059_v57 = vsel %vm704_vm7, %v2044_v50, %v2058_v6  ;;  %2024 = vst [vmem:[#allocation4 + $0xe8] sm:$0xff] %v2013_v58  ;;  %v2963_v59 = vld [vmem:[#allocation4 + $0x28] sm:$0xf0]  ;;  %v2779_v10 = vld [vmem:[#allocation4 + $0x2c] sm:$0xf0] }
 0x319   : > { %2068 = vst [vmem:[#allocation4 + $0x10c] sm:$0xff] %v2057_v48  ;;  %v2972_v7 = vld [vmem:[#allocation4 + $0x70] sm:$0xf0]  ;;  %v2815_v55 = vld [vmem:[#allocation4 + $0x74] sm:$0xf0]  ;;  %v2778_v33 = vor.u32 %v2963_v59, %v2777_v30  ;;  %v2782_v16 = vor.u32 %v2959_v3, %v2779_v10 }
 0x31a   : > { %2069 = vst [vmem:[#allocation4 + $0x114] sm:$0xff] %v2059_v57  ;;  %v2814_v47 = vor.u32 %v2972_v7, %v2813_v34  ;;  %v2818_v32 = vor.u32 %v2968_v28, %v2815_v55  ;;  %v2857_v48 = vld [vmem:[#allocation4 + $0xa0] sm:$0xf]  ;;  %v2978_v57 = vld [vmem:[#allocation4 + $0xa4] sm:$0xf] }
 0x31b   : > { %v1958_v4 = vpop.permute.xlu2 %1957  ;;  %v1956_v15 = vpop.permute.xlu0 %1955  ;;  %v2969_v10 = vld [vmem:[#allocation4 + $0x5c] sm:$0xf] }
 0x31c   : > { %2436 = vmatpush.bf16.msra.mxu3 %v2814_v47  ;;  %2449 = vmatpush.bf16.msrb.mxu0 %v2818_v32  ;;  %v2090_v11 = vpop.permute.xlu1 %2089  ;;  %v1963_v17 = vrot.slane %v1958_v4, 4  ;;  %v1962_v19 = vrot.slane %v1956_v15, 4 }
 0x31d   : > { %v2095_v46 = vrot.slane %v2090_v11, 4 }
 0x31e   : > { %v1972_v44 = vsel %vm591_vm5, %v1958_v4, %v1963_v17  ;;  %v1968_v8 = vsel %vm363_vm0, %v1961_v61, %v1962_v19  ;;  %v1970_v43 = vsel %vm363_vm0, %v1962_v19, %v1963_v17 }
 0x31f   : > { %v2102_v9 = vsel %vm363_vm0, %v2094_v13, %v2095_v46  ;;  %v2104_v22 = vsel %vm760_vm8, %v2090_v11, %v2095_v46  ;;  %1982 = vst [vmem:[#allocation4 + $0xd4] sm:$0xf] %v1972_v44  ;;  %v1969_v26 = vsel %vm591_vm5, %v3749_v31, %v1968_v8  ;;  %v2893_v14 = vld [vmem:[#allocation4 + $0xe8] sm:$0xf]  ;;  %v2987_v20 = vld [vmem:[#allocation4 + $0xec] sm:$0xf]  ;;  %v1971_v61 = vsel %vm591_vm5, %v1956_v15, %v1970_v43 }
 0x320   : > { %v2103_v36 = vsel %vm760_vm8, %v3793_v0, %v2102_v9  ;;  %2114 = vst [vmem:[#allocation4 + $0x140] sm:$0xf] %v2104_v22  ;;  %2437 = vmatpush.bf16.msra.mxu3 %v2778_v33  ;;  %2450 = vmatpush.bf16.msrb.mxu0 %v2782_v16  ;;  %v2991_v60 = vld [vmem:[#allocation4 + $0x108] sm:$0xf0]  ;;  %v2895_v1 = vld [vmem:[#allocation4 + $0x10c] sm:$0xf0] }
 0x321   : > { %v2894_v18 = vor.u32 %v2991_v60, %v2893_v14  ;;  %v2898_v13 = vor.u32 %v2987_v20, %v2895_v1  ;;  %v2290_v27 = vunpack.c.l.b16 %v2103_v36  ;;  %v2291_v62 = vunpack.c.h.b16 %v2103_v36  ;;  %1980 = vst [vmem:[#allocation4 + $0xc4] sm:$0xff] %v1969_v26  ;;  %v2821_v15 = vld [vmem:[#allocation4 + $0x58] sm:$0xf]  ;;  %v2992_v11 = vld [vmem:[#allocation4 + $0x110] sm:$0xf0] }
 0x322   : > { %1981 = vst [vmem:[#allocation4 + $0xcc] sm:$0xff] %v1971_v61  ;;  %v2903_v17 = vld [vmem:[#allocation4 + $0x114] sm:$0xf0]  ;;  %v2785_v1 = vld [vmem:[#allocation4 + $0x10] sm:$0xf] }
 0x323   : > { %2460 = vmatpush.bf16.msrb.mxu1 %v2894_v18  ;;  %2473 = vmatpush.bf16.msrb.mxu2 %v2898_v13  ;;  %v1782_v31 = vpop.permute.xlu2 %1781  ;;  %v3920_v23 = vpop.permute.xlu0 %1867  ;;  %v2335_v42 = vpack.c.b16 %v2290_v27, %v2290_v27  ;;  %v2336_v0 = vpack.c.b16 %v2291_v62, %v2291_v62  ;;  %v2960_v18 = vld [vmem:[#allocation4 + $0x14] sm:$0xf] }
 0x324   : > { %v2002_v21 = vpop.permute.xlu1 %2001  ;;  %v1787_v41 = vrot.slane %v1782_v31, 4  ;;  %v1874_v50 = vrot.slane %v3920_v23, 4  ;;  %2913 = vmatmul.msk.bf16.vlgmr.msra.gmra.mxu3 %vm1509_vm9, %v3857_v45  ;;  %2914 = vmatmul.msk.bf16.vlgmr.msrb.gmra.mxu0 %vm1509_vm9, %v3857_v45 }
 0x325   : > { %v2007_v5 = vrot.slane %v2002_v21, 4  ;;  %v2396_v54 = vsel %vm363_vm0, %v2335_v42, 0  ;;  %v2399_v29 = vsel %vm363_vm0, %v2336_v0, 0 }
 0x326   : > { %v1796_v25 = vsel %vm365_vm1, %v1782_v31, %v1787_v41  ;;  %v1880_v40 = vsel %vm363_vm0, %v1873_v2, %v1874_v50  ;;  %2485 = vmatpush.bf16.msrb.mxu3 %v2396_v54  ;;  %2498 = vmatpush.bf16.msra.mxu0 %v2399_v29 }
 0x327   : > { %v2014_v35 = vsel %vm363_vm0, %v2006_v49, %v2007_v5  ;;  %v2016_v37 = vsel %vm647_vm6, %v2002_v21, %v2007_v5  ;;  %1806 = vst [vmem:[#allocation4 + $0x44] sm:$0xf] %v1796_v25  ;;  %v1881_v6 = vsel %vm478_vm3, %v3846_v51, %v1880_v40  ;;  %v2160_v19 = vld [vmem:[#allocation4 + $0x140] sm:$0xf] }
 0x328   : > { %v2015_v58 = vsel %vm647_vm6, %v3885_v39, %v2014_v35  ;;  %2026 = vst [vmem:[#allocation4 + $0xf8] sm:$0xf] %v2016_v37  ;;  %v2982_v2 = vld [vmem:[#allocation4 + $0xc0] sm:$0xf0]  ;;  %v2859_v34 = vld [vmem:[#allocation4 + $0xc4] sm:$0xf0]  ;;  %v2292_v22 = vunpack.c.l.b16 %v2160_v19 }
 0x329   : > { %2025 = vst [vmem:[#allocation4 + $0xf0] sm:$0xff] %v2015_v58  ;;  %v2858_v28 = vor.u32 %v2982_v2, %v2857_v48  ;;  %v2862_v7 = vor.u32 %v2978_v57, %v2859_v34  ;;  %v2983_v13 = vld [vmem:[#allocation4 + $0xc8] sm:$0xf0]  ;;  %v2867_v27 = vld [vmem:[#allocation4 + $0xcc] sm:$0xf0] }
 0x32a   : > { %1892 = vst [vmem:[#allocation4 + $0x7c] sm:$0xff] %v1881_v6  ;;  %v2337_v42 = vpack.c.b16 %v2292_v22, %v2292_v22  ;;  %v2984_v2 = vld [vmem:[#allocation4 + $0xd0] sm:$0xf0] }
 0x32b   : > { %v1780_v55 = vpop.permute.xlu0 %1779  ;;  %2461 = vmatpush.bf16.msrb.mxu1 %v2858_v28  ;;  %2474 = vmatpush.bf16.msrb.mxu2 %v2862_v7 }
 0x32c   : > { %v1914_v49 = vpop.permute.xlu1 %1913  ;;  %v1786_v47 = vrot.slane %v1780_v55, 4  ;;  %v2402_v54 = vsel %vm363_vm0, %v2337_v42, 0 }
 0x32d   : > { %v1919_v32 = vrot.slane %v1914_v49, 4 }
 0x32e   : > { %v1792_v51 = vsel %vm363_vm0, %v1785_v24, %v1786_v47  ;;  %v1794_v39 = vsel %vm363_vm0, %v1786_v47, %v1787_v41  ;;  %v2793_v47 = vld [vmem:[#allocation4 + $0x18] sm:$0xf] }
 0x32f   : > { %v1926_v59 = vsel %vm363_vm0, %v1918_v12, %v1919_v32  ;;  %v1928_v52 = vsel %vm534_vm4, %v1914_v49, %v1919_v32  ;;  %v1793_v4 = vsel %vm365_vm1, %v3848_v38, %v1792_v51  ;;  %v1795_v24 = vsel %vm365_vm1, %v1780_v55, %v1794_v39  ;;  %v2909_v29 = vld [vmem:[#allocation4 + $0xf8] sm:$0xf]  ;;  %v2961_v32 = vld [vmem:[#allocation4 + $0x1c] sm:$0xf] }
 0x330   : > { %v1927_v30 = vsel %vm534_vm4, %v3822_v63, %v1926_v59  ;;  %1938 = vst [vmem:[#allocation4 + $0xb0] sm:$0xf] %v1928_v52  ;;  %v2901_v46 = vld [vmem:[#allocation4 + $0xf0] sm:$0xf]  ;;  %v2988_v33 = vld [vmem:[#allocation4 + $0xf4] sm:$0xf] }
 0x331   : > { %1937 = vst [vmem:[#allocation4 + $0xa8] sm:$0xff] %v1927_v30  ;;  %v2973_v12 = vld [vmem:[#allocation4 + $0x78] sm:$0xf0]  ;;  %v2823_v3 = vld [vmem:[#allocation4 + $0x7c] sm:$0xf0]  ;;  %v2902_v44 = vor.u32 %v2992_v11, %v2901_v46  ;;  %v2906_v8 = vor.u32 %v2988_v33, %v2903_v17 }
 0x332   : > { %1804 = vst [vmem:[#allocation4 + $0x34] sm:$0xff] %v1793_v4  ;;  %v2822_v38 = vor.u32 %v2973_v12, %v2821_v15  ;;  %v2826_v43 = vor.u32 %v2969_v10, %v2823_v3  ;;  %v2966_v52 = vld [vmem:[#allocation4 + $0x40] sm:$0xf0]  ;;  %v2801_v4 = vld [vmem:[#allocation4 + $0x20] sm:$0xf] }
 0x333   : > { %1805 = vst [vmem:[#allocation4 + $0x3c] sm:$0xff] %v1795_v24  ;;  %2486 = vmatpush.bf16.msrb.mxu3 %v2902_v44  ;;  %2499 = vmatpush.bf16.msra.mxu0 %v2906_v8  ;;  %v1826_v16 = vpop.permute.xlu0 %1825  ;;  %v2802_v15 = vor.u32 %v2966_v52, %v2801_v4 }
 0x334   : > { %2462 = vmatpush.bf16.msrb.mxu1 %v2822_v38  ;;  %2475 = vmatpush.bf16.msrb.mxu2 %v2826_v43  ;;  %v1870_v63 = vpop.permute.xlu1 %1869  ;;  %v1831_v9 = vrot.slane %v1826_v16, 4 }
 0x335   : > { %v1875_v26 = vrot.slane %v1870_v63, 4 }
 0x336   : > { %v1838_v14 = vsel %vm363_vm0, %v1830_v56, %v1831_v9  ;;  %v1840_v20 = vsel %vm421_vm2, %v1826_v16, %v1831_v9 }
 0x337   : > { %v1882_v36 = vsel %vm363_vm0, %v1874_v50, %v1875_v26  ;;  %v1884_v61 = vsel %vm478_vm3, %v1870_v63, %v1875_v26  ;;  %v1839_v60 = vsel %vm421_vm2, %v3844_v53, %v1838_v14  ;;  %1850 = vst [vmem:[#allocation4 + $0x68] sm:$0xf] %v1840_v20  ;;  %v2873_v37 = vld [vmem:[#allocation4 + $0xb0] sm:$0xf] }
 0x338   : > { %v1883_v62 = vsel %vm478_vm3, %v3920_v23, %v1882_v36  ;;  %1894 = vst [vmem:[#allocation4 + $0x8c] sm:$0xf] %v1884_v61  ;;  %v2865_v56 = vld [vmem:[#allocation4 + $0xa8] sm:$0xf]  ;;  %v2979_v31 = vld [vmem:[#allocation4 + $0xac] sm:$0xf]  ;;  %v2874_v34 = vor.u32 %v2984_v2, %v2873_v37 }
 0x339   : > { %1893 = vst [vmem:[#allocation4 + $0x84] sm:$0xff] %v1883_v62  ;;  %v2964_v0 = vld [vmem:[#allocation4 + $0x30] sm:$0xf0]  ;;  %v2787_v21 = vld [vmem:[#allocation4 + $0x34] sm:$0xf0]  ;;  %v2866_v41 = vor.u32 %v2983_v13, %v2865_v56  ;;  %v2870_v50 = vor.u32 %v2979_v31, %v2867_v27 }
 0x33a   : > { %1849 = vst [vmem:[#allocation4 + $0x60] sm:$0xff] %v1839_v60  ;;  %v2786_v5 = vor.u32 %v2964_v0, %v2785_v1  ;;  %v2790_v53 = vor.u32 %v2960_v18, %v2787_v21  ;;  %v2993_v23 = vld [vmem:[#allocation4 + $0x118] sm:$0xf0]  ;;  %v2795_v7 = vld [vmem:[#allocation4 + $0x3c] sm:$0xf0] }
 0x33b   : > { %2487 = vmatpush.bf16.msrb.mxu3 %v2866_v41  ;;  %2500 = vmatpush.bf16.msra.mxu0 %v2870_v50  ;;  %v2910_v25 = vor.u32 %v2993_v23, %v2909_v29  ;;  %v2965_v28 = vld [vmem:[#allocation4 + $0x38] sm:$0xf0]  ;;  %v2798_v39 = vor.u32 %v2961_v32, %v2795_v7 }
 0x33c   : > { %2463 = vmatpush.bf16.msrb.mxu1 %v2786_v5  ;;  %2476 = vmatpush.bf16.msrb.mxu2 %v2790_v53  ;;  %v2794_v51 = vor.u32 %v2965_v28, %v2793_v47 }
 0x33e   : > { %v2837_v55 = vld [vmem:[#allocation4 + $0x68] sm:$0xf] }
 0x33f   : > { %2915 = vmatmul.msk.bf16.vlgmr.msrb.gmra.mxu1 %vm1509_vm9, %v3857_v45  ;;  %2916 = vmatmul.msk.bf16.vlgmr.msrb.gmra.mxu2 %vm1509_vm9, %v3857_v45  ;;  %v2975_v49 = vld [vmem:[#allocation4 + $0x88] sm:$0xf0] }
 0x340   : > { %2511 = vmatpush.bf16.msra.mxu1 %v2402_v54  ;;  %v2974_v40 = vld [vmem:[#allocation4 + $0x80] sm:$0xf0]  ;;  %v2831_v35 = vld [vmem:[#allocation4 + $0x84] sm:$0xf0]  ;;  %v2838_v59 = vor.u32 %v2975_v49, %v2837_v55 }
 0x341   : > { %v2829_v6 = vld [vmem:[#allocation4 + $0x60] sm:$0xf]  ;;  %v2970_v58 = vld [vmem:[#allocation4 + $0x64] sm:$0xf] }
 0x342   : > { %v2830_v48 = vor.u32 %v2974_v40, %v2829_v6  ;;  %v2834_v57 = vor.u32 %v2970_v58, %v2831_v35 }
 0x344   : > { %2512 = vmatpush.bf16.msra.mxu1 %v2910_v25  ;;  %2488 = vmatpush.bf16.msrb.mxu3 %v2830_v48 }
 0x345   : > { %2501 = vmatpush.bf16.msra.mxu0 %v2834_v57 }
 0x348   : > { %2513 = vmatpush.bf16.msra.mxu1 %v2874_v34  ;;  %2489 = vmatpush.bf16.msrb.mxu3 %v2794_v51 }
 0x349   : > { %2502 = vmatpush.bf16.msra.mxu0 %v2798_v39 }
 0x34b   : > { %2917 = vmatmul.msk.bf16.vlgmr.msrb.gmra.mxu3 %vm1509_vm9, %v3857_v45 }
 0x34c   : > { %2514 = vmatpush.bf16.msra.mxu1 %v2838_v59  ;;  %2918 = vmatmul.msk.bf16.vlgmr.msra.gmra.mxu0 %vm1509_vm9, %v3857_v45 }
 0x350   : > { %2515 = vmatpush.bf16.msra.mxu1 %v2802_v15 }
 0x353   : > { %2919 = vmatmul.msk.bf16.vlgmr.msra.gmra.mxu1 %vm1509_vm9, %v3857_v45 }
 0x37d   : > { %v2165_v11 = vpop.permute.xlu0 %2164 }
 0x38c   : > { %v2413_v10 = vpop.f32.mrf.mxu1 }
 0x38d   : > { %v2414_v17 = vadd.f32 %v2413_v10, %v2165_v11 }
 0x38f   : > { %v2521_v19 = vmax.f32 %v2414_v17, 0.0 }
 0x391   : > { %2530 = vst [vmem:[%s3983_s13] sm:$0xff] %v2521_v19 }
 0x392   : > { %v2426_v30 = vpop.f32.mrf.mxu2 }
 0x393   : > { %v2427_v24 = vadd.f32 %v2426_v30, %v2165_v11 }
 0x394   : > { %v2415_v46 = vpop.f32.mrf.mxu1 }
 0x395   : > { %v2522_v33 = vmax.f32 %v2427_v24, 0.0 }
 0x397   : > { %2531 = vst [vmem:[%s3983_s13 + $0x8] sm:$0xff] %v2522_v33 }
 0x39a   : > { %v2428_v45 = vpop.f32.mrf.mxu2 }
 0x3a1   : > { %v2452_v12 = vpop.f32.mrf.mxu0 }
 0x3a2   : > { %v2453_v3 = vadd.f32 %v2452_v12, %v2165_v11 }
 0x3a4   : > { %v2524_v44 = vmax.f32 %v2453_v3, 0.0 }
 0x3a6   : > { %2533 = vst [vmem:[%s3983_s13 + $0x18] sm:$0xff] %v2524_v44 }
 0x3a7   : > { %v2439_v8 = vpop.f32.mrf.mxu3 }
 0x3a8   : > { %v2440_v38 = vadd.f32 %v2439_v8, %v2165_v11 }
 0x3a9   : > { %v2454_v43 = vpop.f32.mrf.mxu0 }
 0x3aa   : > { %v2523_v16 = vmax.f32 %v2440_v38, 0.0 }
 0x3ac   : > { %2532 = vst [vmem:[%s3983_s13 + $0x10] sm:$0xff] %v2523_v16 }
 0x3af   : > { %v2441_v63 = vpop.f32.mrf.mxu3 }
 0x3bc   : > { %v2465_v9 = vpop.f32.mrf.mxu1 }
 0x3bd   : > { %v2466_v22 = vadd.f32 %v2465_v9, %v2165_v11 }
 0x3bf   : > { %v2525_v26 = vmax.f32 %v2466_v22, 0.0 }
 0x3c1   : > { %2534 = vst [vmem:[%s3983_s13 + $0x20] sm:$0xff] %v2525_v26 }
 0x3c2   : > { %v2478_v14 = vpop.f32.mrf.mxu2 }
 0x3c3   : > { %v2479_v20 = vadd.f32 %v2478_v14, %v2165_v11 }
 0x3c4   : > { %v2467_v36 = vpop.f32.mrf.mxu1 }
 0x3c5   : > { %v2526_v61 = vmax.f32 %v2479_v20, 0.0 }
 0x3c7   : > { %2535 = vst [vmem:[%s3983_s13 + $0x28] sm:$0xff] %v2526_v61 }
 0x3c9   : > { %v2504_v60 = vpop.f32.mrf.mxu0 }
 0x3ca   : > { %v2505_v1 = vadd.f32 %v2504_v60, %v2165_v11  ;;  %v2480_v18 = vpop.f32.mrf.mxu2 }
 0x3cc   : > { %v2528_v13 = vmax.f32 %v2505_v1, 0.0 }
 0x3ce   : > { %2537 = vst [vmem:[%s3983_s13 + $0x38] sm:$0xff] %v2528_v13  ;;  %v2491_v56 = vpop.f32.mrf.mxu3 }
 0x3cf   : > { %v2492_v31 = vadd.f32 %v2491_v56, %v2165_v11 }
 0x3d0   : > { %v2517_v27 = vpop.f32.mrf.mxu1 }
 0x3d1   : > { %v2518_v62 = vadd.f32 %v2517_v27, %v2165_v11  ;;  %v2506_v0 = vpop.f32.mrf.mxu0  ;;  %v2527_v21 = vmax.f32 %v2492_v31, 0.0 }
 0x3d3   : > { %v2529_v42 = vmax.f32 %v2518_v62, 0.0  ;;  %2536 = vst [vmem:[%s3983_s13 + $0x30] sm:$0xff] %v2527_v21 }
 0x3d5   : > { %2538 = vst [vmem:[%s3983_s13 + $0x40] sm:$0xff] %v2529_v42 }
 0x3d6   : > { %v2493_v50 = vpop.f32.mrf.mxu3 }
 0x3d8   : > { %v2519_v41 = vpop.f32.mrf.mxu1 }
 0x3d9 PF: > { %s17_s24 = sadd.s32 1, %s3023_s24  }
 0x3da   : > { %p14_p4 = scmp.ge.s32.totalorder %s17_s24, 4  }
 0x3dc   :  { %16 = sbr.rel (!%p14_p4) target bundleno = 1 (0x1), region = 126 }

</bundles_post_ra>
